<compile_context>
chip_gen: v5e
topology: v5e:2x2
jax: 0.10.0
libtpu: 0.0.40
codegen_flags: <defaults>
</compile_context>

<pallas_src>
import functools
import math

import jax
import jax.numpy as jnp
from jax.experimental import pallas as pl
from jax.experimental.pallas import tpu as pltpu


def cnn_kernel(x_ref, w1, b1, w24, b24, w35, b35, w6, b6, o_ref,
               bufA, bufB, *, K, pad, Lp, L, halo):
    """One batch tile: Bt samples flattened into Mtot = Bt*Lp rows, CP lanes."""
    Mtot, CP = x_ref.shape

    # Per-sample halo-row mask generated in-kernel (no input DMA).
    rl = jax.lax.broadcasted_iota(jnp.int32, (Mtot, 1), 0) % Lp
    real = (rl >= pad) & (rl < pad + L)                  # (Mtot, 1) bool

    def mask(v):
        return jnp.where(real, v, 0.0)

    # Zero the global halo rows of both scratch slabs every step.  Do NOT gate
    # this on program_id==0: under "parallel" semantics each core has its own
    # scratch and may never run step 0.
    zh = jnp.zeros((halo, CP), jnp.float32)
    bufA[pl.ds(0, halo), :] = zh
    bufA[pl.ds(halo + Mtot, halo), :] = zh
    bufB[pl.ds(0, halo), :] = zh
    bufB[pl.ds(halo + Mtot, halo), :] = zh

    def conv(src, w_ref, b_ref):
        # Taps folded into the contraction: (Mtot, K*CP) @ (K*CP, CP).
        xc = jnp.concatenate(
            [src[pl.ds(halo - pad + k, Mtot), :] for k in range(K)], axis=1)
        return jnp.dot(xc, w_ref[...],
                       preferred_element_type=jnp.float32) + b_ref[...]

    # Stage input tile into bufA's logical band (aligned full-lane store).
    bufA[pl.ds(halo, Mtot), :] = x_ref[...]

    # z1 = relu(K1(x))
    bufB[pl.ds(halo, Mtot), :] = mask(jnp.maximum(conv(bufA, w1, b1), 0.0))
    # h = relu([K2|K4](z1))   (lanes [0:nh2] = branch A, [nh2:2*nh2] = branch B)
    bufA[pl.ds(halo, Mtot), :] = mask(jnp.maximum(conv(bufB, w24, b24), 0.0))
    # z3 = z1 + [K3|K5](h)    (b3 + b5 folded into one bias)
    z1 = bufB[pl.ds(halo, Mtot), :]
    bufB[pl.ds(halo, Mtot), :] = mask(z1 + conv(bufA, w35, b35))
    # out = K6(z3)            (fully masked: halo rows of o_ref are zero)
    o_ref[...] = mask(conv(bufB, w6, b6)).astype(o_ref.dtype)


def cnn_forward_pallas(x, params, stencilsize, batch_tile=64):
    """x: (B, L, nIn) float32 (channels-last). params: (K,Cin,Cout) weights,
    (1,Cout) biases. Returns (B, L, nOut)."""
    B, L, nIn = x.shape
    K = stencilsize
    pad = K // 2
    Lp = L + 2 * pad
    nhid1 = params["w1"].shape[2]
    nhid2 = params["w2"].shape[2]
    nOut = params["w6"].shape[2]

    # Lane width: every channel dim zero-padded to a multiple of 128.
    CP = max(128, -(-max(nIn, nhid1, 2 * nhid2, nOut) // 128) * 128)
    # 8-row-aligned global halo for the scratch slabs (>= pad).
    halo = -(-max(pad, 1) // 8) * 8

    # Batch tile: fold Bt samples into the matmul M dimension per grid step;
    # round Bt so Mtot = Bt*Lp is a multiple of 8.  (On v7x prefer an even
    # number of grid steps so both TensorCores get batch tiles.)
    Bt = min(batch_tile, B)
    g = 8 // math.gcd(Lp, 8)
    Bt = -(-Bt // g) * g
    Mtot = Bt * Lp
    nsteps = -(-B // Bt)
    Bpad = nsteps * Bt

    def pack(w, b):
        # (K, Cin, Cout) -> (K*CP, CP); (1, Cout) -> (1, CP); zero-padded lanes
        # in BOTH weights and biases so padded channels stay exactly zero.
        wp = jnp.pad(w, ((0, 0), (0, CP - w.shape[1]), (0, CP - w.shape[2])))
        bp = jnp.pad(b, ((0, 0), (0, CP - b.shape[1])))
        return wp.reshape(K * CP, CP), bp

    w1, b1 = pack(params["w1"], params["b1"])
    w24, b24 = pack(jnp.concatenate([params["w2"], params["w4"]], axis=2),
                    jnp.concatenate([params["b2"], params["b4"]], axis=1))
    w35, b35 = pack(jnp.concatenate([params["w3"], params["w5"]], axis=1),
                    params["b3"] + params["b5"])
    w6, b6 = pack(params["w6"], params["b6"])
    weight_args = [w1, b1, w24, b24, w35, b35, w6, b6]

    # Zero-pad: halo rows along L ("same" conv), dummy batch rows, padded
    # channel lanes; flatten so sample b occupies rows [b*Lp, (b+1)*Lp).
    x_pad = jnp.pad(x, ((0, Bpad - B), (pad, pad), (0, CP - nIn)))
    x_flat = x_pad.reshape(Bpad * Lp, CP)

    in_specs = [pl.BlockSpec((Mtot, CP), lambda i: (i, 0))]       # batch tile
    for a in weight_args:                                         # grid-invariant
        in_specs.append(pl.BlockSpec(a.shape, lambda i: (0, 0)))

    flops = int(2 * Bpad * Lp * (K * CP) * CP * 4)
    bytes_accessed = int(4 * (x_flat.size + Bpad * Lp * CP
                              + sum(a.size for a in weight_args)))

    out_flat = pl.pallas_call(
        functools.partial(cnn_kernel, K=K, pad=pad, Lp=Lp, L=L, halo=halo),
        out_shape=jax.ShapeDtypeStruct((Bpad * Lp, CP), jnp.float32),
        grid=(nsteps,),
        in_specs=in_specs,
        out_specs=pl.BlockSpec((Mtot, CP), lambda i: (i, 0)),
        scratch_shapes=[
            pltpu.VMEM((Mtot + 2 * halo, CP), jnp.float32),   # x / h slab
            pltpu.VMEM((Mtot + 2 * halo, CP), jnp.float32),   # z1 / z3 slab
        ],
        compiler_params=pltpu.CompilerParams(
            dimension_semantics=("parallel",)),
        cost_estimate=pl.CostEstimate(flops=flops, transcendentals=0,
                                      bytes_accessed=bytes_accessed),
    )(x_flat, *weight_args)

    return out_flat.reshape(Bpad, Lp, CP)[:B, pad:pad + L, :nOut]


# ---------------- pure-JAX reference (same layout) ----------------
def _conv1d_ref(x, w, b):
    B, L, Cin = x.shape
    K = w.shape[0]
    pad = K // 2
    xp = jnp.pad(x, ((0, 0), (pad, pad), (0, 0)))
    out = jnp.zeros((B, L, w.shape[2]), jnp.float32)
    for k in range(K):
        out = out + jnp.einsum("blc,cd->bld", xp[:, k:k + L, :], w[k])
    return out + b[None]


def cnn_forward_ref(x, p):
    z1 = jax.nn.relu(_conv1d_ref(x, p["w1"], p["b1"]))
    z2 = z1 + _conv1d_ref(jax.nn.relu(_conv1d_ref(z1, p["w2"], p["b2"])),
                          p["w3"], p["b3"])
    z3 = z2 + _conv1d_ref(jax.nn.relu(_conv1d_ref(z1, p["w4"], p["b4"])),
                          p["w5"], p["b5"])
    return _conv1d_ref(z3, p["w6"], p["b6"])


def init_params(key, nIn, nhid1, nhid2, nOut, K):
    """Deterministic init mirroring the module's init_weights ranges.
    Weights stored as (K, Cin, Cout); biases as (1, Cout)."""
    initrange, initrangeR = 0.1, 0.001
    dims = [
        ("1", nIn, nhid1, initrange),
        ("2", nhid1, nhid2, initrangeR),
        ("3", nhid2, nhid1, initrangeR),
        ("4", nhid1, nhid2, initrangeR),
        ("5", nhid2, nhid1, initrangeR),
        ("6", nhid1, nOut, initrange),
    ]
    params = {}
    for name, cin, cout, rng in dims:
        key, kw, kb = jax.random.split(key, 3)
        params[f"w{name}"] = jax.random.uniform(
            kw, (K, cin, cout), jnp.float32, -rng, rng)
        bbound = 1.0 / jnp.sqrt(cin * K)   # PyTorch default Conv1d bias range
        params[f"b{name}"] = jax.random.uniform(
            kb, (1, cout), jnp.float32, -bbound, bbound)
    return params


if __name__ == "__main__":
    nIn, nhid1, nhid2, nOut = 4, 32, 16, 4
    stencilsize = 3
    B, L = 16, 16           # small demo shapes (one batch tile / grid step)

    key = jax.random.PRNGKey(0)
    key, kx = jax.random.split(key)
    x = jax.random.normal(kx, (B, L, nIn), jnp.float32)   # channels-last layout
    params = init_params(key, nIn, nhid1, nhid2, nOut, stencilsize)

    out = jax.block_until_ready(cnn_forward_pallas(x, params, stencilsize))
    ref = jax.block_until_ready(cnn_forward_ref(x, params))

    assert out.shape == (B, L, nOut), out.shape
    assert jnp.allclose(out, ref, rtol=1e-5, atol=1e-5), \
        float(jnp.max(jnp.abs(out - ref)))
    print("KERNEL_OK")
</pallas_src>

<mosaic_0001>
module attributes {stable_mosaic.version = 11 : i64} {
  func.func @cnn_kernel(%arg0: i32, %arg1: memref<288x128xf32, #tpu.memory_space<vmem>>, %arg2: memref<384x128xf32, #tpu.memory_space<vmem>>, %arg3: memref<1x128xf32, #tpu.memory_space<vmem>>, %arg4: memref<384x128xf32, #tpu.memory_space<vmem>>, %arg5: memref<1x128xf32, #tpu.memory_space<vmem>>, %arg6: memref<384x128xf32, #tpu.memory_space<vmem>>, %arg7: memref<1x128xf32, #tpu.memory_space<vmem>>, %arg8: memref<384x128xf32, #tpu.memory_space<vmem>>, %arg9: memref<1x128xf32, #tpu.memory_space<vmem>>, %arg10: memref<288x128xf32, #tpu.memory_space<vmem>>, %arg11: memref<304x128xf32, #tpu.memory_space<vmem>>, %arg12: memref<304x128xf32, #tpu.memory_space<vmem>>) attributes {dimension_semantics = [#tpu.dimension_semantics<parallel>], iteration_bounds = array<i64: 1>, scalar_prefetch = 0 : i64, scratch_operands = 2 : i64, tpu.core_type = #tpu.core_type<tc>, window_params = [{transform_indices = @transform_0, window_bounds = array<i64: 288, 128>}, {pipeline_mode = #tpu.pipeline_mode<synchronous>, transform_indices = @transform_1, window_bounds = array<i64: 384, 128>}, {pipeline_mode = #tpu.pipeline_mode<synchronous>, transform_indices = @transform_2, window_bounds = array<i64: 1, 128>}, {pipeline_mode = #tpu.pipeline_mode<synchronous>, transform_indices = @transform_3, window_bounds = array<i64: 384, 128>}, {pipeline_mode = #tpu.pipeline_mode<synchronous>, transform_indices = @transform_4, window_bounds = array<i64: 1, 128>}, {pipeline_mode = #tpu.pipeline_mode<synchronous>, transform_indices = @transform_5, window_bounds = array<i64: 384, 128>}, {pipeline_mode = #tpu.pipeline_mode<synchronous>, transform_indices = @transform_6, window_bounds = array<i64: 1, 128>}, {pipeline_mode = #tpu.pipeline_mode<synchronous>, transform_indices = @transform_7, window_bounds = array<i64: 384, 128>}, {pipeline_mode = #tpu.pipeline_mode<synchronous>, transform_indices = @transform_8, window_bounds = array<i64: 1, 128>}, {transform_indices = @transform_9, window_bounds = array<i64: 288, 128>}]} {
    %0 = tpu.iota {dimensions = array<i32: 0>} : vector<288x1xi32>
    %c18_i32 = arith.constant 18 : i32
    %c0_i32 = arith.constant 0 : i32
    %1 = arith.cmpi eq, %c18_i32, %c0_i32 : i32
    %c1_i32 = arith.constant 1 : i32
    %2 = arith.select %1, %c1_i32, %c18_i32 : i32
    %3 = vector.broadcast %2 : i32 to vector<288x1xi32>
    %4 = arith.remsi %0, %3 : vector<288x1xi32>
    %c0_i32_0 = arith.constant 0 : i32
    %5 = vector.broadcast %c0_i32_0 : i32 to vector<288x1xi32>
    %6 = arith.cmpi ne, %4, %5 : vector<288x1xi32>
    %c0_i32_1 = arith.constant 0 : i32
    %7 = vector.broadcast %c0_i32_1 : i32 to vector<288x1xi32>
    %8 = arith.cmpi slt, %4, %7 : vector<288x1xi32>
    %c0_i32_2 = arith.constant 0 : i32
    %9 = arith.cmpi slt, %2, %c0_i32_2 : i32
    %10 = vector.broadcast %9 : i1 to vector<288x1xi1>
    %11 = vector.broadcast %10 : vector<288x1xi1> to vector<288x1xi1>
    %12 = arith.xori %8, %11 : vector<288x1xi1>
    %13 = arith.andi %12, %6 : vector<288x1xi1>
    %14 = vector.broadcast %2 : i32 to vector<288x1xi32>
    %15 = arith.addi %4, %14 : vector<288x1xi32>
    %16 = arith.select %13, %15, %4 : vector<288x1xi1>, vector<288x1xi32>
    %c1_i32_3 = arith.constant 1 : i32
    %17 = vector.broadcast %c1_i32_3 : i32 to vector<288x1xi32>
    %18 = arith.cmpi sge, %16, %17 : vector<288x1xi32>
    %c17_i32 = arith.constant 17 : i32
    %19 = vector.broadcast %c17_i32 : i32 to vector<288x1xi32>
    %20 = arith.cmpi slt, %16, %19 : vector<288x1xi32>
    %21 = arith.andi %18, %20 : vector<288x1xi1>
    %cst = arith.constant 0.000000e+00 : f32
    %22 = vector.broadcast %cst : f32 to vector<8x128xf32>
    %c0 = arith.constant 0 : index
    %c0_4 = arith.constant 0 : index
    %23 = vector.load %arg11[%c0, %c0_4] : memref<304x128xf32, #tpu.memory_space<vmem>>, vector<8x128xf32>
    tpu.vector_store %arg11[%c0, %c0_4], %22 {strides = array<i32>} : memref<304x128xf32, #tpu.memory_space<vmem>>, vector<8x128xf32>,
    %c296 = arith.constant 296 : index
    %c0_5 = arith.constant 0 : index
    %24 = vector.load %arg11[%c296, %c0_5] : memref<304x128xf32, #tpu.memory_space<vmem>>, vector<8x128xf32>
    tpu.vector_store %arg11[%c296, %c0_5], %22 {strides = array<i32>} : memref<304x128xf32, #tpu.memory_space<vmem>>, vector<8x128xf32>,
    %c0_6 = arith.constant 0 : index
    %c0_7 = arith.constant 0 : index
    %25 = vector.load %arg12[%c0_6, %c0_7] : memref<304x128xf32, #tpu.memory_space<vmem>>, vector<8x128xf32>
    tpu.vector_store %arg12[%c0_6, %c0_7], %22 {strides = array<i32>} : memref<304x128xf32, #tpu.memory_space<vmem>>, vector<8x128xf32>,
    %c296_8 = arith.constant 296 : index
    %c0_9 = arith.constant 0 : index
    %26 = vector.load %arg12[%c296_8, %c0_9] : memref<304x128xf32, #tpu.memory_space<vmem>>, vector<8x128xf32>
    tpu.vector_store %arg12[%c296_8, %c0_9], %22 {strides = array<i32>} : memref<304x128xf32, #tpu.memory_space<vmem>>, vector<8x128xf32>,
    %c0_10 = arith.constant 0 : index
    %c0_11 = arith.constant 0 : index
    %27 = vector.load %arg1[%c0_10, %c0_11] : memref<288x128xf32, #tpu.memory_space<vmem>>, vector<288x128xf32>
    %c8 = arith.constant 8 : index
    %c0_12 = arith.constant 0 : index
    %28 = vector.load %arg11[%c8, %c0_12] : memref<304x128xf32, #tpu.memory_space<vmem>>, vector<288x128xf32>
    tpu.vector_store %arg11[%c8, %c0_12], %27 {strides = array<i32>} : memref<304x128xf32, #tpu.memory_space<vmem>>, vector<288x128xf32>,
    %c7 = arith.constant 7 : index
    %c0_13 = arith.constant 0 : index
    %29 = vector.load %arg11[%c7, %c0_13] : memref<304x128xf32, #tpu.memory_space<vmem>>, vector<288x128xf32>
    %c8_14 = arith.constant 8 : index
    %c0_15 = arith.constant 0 : index
    %30 = vector.load %arg11[%c8_14, %c0_15] : memref<304x128xf32, #tpu.memory_space<vmem>>, vector<288x128xf32>
    %c9 = arith.constant 9 : index
    %c0_16 = arith.constant 0 : index
    %31 = vector.load %arg11[%c9, %c0_16] : memref<304x128xf32, #tpu.memory_space<vmem>>, vector<288x128xf32>
    %32 = tpu.concatenate %29, %30, %31 in 1 : vector<288x128xf32>, vector<288x128xf32>, vector<288x128xf32> -> vector<288x384xf32>
    %c0_17 = arith.constant 0 : index
    %c0_18 = arith.constant 0 : index
    %33 = vector.load %arg2[%c0_17, %c0_18] : memref<384x128xf32, #tpu.memory_space<vmem>>, vector<384x128xf32>
    %cst_19 = arith.constant dense<0.000000e+00> : vector<288x128xf32>
    %34 = tpu.matmul %32, %33, %cst_19 {dimension_numbers = #tpu.dot_dimension_numbers<[1], [0], [0], [1], [0, 0, 1, 1], [], []>} : vector<288x384xf32>, vector<384x128xf32>, vector<288x128xf32> -> vector<288x128xf32>
    %c0_20 = arith.constant 0 : index
    %c0_21 = arith.constant 0 : index
    %35 = vector.load %arg3[%c0_20, %c0_21] : memref<1x128xf32, #tpu.memory_space<vmem>>, vector<1x128xf32>
    %36 = vector.broadcast %35 : vector<1x128xf32> to vector<288x128xf32>
    %37 = arith.addf %34, %36 : vector<288x128xf32>
    %cst_22 = arith.constant 0.000000e+00 : f32
    %38 = vector.broadcast %cst_22 : f32 to vector<288x128xf32>
    %39 = arith.maximumf %37, %38 : vector<288x128xf32>
    %cst_23 = arith.constant 0.000000e+00 : f32
    %40 = vector.shape_cast %21 : vector<288x1xi1> to vector<288x1xi1>
    %41 = vector.broadcast %40 : vector<288x1xi1> to vector<288x128xi1>
    %42 = vector.broadcast %cst_23 : f32 to vector<288x128xf32>
    %43 = arith.select %41, %39, %42 : vector<288x128xi1>, vector<288x128xf32>
    %c8_24 = arith.constant 8 : index
    %c0_25 = arith.constant 0 : index
    %44 = vector.load %arg12[%c8_24, %c0_25] : memref<304x128xf32, #tpu.memory_space<vmem>>, vector<288x128xf32>
    tpu.vector_store %arg12[%c8_24, %c0_25], %43 {strides = array<i32>} : memref<304x128xf32, #tpu.memory_space<vmem>>, vector<288x128xf32>,
    %c7_26 = arith.constant 7 : index
    %c0_27 = arith.constant 0 : index
    %45 = vector.load %arg12[%c7_26, %c0_27] : memref<304x128xf32, #tpu.memory_space<vmem>>, vector<288x128xf32>
    %c8_28 = arith.constant 8 : index
    %c0_29 = arith.constant 0 : index
    %46 = vector.load %arg12[%c8_28, %c0_29] : memref<304x128xf32, #tpu.memory_space<vmem>>, vector<288x128xf32>
    %c9_30 = arith.constant 9 : index
    %c0_31 = arith.constant 0 : index
    %47 = vector.load %arg12[%c9_30, %c0_31] : memref<304x128xf32, #tpu.memory_space<vmem>>, vector<288x128xf32>
    %48 = tpu.concatenate %45, %46, %47 in 1 : vector<288x128xf32>, vector<288x128xf32>, vector<288x128xf32> -> vector<288x384xf32>
    %c0_32 = arith.constant 0 : index
    %c0_33 = arith.constant 0 : index
    %49 = vector.load %arg4[%c0_32, %c0_33] : memref<384x128xf32, #tpu.memory_space<vmem>>, vector<384x128xf32>
    %cst_34 = arith.constant dense<0.000000e+00> : vector<288x128xf32>
    %50 = tpu.matmul %48, %49, %cst_34 {dimension_numbers = #tpu.dot_dimension_numbers<[1], [0], [0], [1], [0, 0, 1, 1], [], []>} : vector<288x384xf32>, vector<384x128xf32>, vector<288x128xf32> -> vector<288x128xf32>
    %c0_35 = arith.constant 0 : index
    %c0_36 = arith.constant 0 : index
    %51 = vector.load %arg5[%c0_35, %c0_36] : memref<1x128xf32, #tpu.memory_space<vmem>>, vector<1x128xf32>
    %52 = vector.broadcast %51 : vector<1x128xf32> to vector<288x128xf32>
    %53 = arith.addf %50, %52 : vector<288x128xf32>
    %cst_37 = arith.constant 0.000000e+00 : f32
    %54 = vector.broadcast %cst_37 : f32 to vector<288x128xf32>
    %55 = arith.maximumf %53, %54 : vector<288x128xf32>
    %cst_38 = arith.constant 0.000000e+00 : f32
    %56 = vector.shape_cast %21 : vector<288x1xi1> to vector<288x1xi1>
    %57 = vector.broadcast %56 : vector<288x1xi1> to vector<288x128xi1>
    %58 = vector.broadcast %cst_38 : f32 to vector<288x128xf32>
    %59 = arith.select %57, %55, %58 : vector<288x128xi1>, vector<288x128xf32>
    %c8_39 = arith.constant 8 : index
    %c0_40 = arith.constant 0 : index
    %60 = vector.load %arg11[%c8_39, %c0_40] : memref<304x128xf32, #tpu.memory_space<vmem>>, vector<288x128xf32>
    tpu.vector_store %arg11[%c8_39, %c0_40], %59 {strides = array<i32>} : memref<304x128xf32, #tpu.memory_space<vmem>>, vector<288x128xf32>,
    %c8_41 = arith.constant 8 : index
    %c0_42 = arith.constant 0 : index
    %61 = vector.load %arg12[%c8_41, %c0_42] : memref<304x128xf32, #tpu.memory_space<vmem>>, vector<288x128xf32>
    %c7_43 = arith.constant 7 : index
    %c0_44 = arith.constant 0 : index
    %62 = vector.load %arg11[%c7_43, %c0_44] : memref<304x128xf32, #tpu.memory_space<vmem>>, vector<288x128xf32>
    %c8_45 = arith.constant 8 : index
    %c0_46 = arith.constant 0 : index
    %63 = vector.load %arg11[%c8_45, %c0_46] : memref<304x128xf32, #tpu.memory_space<vmem>>, vector<288x128xf32>
    %c9_47 = arith.constant 9 : index
    %c0_48 = arith.constant 0 : index
    %64 = vector.load %arg11[%c9_47, %c0_48] : memref<304x128xf32, #tpu.memory_space<vmem>>, vector<288x128xf32>
    %65 = tpu.concatenate %62, %63, %64 in 1 : vector<288x128xf32>, vector<288x128xf32>, vector<288x128xf32> -> vector<288x384xf32>
    %c0_49 = arith.constant 0 : index
    %c0_50 = arith.constant 0 : index
    %66 = vector.load %arg6[%c0_49, %c0_50] : memref<384x128xf32, #tpu.memory_space<vmem>>, vector<384x128xf32>
    %cst_51 = arith.constant dense<0.000000e+00> : vector<288x128xf32>
    %67 = tpu.matmul %65, %66, %cst_51 {dimension_numbers = #tpu.dot_dimension_numbers<[1], [0], [0], [1], [0, 0, 1, 1], [], []>} : vector<288x384xf32>, vector<384x128xf32>, vector<288x128xf32> -> vector<288x128xf32>
    %c0_52 = arith.constant 0 : index
    %c0_53 = arith.constant 0 : index
    %68 = vector.load %arg7[%c0_52, %c0_53] : memref<1x128xf32, #tpu.memory_space<vmem>>, vector<1x128xf32>
    %69 = vector.broadcast %68 : vector<1x128xf32> to vector<288x128xf32>
    %70 = arith.addf %67, %69 : vector<288x128xf32>
    %71 = arith.addf %61, %70 : vector<288x128xf32>
    %cst_54 = arith.constant 0.000000e+00 : f32
    %72 = vector.shape_cast %21 : vector<288x1xi1> to vector<288x1xi1>
    %73 = vector.broadcast %72 : vector<288x1xi1> to vector<288x128xi1>
    %74 = vector.broadcast %cst_54 : f32 to vector<288x128xf32>
    %75 = arith.select %73, %71, %74 : vector<288x128xi1>, vector<288x128xf32>
    %c8_55 = arith.constant 8 : index
    %c0_56 = arith.constant 0 : index
    %76 = vector.load %arg12[%c8_55, %c0_56] : memref<304x128xf32, #tpu.memory_space<vmem>>, vector<288x128xf32>
    tpu.vector_store %arg12[%c8_55, %c0_56], %75 {strides = array<i32>} : memref<304x128xf32, #tpu.memory_space<vmem>>, vector<288x128xf32>,
    %c7_57 = arith.constant 7 : index
    %c0_58 = arith.constant 0 : index
    %77 = vector.load %arg12[%c7_57, %c0_58] : memref<304x128xf32, #tpu.memory_space<vmem>>, vector<288x128xf32>
    %c8_59 = arith.constant 8 : index
    %c0_60 = arith.constant 0 : index
    %78 = vector.load %arg12[%c8_59, %c0_60] : memref<304x128xf32, #tpu.memory_space<vmem>>, vector<288x128xf32>
    %c9_61 = arith.constant 9 : index
    %c0_62 = arith.constant 0 : index
    %79 = vector.load %arg12[%c9_61, %c0_62] : memref<304x128xf32, #tpu.memory_space<vmem>>, vector<288x128xf32>
    %80 = tpu.concatenate %77, %78, %79 in 1 : vector<288x128xf32>, vector<288x128xf32>, vector<288x128xf32> -> vector<288x384xf32>
    %c0_63 = arith.constant 0 : index
    %c0_64 = arith.constant 0 : index
    %81 = vector.load %arg8[%c0_63, %c0_64] : memref<384x128xf32, #tpu.memory_space<vmem>>, vector<384x128xf32>
    %cst_65 = arith.constant dense<0.000000e+00> : vector<288x128xf32>
    %82 = tpu.matmul %80, %81, %cst_65 {dimension_numbers = #tpu.dot_dimension_numbers<[1], [0], [0], [1], [0, 0, 1, 1], [], []>} : vector<288x384xf32>, vector<384x128xf32>, vector<288x128xf32> -> vector<288x128xf32>
    %c0_66 = arith.constant 0 : index
    %c0_67 = arith.constant 0 : index
    %83 = vector.load %arg9[%c0_66, %c0_67] : memref<1x128xf32, #tpu.memory_space<vmem>>, vector<1x128xf32>
    %84 = vector.broadcast %83 : vector<1x128xf32> to vector<288x128xf32>
    %85 = arith.addf %82, %84 : vector<288x128xf32>
    %cst_68 = arith.constant 0.000000e+00 : f32
    %86 = vector.shape_cast %21 : vector<288x1xi1> to vector<288x1xi1>
    %87 = vector.broadcast %86 : vector<288x1xi1> to vector<288x128xi1>
    %88 = vector.broadcast %cst_68 : f32 to vector<288x128xf32>
    %89 = arith.select %87, %85, %88 : vector<288x128xi1>, vector<288x128xf32>
    %c0_69 = arith.constant 0 : index
    %c0_70 = arith.constant 0 : index
    %90 = vector.load %arg10[%c0_69, %c0_70] : memref<288x128xf32, #tpu.memory_space<vmem>>, vector<288x128xf32>
    tpu.vector_store %arg10[%c0_69, %c0_70], %89 {strides = array<i32>} : memref<288x128xf32, #tpu.memory_space<vmem>>, vector<288x128xf32>,
    return
  }
  func.func @transform_0(%arg0: i32) -> (i32, i32) {
    %c0_i32 = arith.constant 0 : i32
    %c0_i32_0 = arith.constant 0 : i32
    return %arg0, %c0_i32 : i32, i32
  }
  func.func @transform_1(%arg0: i32) -> (i32, i32) {
    %c0_i32 = arith.constant 0 : i32
    %c0_i32_0 = arith.constant 0 : i32
    %c0_i32_1 = arith.constant 0 : i32
    return %c0_i32, %c0_i32_0 : i32, i32
  }
  func.func @transform_2(%arg0: i32) -> (i32, i32) {
    %c0_i32 = arith.constant 0 : i32
    %c0_i32_0 = arith.constant 0 : i32
    %c0_i32_1 = arith.constant 0 : i32
    return %c0_i32, %c0_i32_0 : i32, i32
  }
  func.func @transform_3(%arg0: i32) -> (i32, i32) {
    %c0_i32 = arith.constant 0 : i32
    %c0_i32_0 = arith.constant 0 : i32
    %c0_i32_1 = arith.constant 0 : i32
    return %c0_i32, %c0_i32_0 : i32, i32
  }
  func.func @transform_4(%arg0: i32) -> (i32, i32) {
    %c0_i32 = arith.constant 0 : i32
    %c0_i32_0 = arith.constant 0 : i32
    %c0_i32_1 = arith.constant 0 : i32
    return %c0_i32, %c0_i32_0 : i32, i32
  }
  func.func @transform_5(%arg0: i32) -> (i32, i32) {
    %c0_i32 = arith.constant 0 : i32
    %c0_i32_0 = arith.constant 0 : i32
    %c0_i32_1 = arith.constant 0 : i32
    return %c0_i32, %c0_i32_0 : i32, i32
  }
  func.func @transform_6(%arg0: i32) -> (i32, i32) {
    %c0_i32 = arith.constant 0 : i32
    %c0_i32_0 = arith.constant 0 : i32
    %c0_i32_1 = arith.constant 0 : i32
    return %c0_i32, %c0_i32_0 : i32, i32
  }
  func.func @transform_7(%arg0: i32) -> (i32, i32) {
    %c0_i32 = arith.constant 0 : i32
    %c0_i32_0 = arith.constant 0 : i32
    %c0_i32_1 = arith.constant 0 : i32
    return %c0_i32, %c0_i32_0 : i32, i32
  }
  func.func @transform_8(%arg0: i32) -> (i32, i32) {
    %c0_i32 = arith.constant 0 : i32
    %c0_i32_0 = arith.constant 0 : i32
    %c0_i32_1 = arith.constant 0 : i32
    return %c0_i32, %c0_i32_0 : i32, i32
  }
  func.func @transform_9(%arg0: i32) -> (i32, i32) {
    %c0_i32 = arith.constant 0 : i32
    %c0_i32_0 = arith.constant 0 : i32
    return %arg0, %c0_i32 : i32, i32
  }
}

</mosaic_0001>

<bundles_post_ra>
// kernel: tpu_custom_call.1
= control target key start
LH: loop header
LB: loop body
LE: loop exit
PB: predicated region body
PF: predicated region fallthrough
CT: control target
= control target key end

     0   :  { %14 = vsyncpa [#allocation5], 0  ;;  %s6715_s0 = inlined_call_operand.hbm [shape: f32[288,128], index: 0, kind: input, shape index: {}]   ;;  %s6716_s1 = inlined_call_operand.hbm [shape: f32[384,128], index: 1, kind: input, shape index: {}]   ;;  %s6717_s2 = inlined_call_operand.vmem [shape: f32[1,128], index: 2, kind: input, shape index: {}]   ;;  %s6718_s3 = inlined_call_operand.hbm [shape: f32[384,128], index: 3, kind: input, shape index: {}]   ;;  %s6719_s4 = inlined_call_operand.vmem [shape: f32[1,128], index: 4, kind: input, shape index: {}]   ;;  %s6720_s5 = inlined_call_operand.hbm [shape: f32[384,128], index: 5, kind: input, shape index: {}]   ;;  %s6721_s6 = inlined_call_operand.vmem [shape: f32[1,128], index: 6, kind: input, shape index: {}]   ;;  %s6722_s7 = inlined_call_operand.hbm [shape: f32[384,128], index: 7, kind: input, shape index: {}]   ;;  %s6723_s8 = inlined_call_operand.vmem [shape: f32[1,128], index: 8, kind: input, shape index: {}]   ;;  %s6724_s9 = inlined_call_operand.hbm [shape: f32[288,128], index: 9, kind: output, shape index: {}]  }
   0x1   :  { %15 = vsyncpa [#allocation8], 0 }
   0x2   :  { %16 = vsyncpa [#allocation11], 0 }
   0x3   :  { %17 = vsyncpa [#allocation6], 0  ;;  %s35_s11 = sshll.u32 %s6716_s1, 4  ;;  %s4468_s12 = smov [#allocation7]   ;;  %s36_s11 = int_to_ptr.hbm [resolvable:$true] %s35_s11 }
   0x4   :  { %s37_s13 = sshll.u32 %s4468_s12, 4  ;;  %s65_s16 = sshll.u32 %s6720_s5, 4  ;;  %s38_s13 = int_to_ptr.vmem [resolvable:$true] %s37_s13  ;;  %s66_s16 = int_to_ptr.hbm [resolvable:$true] %s65_s16 }
   0x5   :  { %s4469_s17 = smov 128   ;;  %s4470_s18 = smov 8  }
   0x6   :  { %43 = dma.hbm_to_vmem [thread:$0]  %s36_s11, 6144, %s38_s13, [#allocation8], %s4469_s17, %s4469_s17, %s4470_s18  }
   0x7   :  { %s4471_s19 = smov [#allocation10]   ;;  %s22_s1 = sshll.u32 %s6715_s0, 4  ;;  %s23_s1 = int_to_ptr.hbm [resolvable:$true] %s22_s1 }
   0x8   :  { %s67_s20 = sshll.u32 %s4471_s19, 4  ;;  %s50_s24 = sshll.u32 %s6718_s3, 4  ;;  %s68_s20 = int_to_ptr.vmem [resolvable:$true] %s67_s20  ;;  %s51_s24 = int_to_ptr.hbm [resolvable:$true] %s50_s24 }
   0x9   :  { %73 = dma.hbm_to_vmem [thread:$0]  %s66_s16, 6144, %s68_s20, [#allocation11], %s4469_s17, %s4469_s17, %s4470_s18  }
   0xa   :  { %s4472_s25 = smov [#allocation4]   ;;  %s4473_s27 = smov [#allocation9]  }
   0xb   :  { %s24_s26 = sshll.u32 %s4472_s25, 4  ;;  %s52_s0 = sshll.u32 %s4473_s27, 4  ;;  %s25_s26 = int_to_ptr.vmem [resolvable:$true] %s24_s26  ;;  %s53_s0 = int_to_ptr.vmem [resolvable:$true] %s52_s0 }
   0xc   :  { %30 = dma.hbm_to_vmem [thread:$0]  %s23_s1, 4608, %s25_s26, [#allocation5], %s4469_s17, %s4469_s17, %s4470_s18  }
   0xd   :  { %s80_s30 = sshll.u32 %s6722_s7, 4  ;;  %s4474_s3 = smov [#allocation12]   ;;  %s81_s30 = int_to_ptr.hbm [resolvable:$true] %s80_s30 }
   0xe   :  { %58 = dma.hbm_to_vmem [thread:$0]  %s51_s24, 6144, %s53_s0, [#allocation8], %s4469_s17, %s4469_s17, %s4470_s18  }
   0xf   :  { %s82_s10 = sshll.u32 %s4474_s3, 4  ;;  %s83_s10 = int_to_ptr.vmem [resolvable:$true] %s82_s10 }
  0x10   :  { %88 = dma.hbm_to_vmem [thread:$0]  %s81_s30, 6144, %s83_s10, [#allocation11], %s4469_s17, %s4469_s17, %s4470_s18  }
  0x11   :  { %4460 = dma.done.wait [#allocation5], 4608  }
  0x12   :  { %4461 = vsyncadd [#allocation5], 4294962688 }
  0x13   :  { %4462 = dma.done.wait [#allocation8], 12288  }
  0x14   :  { %4463 = vsyncadd [#allocation8], 4294955008 }
  0x15   :  { %4464 = dma.done.wait [#allocation11], 12288  }
  0x16   :  { %4465 = vsyncadd [#allocation11], 4294955008  ;;  %v4475_v0 = vmov 0.0   ;;  %v1679_v1 = vld [vmem:[#allocation7 + $0x78] sm:$0xff]  ;;  %v1678_v4 = vld [vmem:[#allocation7 + $0x70] sm:$0xff]  ;;  %s4206_s0 = sshll.u32 %s6724_s9, 4  ;;  %s4207_s0 = int_to_ptr.hbm [resolvable:$true] %s4206_s0 }
  0x17   :  { %1480 = vst [vmem:[#allocation2] sm:$0xff] %v4475_v0  ;;  %v1695_v2 = vld [vmem:[#allocation7 + $0xf8] sm:$0xff]  ;;  %1716 = vmatpush.msra.mxu0 %v1679_v1  ;;  %v1694_v5 = vld [vmem:[#allocation7 + $0xf0] sm:$0xff]  ;;  %v1677_v7 = vld [vmem:[#allocation7 + $0x68] sm:$0xff] }
  0x18   :  { %1481 = vst [vmem:[#allocation2 + $0x128] sm:$0xff] %v4475_v0  ;;  %v1711_v3 = vld [vmem:[#allocation7 + $0x178] sm:$0xff]  ;;  %1841 = vmatpush.msra.mxu1 %v1695_v2  ;;  %v1710_v6 = vld [vmem:[#allocation7 + $0x170] sm:$0xff]  ;;  %v1693_v8 = vld [vmem:[#allocation7 + $0xe8] sm:$0xff] }
  0x19   :  { %1482 = vst [vmem:[#allocation3] sm:$0xff] %v4475_v0  ;;  %1966 = vmatpush.msra.mxu2 %v1711_v3  ;;  %1717 = vmatpush.msra.mxu0 %v1678_v4  ;;  %v1709_v9 = vld [vmem:[#allocation7 + $0x168] sm:$0xff]  ;;  %v1676_v10 = vld [vmem:[#allocation7 + $0x60] sm:$0xff]  ;;  %v1675_v13 = vld [vmem:[#allocation7 + $0x58] sm:$0xff] }
  0x1a   :  { %1483 = vst [vmem:[#allocation3 + $0x128] sm:$0xff] %v4475_v0  ;;  %1842 = vmatpush.msra.mxu1 %v1694_v5  ;;  %v1692_v11 = vld [vmem:[#allocation7 + $0xe0] sm:$0xff]  ;;  %v1691_v14 = vld [vmem:[#allocation7 + $0xd8] sm:$0xff]  ;;  %v1674_v16 = vld [vmem:[#allocation7 + $0x50] sm:$0xff] }
  0x1b   :  { %1967 = vmatpush.msra.mxu2 %v1710_v6  ;;  %1718 = vmatpush.msra.mxu0 %v1677_v7  ;;  %v1708_v12 = vld [vmem:[#allocation7 + $0x160] sm:$0xff]  ;;  %v1707_v15 = vld [vmem:[#allocation7 + $0x158] sm:$0xff]  ;;  %v1690_v17 = vld [vmem:[#allocation7 + $0xd0] sm:$0xff] }
  0x1c   :  { %1843 = vmatpush.msra.mxu1 %v1693_v8  ;;  %v1706_v18 = vld [vmem:[#allocation7 + $0x150] sm:$0xff]  ;;  %v1673_v19 = vld [vmem:[#allocation7 + $0x48] sm:$0xff]  ;;  %v1672_v22 = vld [vmem:[#allocation7 + $0x40] sm:$0xff] }
  0x1d   :  { %1968 = vmatpush.msra.mxu2 %v1709_v9  ;;  %1719 = vmatpush.msra.mxu0 %v1676_v10  ;;  %v1689_v20 = vld [vmem:[#allocation7 + $0xc8] sm:$0xff]  ;;  %v1688_v23 = vld [vmem:[#allocation7 + $0xc0] sm:$0xff]  ;;  %v1671_v25 = vld [vmem:[#allocation7 + $0x38] sm:$0xff] }
  0x1e   :  { %1844 = vmatpush.msra.mxu1 %v1692_v11  ;;  %v1705_v21 = vld [vmem:[#allocation7 + $0x148] sm:$0xff]  ;;  %v1704_v24 = vld [vmem:[#allocation7 + $0x140] sm:$0xff]  ;;  %v1687_v26 = vld [vmem:[#allocation7 + $0xb8] sm:$0xff] }
  0x1f   :  { %1969 = vmatpush.msra.mxu2 %v1708_v12  ;;  %1720 = vmatpush.msra.mxu0 %v1675_v13  ;;  %v1703_v27 = vld [vmem:[#allocation7 + $0x138] sm:$0xff]  ;;  %v1670_v28 = vld [vmem:[#allocation7 + $0x30] sm:$0xff]  ;;  %v1484_v31 = vld [vmem:[#allocation4] sm:$0xff] }
  0x20   :  { %1845 = vmatpush.msra.mxu1 %v1691_v14  ;;  %v1686_v29 = vld [vmem:[#allocation7 + $0xb0] sm:$0xff]  ;;  %v4558_v32 = vld [vmem:[#allocation4 + $0x8] sm:$0xff]  ;;  %1520 = vst [vmem:[#allocation2 + $0x8] sm:$0xff] %v1484_v31  ;;  %v4562_v35 = vld [vmem:[#allocation4 + $0x18] sm:$0xff] }
  0x21   :  { %1970 = vmatpush.msra.mxu2 %v1707_v15  ;;  %1721 = vmatpush.msra.mxu0 %v1674_v16  ;;  %v1702_v30 = vld [vmem:[#allocation7 + $0x130] sm:$0xff]  ;;  %v1669_v33 = vld [vmem:[#allocation7 + $0x28] sm:$0xff]  ;;  %1521 = vst [vmem:[#allocation2 + $0x10] sm:$0xff] %v4558_v32  ;;  %v4565_v37 = vld [vmem:[#allocation4 + $0x20] sm:$0xff] }
  0x22   :  { %1846 = vmatpush.msra.mxu1 %v1690_v17  ;;  %v4560_v34 = vld [vmem:[#allocation4 + $0x10] sm:$0xff]  ;;  %v1685_v36 = vld [vmem:[#allocation7 + $0xa8] sm:$0xff]  ;;  %v1668_v39 = vld [vmem:[#allocation7 + $0x20] sm:$0xff]  ;;  %1523 = vst [vmem:[#allocation2 + $0x20] sm:$0xff] %v4562_v35 }
  0x23   :  { %1971 = vmatpush.msra.mxu2 %v1706_v18  ;;  %1722 = vmatpush.msra.mxu0 %v1673_v19  ;;  %v1701_v38 = vld [vmem:[#allocation7 + $0x128] sm:$0xff]  ;;  %1522 = vst [vmem:[#allocation2 + $0x18] sm:$0xff] %v4560_v34  ;;  %v1684_v40 = vld [vmem:[#allocation7 + $0xa0] sm:$0xff]  ;;  %v1667_v42 = vld [vmem:[#allocation7 + $0x18] sm:$0xff] }
  0x24   :  { %1847 = vmatpush.msra.mxu1 %v1689_v20  ;;  %v1700_v41 = vld [vmem:[#allocation7 + $0x120] sm:$0xff]  ;;  %1524 = vst [vmem:[#allocation2 + $0x28] sm:$0xff] %v4565_v37  ;;  %v1683_v43 = vld [vmem:[#allocation7 + $0x98] sm:$0xff]  ;;  %v1666_v45 = vld [vmem:[#allocation7 + $0x10] sm:$0xff] }
  0x25   :  { %1972 = vmatpush.msra.mxu2 %v1705_v21  ;;  %1723 = vmatpush.msra.mxu0 %v1672_v22  ;;  %v1699_v44 = vld [vmem:[#allocation7 + $0x118] sm:$0xff]  ;;  %v1682_v46 = vld [vmem:[#allocation7 + $0x90] sm:$0xff]  ;;  %v4570_v47 = vld [vmem:[#allocation4 + $0x28] sm:$0xff] }
  0x26   :  { %1848 = vmatpush.msra.mxu1 %v1688_v23  ;;  %v1698_v48 = vld [vmem:[#allocation7 + $0x110] sm:$0xff]  ;;  %1525 = vst [vmem:[#allocation2 + $0x30] sm:$0xff] %v4570_v47  ;;  %v1665_v49 = vld [vmem:[#allocation7 + $0x8] sm:$0xff]  ;;  %v1664_v52 = vld [vmem:[#allocation7] sm:$0xff] }
  0x27   :  { %1973 = vmatpush.msra.mxu2 %v1704_v24  ;;  %1724 = vmatpush.msra.mxu0 %v1671_v25  ;;  %v1681_v50 = vld [vmem:[#allocation7 + $0x88] sm:$0xff]  ;;  %v1680_v53 = vld [vmem:[#allocation7 + $0x80] sm:$0xff]  ;;  %v2410_v57 = vld [vmem:[#allocation9 + $0xf8] sm:$0xff] }
  0x28   :  { %1849 = vmatpush.msra.mxu1 %v1687_v26  ;;  %v1697_v51 = vld [vmem:[#allocation7 + $0x108] sm:$0xff]  ;;  %v1696_v54 = vld [vmem:[#allocation7 + $0x100] sm:$0xff]  ;;  %v2426_v58 = vld [vmem:[#allocation9 + $0x178] sm:$0xff] }
  0x29   :  { %1974 = vmatpush.msra.mxu2 %v1703_v27  ;;  %1725 = vmatpush.msra.mxu0 %v1670_v28  ;;  %v1556_v55 = vld [vmem:[#allocation2 + $0x7] sm:$0xff]  ;;  %v1490_v59 = vld [vmem:[#allocation4 + $0x30] sm:$0xff]  ;;  %v1491_v1 = vld [vmem:[#allocation4 + $0x38] sm:$0xff] }
  0x2a   :  { %1850 = vmatpush.msra.mxu1 %v1686_v29  ;;  %v1628_v56 = vld [vmem:[#allocation2 + $0x9] sm:$0xff]  ;;  %1526 = vst [vmem:[#allocation2 + $0x38] sm:$0xff] %v1490_v59  ;;  %v1629_v0 = vld [vmem:[#allocation2 + $0x11] sm:$0xff]  ;;  %v1630_v4 = vld [vmem:[#allocation2 + $0x19] sm:$0xff] }
  0x2b   :  { %1975 = vmatpush.msra.mxu2 %v1702_v30  ;;  %1726 = vmatpush.msra.mxu0 %v1669_v33  ;;  %v2409_v60 = vld [vmem:[#allocation9 + $0xf0] sm:$0xff]  ;;  %v2408_v62 = vld [vmem:[#allocation9 + $0xe8] sm:$0xff]  ;;  %1527 = vst [vmem:[#allocation2 + $0x40] sm:$0xff] %v1491_v1  ;;  %v1492_v5 = vld [vmem:[#allocation4 + $0x40] sm:$0xff] }
  0x2c   :  { %1851 = vmatpush.msra.mxu1 %v1685_v36  ;;  %v2425_v61 = vld [vmem:[#allocation9 + $0x170] sm:$0xff]  ;;  %v2424_v2 = vld [vmem:[#allocation9 + $0x168] sm:$0xff]  ;;  %v2407_v6 = vld [vmem:[#allocation9 + $0xe0] sm:$0xff]  ;;  %1528 = vst [vmem:[#allocation2 + $0x48] sm:$0xff] %v1492_v5 }
  0x2d   :  { %1976 = vmatpush.msra.mxu2 %v1701_v38  ;;  %1727 = vmatpush.msra.mxu0 %v1668_v39  ;;  %v1557_v63 = vld [vmem:[#allocation2 + $0xf] sm:$0xff]  ;;  %v1558_v3 = vld [vmem:[#allocation2 + $0x17] sm:$0xff]  ;;  %v1559_v7 = vld [vmem:[#allocation2 + $0x1f] sm:$0xff] }
  0x2e   :  { %1852 = vmatpush.msra.mxu1 %v1684_v40  ;;  %v1631_v8 = vld [vmem:[#allocation2 + $0x21] sm:$0xff]  ;;  %v1632_v12 = vld [vmem:[#allocation2 + $0x29] sm:$0xff]  ;;  %v4577_v16 = vld [vmem:[#allocation4 + $0x58] sm:$0xff] }
  0x2f   :  { %1977 = vmatpush.msra.mxu2 %v1700_v41  ;;  %1728 = vmatpush.msra.mxu0 %v1667_v42  ;;  %v1493_v9 = vld [vmem:[#allocation4 + $0x48] sm:$0xff]  ;;  %v2423_v10 = vld [vmem:[#allocation9 + $0x160] sm:$0xff]  ;;  %v1494_v13 = vld [vmem:[#allocation4 + $0x50] sm:$0xff]  ;;  %1531 = vst [vmem:[#allocation2 + $0x60] sm:$0xff] %v4577_v16 }
  0x30   :  { %1853 = vmatpush.msra.mxu1 %v1683_v43  ;;  %1529 = vst [vmem:[#allocation2 + $0x50] sm:$0xff] %v1493_v9  ;;  %v1560_v11 = vld [vmem:[#allocation2 + $0x27] sm:$0xff]  ;;  %v1561_v14 = vld [vmem:[#allocation2 + $0x2f] sm:$0xff]  ;;  %v2406_v17 = vld [vmem:[#allocation9 + $0xd8] sm:$0xff] }
  0x31   :  { %1978 = vmatpush.msra.mxu2 %v1699_v44  ;;  %1729 = vmatpush.msra.mxu0 %v1666_v45  ;;  %1530 = vst [vmem:[#allocation2 + $0x58] sm:$0xff] %v1494_v13  ;;  %v1633_v15 = vld [vmem:[#allocation2 + $0x31] sm:$0xff]  ;;  %v4581_v21 = vld [vmem:[#allocation4 + $0x60] sm:$0xff]  ;;  %v4584_v24 = vld [vmem:[#allocation4 + $0x68] sm:$0xff] }
  0x32   :  { %1854 = vmatpush.msra.mxu1 %v1682_v46  ;;  %v2422_v18 = vld [vmem:[#allocation9 + $0x158] sm:$0xff]  ;;  %1532 = vst [vmem:[#allocation2 + $0x68] sm:$0xff] %v4581_v21  ;;  %v2405_v25 = vld [vmem:[#allocation9 + $0xd0] sm:$0xff]  ;;  %v2404_v33 = vld [vmem:[#allocation9 + $0xc8] sm:$0xff] }
  0x33   :  { %1979 = vmatpush.msra.mxu2 %v1698_v48  ;;  %1730 = vmatpush.msra.mxu0 %v1665_v49  ;;  %v1562_v19 = vld [vmem:[#allocation2 + $0x37] sm:$0xff]  ;;  %v1563_v22 = vld [vmem:[#allocation2 + $0x3f] sm:$0xff]  ;;  %1533 = vst [vmem:[#allocation2 + $0x70] sm:$0xff] %v4584_v24  ;;  %v1564_v26 = vld [vmem:[#allocation2 + $0x47] sm:$0xff] }
  0x34   :  { %1855 = vmatpush.msra.mxu1 %v1681_v50  ;;  %v1634_v20 = vld [vmem:[#allocation2 + $0x39] sm:$0xff]  ;;  %v1635_v23 = vld [vmem:[#allocation2 + $0x41] sm:$0xff]  ;;  %v4587_v28 = vld [vmem:[#allocation4 + $0x70] sm:$0xff] }
  0x35   :  { %1980 = vmatpush.msra.mxu2 %v1697_v51  ;;  %1731 = vmatpush.msra.mxu0 %v1664_v52  ;;  %v2421_v29 = vld [vmem:[#allocation9 + $0x150] sm:$0xff]  ;;  %1534 = vst [vmem:[#allocation2 + $0x78] sm:$0xff] %v4587_v28  ;;  %v4596_v39 = vld [vmem:[#allocation4 + $0x80] sm:$0xff]  ;;  %v2394_v42 = vld [vmem:[#allocation9 + $0x78] sm:$0xff]  ;;  %v6753_v52 = vmov 0  }
  0x36   :  { %1856 = vmatpush.msra.mxu1 %v1680_v53  ;;  %1732 = vmatmul.f32.vlgmr.msra.gmra.mxu0 %v1556_v55  ;;  %v2420_v43 = vld [vmem:[#allocation9 + $0x148] sm:$0xff]  ;;  %v2393_v44 = vld [vmem:[#allocation9 + $0x70] sm:$0xff]  ;;  %1536 = vst [vmem:[#allocation2 + $0x88] sm:$0xff] %v4596_v39 }
  0x37   :  { %1981 = vmatpush.msra.mxu2 %v1696_v54  ;;  %1857 = vmatmul.f32.vlgmr.msra.gmra.mxu1 %v1484_v31  ;;  %v1636_v27 = vld [vmem:[#allocation2 + $0x49] sm:$0xff] }
  0x38   :  { %1982 = vmatmul.f32.vlgmr.msra.gmra.mxu2 %v1628_v56  ;;  %2556 = vmatpush.msrb.mxu0 %v2410_v57  ;;  %v1565_v30 = vld [vmem:[#allocation2 + $0x4f] sm:$0xff]  ;;  %v1566_v36 = vld [vmem:[#allocation2 + $0x57] sm:$0xff]  ;;  %v1567_v51 = vld [vmem:[#allocation2 + $0x5f] sm:$0xff] }
  0x39   :  { %2681 = vmatpush.msrb.mxu1 %v2426_v58  ;;  %v1637_v31 = vld [vmem:[#allocation2 + $0x51] sm:$0xff]  ;;  %2431 = vmatpush.msra.mxu3 %v2394_v42  ;;  %v2392_v48 = vld [vmem:[#allocation9 + $0x68] sm:$0xff] }
  0x3a   :  { %2557 = vmatpush.msrb.mxu0 %v2409_v60  ;;  %v1639_v56 = vld [vmem:[#allocation2 + $0x61] sm:$0xff]  ;;  %v1569_v42 = vld [vmem:[#allocation2 + $0x6f] sm:$0xff] }
  0x3b   :  { %2682 = vmatpush.msrb.mxu1 %v2425_v61  ;;  %2432 = vmatpush.msra.mxu3 %v2393_v44  ;;  %v4608_v60 = vld [vmem:[#allocation4 + $0x88] sm:$0xff] }
  0x3c   :  { %2558 = vmatpush.msrb.mxu0 %v2408_v62  ;;  %1537 = vst [vmem:[#allocation2 + $0x90] sm:$0xff] %v4608_v60  ;;  %v1641_v44 = vld [vmem:[#allocation2 + $0x71] sm:$0xff] }
  0x3d   :  { %2683 = vmatpush.msrb.mxu1 %v2424_v2  ;;  %2433 = vmatpush.msra.mxu3 %v2392_v48 }
  0x3e   :  { %1735 = vmatmul.f32.gmra.mxu0 %v1557_v63  ;;  %v2390_v63 = vld [vmem:[#allocation9 + $0x58] sm:$0xff] }
  0x3f   :  { %1860 = vmatmul.f32.gmra.mxu1 %v4558_v32  ;;  %2559 = vmatpush.msrb.mxu0 %v2407_v6  ;;  %v4590_v32 = vld [vmem:[#allocation4 + $0x78] sm:$0xff] }
  0x40   :  { %1985 = vmatmul.f32.gmra.mxu2 %v1629_v0  ;;  %2684 = vmatpush.msrb.mxu1 %v2423_v10  ;;  %1535 = vst [vmem:[#allocation2 + $0x80] sm:$0xff] %v4590_v32  ;;  %v1568_v10 = vld [vmem:[#allocation2 + $0x67] sm:$0xff] }
  0x41   :  { %2560 = vmatpush.msrb.mxu0 %v2406_v17 }
  0x42   :  { %2685 = vmatpush.msrb.mxu1 %v2422_v18 }
  0x43   :  { %2561 = vmatpush.msrb.mxu0 %v2405_v25  ;;  %v2387_v25 = vld [vmem:[#allocation9 + $0x40] sm:$0xff] }
  0x44   :  { %2686 = vmatpush.msrb.mxu1 %v2421_v29 }
  0x45   :  { %2562 = vmatpush.msrb.mxu0 %v2404_v33 }
  0x46   :  { %1738 = vmatmul.f32.gmra.mxu0 %v1558_v3  ;;  %2687 = vmatpush.msrb.mxu1 %v2420_v43  ;;  %v2389_v3 = vld [vmem:[#allocation9 + $0x50] sm:$0xff] }
  0x47   :  { %1863 = vmatmul.f32.gmra.mxu1 %v4560_v34  ;;  %v111_v34 = vlaneseq }
  0x48   :  { %1988 = vmatmul.f32.gmra.mxu2 %v1630_v4 }
  0x4e   :  { %1741 = vmatmul.f32.gmra.mxu0 %v1559_v7 }
  0x4f   :  { %1866 = vmatmul.f32.gmra.mxu1 %v4562_v35  ;;  %v4593_v35 = vshrl.u32 %v111_v34, 7 }
  0x50   :  { %1991 = vmatmul.f32.gmra.mxu2 %v1631_v8 }
  0x51   :  { %v151_v38 = vand.u32 65535, %v4593_v35  ;;  %v152_v40 = vshrl.u32 %v4593_v35, 16  ;;  %v4605_v55 = vadd.s32 8, %v4593_v35 }
  0x53   :  { %v155_v41 = vmul.u32 58254, %v151_v38  ;;  %v154_v45 = vmul.u32 14564, %v151_v38  ;;  %v4600_v46 = vmul.u32 14564, %v152_v40  ;;  %v157_v49 = vmul.u32 58254, %v152_v40 }
  0x54   :  { %v180_v58 = vand.u32 65535, %v4605_v55  ;;  %v181_v62 = vshrl.u32 %v4605_v55, 16 }
  0x55   :  { %v160_v50 = vshll.u32 %v4600_v46, 16  ;;  %v159_v4 = vshrl.u32 %v155_v41, 16 }
  0x56   :  { %1744 = vmatmul.f32.gmra.mxu0 %v1560_v11  ;;  %v184_v0 = vmul.u32 58254, %v180_v58  ;;  %v185_v2 = vmul.u32 14564, %v181_v62  ;;  %v186_v7 = vmul.u32 58254, %v181_v62 }
  0x57   :  { %1869 = vmatmul.f32.gmra.mxu1 %v4565_v37  ;;  %v1638_v37 = vld [vmem:[#allocation2 + $0x59] sm:$0xff] }
  0x58   :  { %1994 = vmatmul.f32.gmra.mxu2 %v1632_v12  ;;  %v187_v6 = vshll.u32 %v184_v0, 16  ;;  %v189_v8 = vshll.u32 %v185_v2, 16  ;;  %v1640_v12 = vld [vmem:[#allocation2 + $0x69] sm:$0xff]  ;;  %v190_v38 = vshrl.u32 %v185_v2, 16 }
  0x5e   :  { %1747 = vmatmul.f32.gmra.mxu0 %v1561_v14 }
  0x5f   :  { %1872 = vmatmul.f32.gmra.mxu1 %v4570_v47  ;;  %v158_v47 = vshll.u32 %v155_v41, 16  ;;  %v4629_v41 = vadd.s32 24, %v4593_v35 }
  0x60   :  { %1997 = vmatmul.f32.gmra.mxu2 %v1633_v15 }
  0x61   :  { %vm162_vm0 = vc.u32 %v154_v45, %v158_v47  ;;  %v164_v54 = vadd.s32 %v158_v47, %v154_v45  ;;  %v2384_v45 = vld [vmem:[#allocation9 + $0x28] sm:$0xff]  ;;  %v238_v47 = vand.u32 65535, %v4629_v41 }
  0x62   :  { %v163_v53 = vsel %vm162_vm0, 1, %v6753_v52 }
  0x63   :  { %v165_v57 = vadd.s32 %v163_v53, %v157_v49  ;;  %vm166_vm1 = vc.u32 %v164_v54, %v160_v50  ;;  %v2383_v50 = vld [vmem:[#allocation9 + $0x20] sm:$0xff]  ;;  %v4634_v53 = vld [vmem:[#allocation4 + $0x98] sm:$0xff] }
  0x64   :  { %v167_v61 = vsel %vm166_vm1, 1, %v6753_v52  ;;  %1539 = vst [vmem:[#allocation2 + $0xa0] sm:$0xff] %v4634_v53 }
  0x66   :  { %1750 = vmatmul.f32.gmra.mxu0 %v1562_v19  ;;  %v2403_v19 = vld [vmem:[#allocation9 + $0xc0] sm:$0xff] }
  0x67   :  { %1875 = vmatmul.f32.gmra.mxu1 %v1490_v59  ;;  %v2391_v59 = vld [vmem:[#allocation9 + $0x60] sm:$0xff]  ;;  %2563 = vmatpush.msrb.mxu0 %v2403_v19 }
  0x68   :  { %2000 = vmatmul.f32.gmra.mxu2 %v1634_v20  ;;  %2434 = vmatpush.msra.mxu3 %v2391_v59  ;;  %v188_v20 = vshrl.u32 %v184_v0, 16  ;;  %v2419_v59 = vld [vmem:[#allocation9 + $0x140] sm:$0xff] }
  0x69   :  { %2688 = vmatpush.msrb.mxu1 %v2419_v59 }
  0x6a   :  { %2435 = vmatpush.msra.mxu3 %v2390_v63  ;;  %v241_v63 = vmul.u32 14564, %v238_v47 }
  0x6c   :  { %2436 = vmatpush.msra.mxu3 %v2389_v3  ;;  %v2381_v3 = vld [vmem:[#allocation9 + $0x10] sm:$0xff] }
  0x6e   :  { %1753 = vmatmul.f32.gmra.mxu0 %v1563_v22 }
  0x6f   :  { %1878 = vmatmul.f32.gmra.mxu1 %v1491_v1  ;;  %v183_v1 = vmul.u32 14564, %v180_v58  ;;  %v4639_v58 = vmul.u32 58254, %v238_v47 }
  0x70   :  { %2003 = vmatmul.f32.gmra.mxu2 %v1635_v23 }
  0x71   :  { %vm191_vm2 = vc.u32 %v183_v1, %v187_v6  ;;  %v193_v11 = vadd.s32 %v187_v6, %v183_v1  ;;  %v1570_v6 = vld [vmem:[#allocation2 + $0x77] sm:$0xff] }
  0x72   :  { %v192_v14 = vsel %vm191_vm2, 1, %v6753_v52 }
  0x73   :  { %v194_v18 = vadd.s32 %v192_v14, %v186_v7  ;;  %vm195_vm3 = vc.u32 %v193_v11, %v189_v8  ;;  %v1642_v11 = vld [vmem:[#allocation2 + $0x79] sm:$0xff] }
  0x74   :  { %v196_v22 = vsel %vm195_vm3, 1, %v6753_v52 }
  0x75   :  { %v198_v29 = vadd.s32 %v196_v22, %v194_v18  ;;  %v2379_v18 = vld [vmem:[#allocation9] sm:$0xff] }
  0x76   :  { %1756 = vmatmul.f32.gmra.mxu0 %v1564_v26  ;;  %v2386_v26 = vld [vmem:[#allocation9 + $0x38] sm:$0xff]  ;;  %v4654_v22 = vld [vmem:[#allocation4 + $0xa0] sm:$0xff] }
  0x77   :  { %1881 = vmatmul.f32.gmra.mxu1 %v1492_v5  ;;  %v169_v5 = vadd.s32 %v167_v61, %v165_v57  ;;  %v239_v57 = vshrl.u32 %v4629_v41, 16  ;;  %v2382_v61 = vld [vmem:[#allocation9 + $0x18] sm:$0xff]  ;;  %1540 = vst [vmem:[#allocation2 + $0xa8] sm:$0xff] %v4654_v22 }
  0x78   :  { %2006 = vmatmul.f32.gmra.mxu2 %v1636_v27  ;;  %v4623_v27 = vld [vmem:[#allocation4 + $0x90] sm:$0xff] }
  0x79   :  { %v170_v17 = vadd.s32 %v169_v5, %v159_v4  ;;  %1538 = vst [vmem:[#allocation2 + $0x98] sm:$0xff] %v4623_v27  ;;  %v4642_v1 = vmul.u32 14564, %v239_v57  ;;  %v244_v4 = vmul.u32 58254, %v239_v57  ;;  %v4646_v5 = vadd.s32 32, %v4593_v35 }
  0x7e   :  { %1759 = vmatmul.f32.gmra.mxu0 %v1565_v30 }
  0x7f   :  { %1884 = vmatmul.f32.gmra.mxu1 %v1493_v9  ;;  %v4615_v9 = vadd.s32 16, %v4593_v35 }
  0x80   :  { %2009 = vmatmul.f32.gmra.mxu2 %v1637_v31 }
  0x81   :  { %v209_v15 = vand.u32 65535, %v4615_v9  ;;  %v210_v23 = vshrl.u32 %v4615_v9, 16 }
  0x83   :  { %v213_v30 = vmul.u32 58254, %v209_v15  ;;  %v212_v31 = vmul.u32 14564, %v209_v15  ;;  %v4626_v33 = vmul.u32 14564, %v210_v23  ;;  %v215_v40 = vmul.u32 58254, %v210_v23 }
  0x84   :  { %v267_v15 = vand.u32 65535, %v4646_v5  ;;  %v268_v23 = vshrl.u32 %v4646_v5, 16 }
  0x85   :  { %v218_v43 = vshll.u32 %v4626_v33, 16  ;;  %v219_v8 = vshrl.u32 %v4626_v33, 16 }
  0x86   :  { %1762 = vmatmul.f32.gmra.mxu0 %v1566_v36  ;;  %v216_v36 = vshll.u32 %v213_v30, 16  ;;  %v270_v33 = vmul.u32 14564, %v267_v15 }
  0x87   :  { %1887 = vmatmul.f32.gmra.mxu1 %v1494_v13  ;;  %v2388_v13 = vld [vmem:[#allocation9 + $0x48] sm:$0xff] }
  0x88   :  { %2012 = vmatmul.f32.gmra.mxu2 %v1638_v37  ;;  %2437 = vmatpush.msra.mxu3 %v2388_v13  ;;  %v2385_v37 = vld [vmem:[#allocation9 + $0x30] sm:$0xff]  ;;  %vm220_vm4 = vc.u32 %v212_v31, %v216_v36  ;;  %v247_v13 = vshll.u32 %v4642_v1, 16 }
  0x89   :  { %v221_v48 = vsel %vm220_vm4, 1, %v6753_v52 }
  0x8a   :  { %2438 = vmatpush.msra.mxu3 %v2387_v25  ;;  %v223_v54 = vadd.s32 %v221_v48, %v215_v40  ;;  %v271_v25 = vmul.u32 58254, %v267_v15  ;;  %v1571_v40 = vld [vmem:[#allocation2 + $0x7f] sm:$0xff] }
  0x8c   :  { %2439 = vmatpush.msra.mxu3 %v2386_v26  ;;  %v2402_v26 = vld [vmem:[#allocation9 + $0xb8] sm:$0xff] }
  0x8d   :  { %2564 = vmatpush.msrb.mxu0 %v2402_v26 }
  0x8e   :  { %1765 = vmatmul.f32.gmra.mxu0 %v1567_v51  ;;  %2440 = vmatpush.msra.mxu3 %v2385_v37  ;;  %v274_v37 = vshll.u32 %v271_v25, 16 }
  0x8f   :  { %1890 = vmatmul.f32.gmra.mxu1 %v4577_v16  ;;  %v161_v16 = vshrl.u32 %v4600_v46, 16  ;;  %v222_v46 = vadd.s32 %v216_v36, %v212_v31  ;;  %v4660_v36 = vmul.u32 14564, %v268_v23 }
  0x90   :  { %2015 = vmatmul.f32.gmra.mxu2 %v1639_v56  ;;  %2441 = vmatpush.msra.mxu3 %v2384_v45  ;;  %v217_v56 = vshrl.u32 %v213_v30, 16  ;;  %vm278_vm10 = vc.u32 %v270_v33, %v274_v37  ;;  %v1643_v45 = vld [vmem:[#allocation2 + $0x81] sm:$0xff]  ;;  %v280_v48 = vadd.s32 %v274_v37, %v270_v33 }
  0x91   :  { %v171_v34 = vadd.s32 %v170_v17, %v161_v16  ;;  %vm224_vm5 = vc.u32 %v222_v46, %v218_v43  ;;  %v279_v47 = vsel %vm278_vm10, 1, %v6753_v52 }
  0x92   :  { %2442 = vmatpush.msra.mxu3 %v2383_v50  ;;  %v225_v62 = vsel %vm224_vm5, 1, %v6753_v52  ;;  %v248_v50 = vshrl.u32 %v4642_v1, 16  ;;  %v2418_v1 = vld [vmem:[#allocation9 + $0x138] sm:$0xff] }
  0x93   :  { %v172_v49 = vshrl.u32 %v171_v34, 4  ;;  %v227_v0 = vadd.s32 %v225_v62, %v223_v54  ;;  %v4672_v54 = vld [vmem:[#allocation4 + $0xa8] sm:$0xff]  ;;  %2689 = vmatpush.msrb.mxu1 %v2418_v1 }
  0x94   :  { %2443 = vmatpush.msra.mxu3 %v2382_v61  ;;  %1541 = vst [vmem:[#allocation2 + $0xb0] sm:$0xff] %v4672_v54  ;;  %v4683_v61 = vld [vmem:[%s6717_s2] ss:$0 sm:$0xff] }
  0x95   :  { %v173_v2 = vmul.u32 18, %v172_v49 }
  0x96   :  { %1768 = vmatmul.f32.gmra.mxu0 %v1568_v10  ;;  %v228_v10 = vadd.s32 %v227_v0, %v217_v56  ;;  %2444 = vmatpush.msra.mxu3 %v2381_v3  ;;  %v275_v56 = vshrl.u32 %v271_v25, 16  ;;  %v3089_v0 = vld [vmem:[#allocation10 + $0xf8] sm:$0xff] }
  0x97   :  { %1893 = vmatmul.f32.gmra.mxu1 %v4581_v21  ;;  %v199_v21 = vadd.s32 %v198_v29, %v188_v20  ;;  %v174_v17 = vsub.s32 %v4593_v35, %v173_v2  ;;  %v3073_v29 = vld [vmem:[#allocation10 + $0x78] sm:$0xff] }
  0x98   :  { %2018 = vmatmul.f32.gmra.mxu2 %v1640_v12  ;;  %v2380_v12 = vld [vmem:[#allocation9 + $0x8] sm:$0xff]  ;;  %v229_v30 = vadd.s32 %v228_v10, %v219_v8  ;;  %v4693_v10 = vadd.s32 48, %v4593_v35 }
  0x99   :  { %v200_v51 = vadd.s32 %v199_v21, %v190_v38  ;;  %2445 = vmatpush.msra.mxu3 %v2380_v12  ;;  %3110 = vmatpush.msrb.mxu2 %v3073_v29  ;;  %vm1192_vm8 = vcmp.ne.s32.totalorder %v174_v17, 0  ;;  %vm1228_vm9 = vcmp.lt.s32.totalorder %v174_v17, 0  ;;  %v273_v38 = vmul.u32 58254, %v268_v23  ;;  %v1572_v12 = vld [vmem:[#allocation2 + $0x87] sm:$0xff] }
  0x9a   :  { %v4663_v21 = vadd.s32 40, %v4593_v35  ;;  %v230_v46 = vshrl.u32 %v229_v30, 4  ;;  %vm1264_vm11 = vmand %vm1228_vm9, %vm1192_vm8  ;;  %v4713_v30 = vld [vmem:[#allocation4 + $0xb0] sm:$0xff] }
  0x9b   :  { %v201_v7 = vshrl.u32 %v200_v51, 4  ;;  %2446 = vmatpush.msra.mxu3 %v2379_v18  ;;  %1542 = vst [vmem:[#allocation2 + $0xb8] sm:$0xff] %v4713_v30 }
  0x9c   :  { %v296_v49 = vand.u32 65535, %v4663_v21  ;;  %v297_v57 = vshrl.u32 %v4663_v21, 16 }
  0x9d   :  { %v202_v20 = vmul.u32 18, %v201_v7  ;;  %3235 = vmatpush.msrb.mxu3 %v3089_v0  ;;  %v1645_v0 = vld [vmem:[#allocation2 + $0x91] sm:$0xff] }
  0x9e   :  { %1771 = vmatmul.f32.gmra.mxu0 %v1569_v42  ;;  %v1300_v42 = vadd.s32 18, %v174_v17  ;;  %v4678_v59 = vmul.u32 58254, %v296_v49  ;;  %v299_v2 = vmul.u32 14564, %v296_v49  ;;  %v4688_v3 = vmul.u32 14564, %v297_v57 }
  0x9f   :  { %1896 = vmatmul.f32.gmra.mxu1 %v4584_v24  ;;  %v245_v24 = vshll.u32 %v4639_v58, 16  ;;  %v4666_v43 = vsub.s32 %v4605_v55, %v202_v20  ;;  %v281_v55 = vadd.s32 %v279_v47, %v273_v38  ;;  %v302_v8 = vmul.u32 58254, %v297_v57 }
  0xa0   :  { %2021 = vmatmul.f32.gmra.mxu2 %v1641_v44  ;;  %v276_v44 = vshll.u32 %v4660_v36, 16  ;;  %v4685_v62 = vsel %vm1264_vm11, %v1300_v42, %v174_v17  ;;  %v1644_v17 = vld [vmem:[#allocation2 + $0x89] sm:$0xff]  ;;  %v325_v20 = vand.u32 65535, %v4693_v10  ;;  %v306_v37 = vshrl.u32 %v4688_v3, 16 }
  0xa1   :  { %vm249_vm6 = vc.u32 %v241_v63, %v245_v24  ;;  %v251_v14 = vadd.s32 %v245_v24, %v241_v63  ;;  %vm1193_vm13 = vcmp.ne.s32.totalorder %v4666_v43, 0  ;;  %v231_v63 = vmul.u32 18, %v230_v46 }
  0xa2   :  { %v250_v16 = vsel %vm249_vm6, 1, %v6753_v52  ;;  %vm282_vm12 = vc.u32 %v280_v48, %v276_v44  ;;  %vm1229_vm14 = vcmp.lt.s32.totalorder %v4666_v43, 0  ;;  %vm1372_vm0 = vcmp.ge.s32.totalorder %v4685_v62, 1 }
  0xa3   :  { %v252_v19 = vadd.s32 %v250_v16, %v244_v4  ;;  %vm253_vm7 = vc.u32 %v251_v14, %v247_v13  ;;  %v303_v4 = vshll.u32 %v4678_v59, 16  ;;  %v305_v13 = vshll.u32 %v4688_v3, 16  ;;  %vm4709_vm3 = vmand %vm1229_vm14, %vm1193_vm13 }
  0xa4   :  { %v254_v31 = vsel %vm253_vm7, 1, %v6753_v52  ;;  %v232_v18 = vsub.s32 %v4615_v9, %v231_v63  ;;  %vm1408_vm1 = vcmp.lt.s32.totalorder %v4685_v62, 17  ;;  %v1301_v25 = vadd.s32 18, %v4666_v43 }
  0xa5   :  { %v256_v34 = vadd.s32 %v254_v31, %v252_v19  ;;  %vm307_vm15 = vc.u32 %v299_v2, %v303_v4  ;;  %v309_v14 = vadd.s32 %v303_v4, %v299_v2  ;;  %v304_v31 = vshrl.u32 %v4678_v59, 16  ;;  %vm4738_vm8 = vmand %vm1372_vm0, %vm1408_vm1 }
  0xa6   :  { %1774 = vmatmul.f32.gmra.mxu0 %v1570_v6  ;;  %v277_v6 = vshrl.u32 %v4660_v36, 16  ;;  %v308_v19 = vsel %vm307_vm15, 1, %v6753_v52  ;;  %vm1194_vm4 = vcmp.ne.s32.totalorder %v232_v18, 0  ;;  %vm1230_vm5 = vcmp.lt.s32.totalorder %v232_v18, 0  ;;  %v2401_v36 = vld [vmem:[#allocation9 + $0xb0] sm:$0xff] }
  0xa7   :  { %1899 = vmatmul.f32.gmra.mxu1 %v4587_v28  ;;  %v246_v28 = vshrl.u32 %v4639_v58, 16  ;;  %v283_v58 = vsel %vm282_vm12, 1, %v6753_v52  ;;  %v310_v23 = vadd.s32 %v308_v19, %v302_v8  ;;  %vm311_vm2 = vc.u32 %v309_v14, %v305_v13  ;;  %2565 = vmatpush.msrb.mxu0 %v2401_v36  ;;  %vm4730_vm6 = vmand %vm1230_vm5, %vm1194_vm4  ;;  %v3072_v13 = vld [vmem:[#allocation10 + $0x70] sm:$0xff] }
  0xa8   :  { %2024 = vmatmul.f32.gmra.mxu2 %v1642_v11  ;;  %v312_v33 = vsel %vm311_vm2, 1, %v6753_v52  ;;  %v1337_v46 = vsel %vm4709_vm3, %v1301_v25, %v4666_v43  ;;  %v1302_v47 = vadd.s32 18, %v232_v18  ;;  %v3088_v14 = vld [vmem:[#allocation10 + $0xf0] sm:$0xff] }
  0xa9   :  { %v257_v51 = vadd.s32 %v256_v34, %v246_v28  ;;  %v326_v28 = vshrl.u32 %v4693_v10, 16  ;;  %v4718_v34 = vmul.u32 58254, %v325_v20  ;;  %v314_v38 = vadd.s32 %v312_v33, %v310_v23  ;;  %3111 = vmatpush.msrb.mxu2 %v3072_v13  ;;  %3236 = vmatpush.msrb.mxu3 %v3088_v14  ;;  %v1575_v14 = vld [vmem:[#allocation2 + $0x9f] sm:$0xff] }
  0xaa   :  { %vm1373_vm9 = vcmp.ge.s32.totalorder %v1337_v46, 1  ;;  %v4750_v62 = vsel %vm4730_vm6, %v1302_v47, %v232_v18  ;;  %vm1409_vm10 = vcmp.lt.s32.totalorder %v1337_v46, 17  ;;  %v4787_v47 = vadd.s32 64, %v4593_v35 }
  0xab   :  { %v258_v24 = vadd.s32 %v257_v51, %v248_v50  ;;  %v4722_v42 = vmul.u32 14564, %v326_v28  ;;  %v332_v44 = vshll.u32 %v4718_v34, 16  ;;  %v331_v49 = vmul.u32 58254, %v326_v28  ;;  %v1574_v28 = vld [vmem:[#allocation2 + $0x97] sm:$0xff]  ;;  %vm4778_vm15 = vmand %vm1373_vm9, %vm1409_vm10 }
  0xac   :  { %vm1374_vm12 = vcmp.ge.s32.totalorder %v4750_v62, 1  ;;  %vm1410_vm13 = vcmp.lt.s32.totalorder %v4750_v62, 17 }
  0xad   :  { %v259_v26 = vshrl.u32 %v258_v24, 4  ;;  %v334_v1 = vshll.u32 %v4722_v42, 16  ;;  %v335_v19 = vshrl.u32 %v4722_v42, 16 }
  0xae   :  { %1777 = vmatmul.f32.gmra.mxu0 %v1571_v40  ;;  %v328_v40 = vmul.u32 14564, %v325_v20 }
  0xaf   :  { %1902 = vmatmul.f32.gmra.mxu1 %v4590_v32  ;;  %v285_v32 = vadd.s32 %v283_v58, %v281_v55  ;;  %v260_v48 = vmul.u32 18, %v259_v26  ;;  %v315_v58 = vadd.s32 %v314_v38, %v304_v31  ;;  %v1646_v38 = vld [vmem:[#allocation2 + $0x99] sm:$0xff] }
  0xb0   :  { %2027 = vmatmul.f32.gmra.mxu2 %v1643_v45  ;;  %vm336_vm7 = vc.u32 %v328_v40, %v332_v44  ;;  %v338_v4 = vadd.s32 %v332_v44, %v328_v40  ;;  %v4802_v55 = vld [vmem:[#allocation4 + $0xc0] sm:$0xff] }
  0xb1   :  { %v286_v7 = vadd.s32 %v285_v32, %v275_v56  ;;  %v1573_v56 = vld [vmem:[#allocation2 + $0x8f] sm:$0xff]  ;;  %v4745_v32 = vadd.s32 56, %v4593_v35  ;;  %v316_v2 = vadd.s32 %v315_v58, %v306_v37  ;;  %v337_v3 = vsel %vm336_vm7, 1, %v6753_v52  ;;  %1544 = vst [vmem:[#allocation2 + $0xc8] sm:$0xff] %v4802_v55  ;;  %vm4837_vm7 = vmand %vm1374_vm12, %vm1410_vm13 }
  0xb2   :  { %vm340_vm11 = vc.u32 %v338_v4, %v334_v1  ;;  %v383_v1 = vand.u32 65535, %v4787_v47 }
  0xb3   :  { %v1733_v11 = vpop.f32.mrf.mxu0  ;;  %v287_v29 = vadd.s32 %v286_v7, %v277_v6  ;;  %v4752_v6 = vld [vmem:[#allocation4 + $0xb8] sm:$0xff]  ;;  %v339_v7 = vadd.s32 %v337_v3, %v331_v49  ;;  %v341_v20 = vsel %vm340_vm11, 1, %v6753_v52 }
  0xb4   :  { %v1734_v15 = vadd.f32 %v4683_v61, %v1733_v11  ;;  %v1858_v16 = vpop.f32.mrf.mxu1  ;;  %v4758_v11 = vsub.s32 %v4629_v41, %v260_v48  ;;  %1543 = vst [vmem:[#allocation2 + $0xc0] sm:$0xff] %v4752_v6  ;;  %v317_v41 = vshrl.u32 %v316_v2, 4 }
  0xb5   :  { %v288_v57 = vshrl.u32 %v287_v29, 4  ;;  %v343_v25 = vadd.s32 %v341_v20, %v339_v7  ;;  %v386_v20 = vmul.u32 14564, %v383_v1 }
  0xb6   :  { %1780 = vmatmul.f32.gmra.mxu0 %v1572_v12  ;;  %vm1195_vm14 = vcmp.ne.s32.totalorder %v4758_v11, 0  ;;  %vm1231_vm0 = vcmp.lt.s32.totalorder %v4758_v11, 0  ;;  %v1303_v46 = vadd.s32 18, %v4758_v11  ;;  %v318_v48 = vmul.u32 18, %v317_v41 }
  0xb7   :  { %1905 = vmatmul.f32.gmra.mxu1 %v4596_v39  ;;  %v1859_v39 = vadd.f32 %v1858_v16, %v1734_v15  ;;  %v289_v12 = vmul.u32 18, %v288_v57  ;;  %v333_v15 = vshrl.u32 %v4718_v34, 16  ;;  %v354_v16 = vand.u32 65535, %v4745_v32  ;;  %vm4797_vm2 = vmand %vm1231_vm0, %vm1195_vm14 }
  0xb8   :  { %2030 = vmatmul.f32.gmra.mxu2 %v1644_v17  ;;  %v355_v17 = vshrl.u32 %v4745_v32, 16  ;;  %v4813_v3 = vsel %vm4797_vm2, %v1303_v46, %v4758_v11  ;;  %v4817_v7 = vsub.s32 %v4663_v21, %v318_v48  ;;  %v2416_v48 = vld [vmem:[#allocation9 + $0x128] sm:$0xff] }
  0xb9   :  { %v357_v26 = vmul.u32 14564, %v354_v16  ;;  %v4767_v29 = vmul.u32 58254, %v354_v16  ;;  %v4774_v34 = vsub.s32 %v4646_v5, %v289_v12  ;;  %v344_v40 = vadd.s32 %v343_v25, %v333_v15 }
  0xba   :  { %v4769_v9 = vmul.u32 14564, %v355_v17  ;;  %v4828_v16 = vmul.u32 58254, %v383_v1  ;;  %vm1375_vm9 = vcmp.ge.s32.totalorder %v4813_v3, 1  ;;  %vm1411_vm10 = vcmp.lt.s32.totalorder %v4813_v3, 17 }
  0xbb   :  { %v1983_v45 = vpop.f32.mrf.mxu2  ;;  %v1736_v51 = vpop.f32.mrf.mxu0  ;;  %v361_v42 = vshll.u32 %v4767_v29, 16  ;;  %v345_v49 = vadd.s32 %v344_v40, %v335_v19  ;;  %vm1196_vm3 = vcmp.ne.s32.totalorder %v4774_v34, 0  ;;  %vm1232_vm4 = vcmp.lt.s32.totalorder %v4774_v34, 0  ;;  %v3071_v40 = vld [vmem:[#allocation10 + $0x68] sm:$0xff]  ;;  %vm4887_vm2 = vmand %vm1375_vm9, %vm1411_vm10 }
  0xbc   :  { %v1984_v50 = vadd.f32 %v1983_v45, %v1859_v39  ;;  %v1737_v59 = vadd.f32 %v4683_v61, %v1736_v51  ;;  %v1861_v63 = vpop.f32.mrf.mxu1  ;;  %v360_v45 = vmul.u32 58254, %v355_v17  ;;  %v363_v5 = vshll.u32 %v4769_v9, 16  ;;  %vm4824_vm6 = vmand %vm1232_vm4, %vm1196_vm3  ;;  %3112 = vmatpush.msrb.mxu2 %v3071_v40 }
  0xbd   :  { %vm365_vm1 = vc.u32 %v357_v26, %v361_v42  ;;  %v367_v58 = vadd.s32 %v361_v42, %v357_v26  ;;  %v1304_v4 = vadd.s32 18, %v4774_v34  ;;  %v4831_v17 = vadd.s32 72, %v4593_v35  ;;  %v3087_v42 = vld [vmem:[#allocation10 + $0xe8] sm:$0xff] }
  0xbe   :  { %v2091_v24 = vmax.f32 %v1984_v50, 0.0  ;;  %1783 = vmatmul.f32.gmra.mxu0 %v1573_v56  ;;  %v1862_v18 = vadd.f32 %v1861_v63, %v1737_v59  ;;  %v366_v57 = vsel %vm365_vm1, 1, %v6753_v52  ;;  %v362_v63 = vshrl.u32 %v4767_v29, 16  ;;  %3237 = vmatpush.msrb.mxu3 %v3087_v42 }
  0xbf   :  { %1908 = vmatmul.f32.gmra.mxu1 %v4608_v60  ;;  %v2417_v60 = vld [vmem:[#allocation9 + $0x130] sm:$0xff]  ;;  %vm369_vm5 = vc.u32 %v367_v58, %v363_v5  ;;  %v364_v19 = vshrl.u32 %v4769_v9, 16  ;;  %v4851_v62 = vsel %vm4824_vm6, %v1304_v4, %v4774_v34  ;;  %v4853_v9 = vld [vmem:[#allocation4 + $0xc8] sm:$0xff]  ;;  %vm1197_vm11 = vcmp.ne.s32.totalorder %v4817_v7, 0 }
  0xc0   :  { %v2199_v8 = vsel %vm4738_vm8, %v2091_v24, 0.0  ;;  %2033 = vmatmul.f32.gmra.mxu2 %v1645_v0  ;;  %2690 = vmatpush.msrb.mxu1 %v2417_v60  ;;  %v368_v0 = vadd.s32 %v366_v57, %v360_v45  ;;  %v384_v24 = vshrl.u32 %v4787_v47, 16  ;;  %v1647_v60 = vld [vmem:[#allocation2 + $0xa1] sm:$0xff]  ;;  %1545 = vst [vmem:[#allocation2 + $0xd0] sm:$0xff] %v4853_v9  ;;  %vm1233_vm12 = vcmp.lt.s32.totalorder %v4817_v7, 0  ;;  %v1648_v4 = vld [vmem:[#allocation2 + $0xa9] sm:$0xff] }
  0xc1   :  { %2235 = vst [vmem:[#allocation3 + $0x8] sm:$0xff] %v2199_v8  ;;  %v370_v8 = vsel %vm369_vm5, 1, %v6753_v52  ;;  %v2400_v34 = vld [vmem:[#allocation9 + $0xa8] sm:$0xff]  ;;  %vm1376_vm14 = vcmp.ge.s32.totalorder %v4851_v62, 1  ;;  %v1305_v5 = vadd.s32 18, %v4817_v7  ;;  %v413_v57 = vshrl.u32 %v4831_v17, 16  ;;  %vm4875_vm1 = vmand %vm1233_vm12, %vm1197_vm11 }
  0xc2   :  { %v372_v11 = vadd.s32 %v370_v8, %v368_v0  ;;  %2566 = vmatpush.msrb.mxu0 %v2400_v34  ;;  %2691 = vmatpush.msrb.mxu1 %v2416_v48  ;;  %vm1412_vm3 = vcmp.lt.s32.totalorder %v4851_v62, 17 }
  0xc3   :  { %v1986_v23 = vpop.f32.mrf.mxu2  ;;  %v1739_v33 = vpop.f32.mrf.mxu0  ;;  %v4902_v3 = vsel %vm4875_vm1, %v1305_v5, %v4817_v7  ;;  %vm4932_vm11 = vmand %vm1376_vm14, %vm1412_vm3 }
  0xc4   :  { %v1987_v31 = vadd.f32 %v1986_v23, %v1862_v18  ;;  %v1740_v36 = vadd.f32 %v4683_v61, %v1739_v33  ;;  %v1864_v37 = vpop.f32.mrf.mxu1  ;;  %v4842_v23 = vmul.u32 14564, %v384_v24  ;;  %v373_v29 = vadd.s32 %v372_v11, %v362_v63 }
  0xc5   :  { %v389_v33 = vmul.u32 58254, %v384_v24  ;;  %vm1413_vm14 = vcmp.lt.s32.totalorder %v4902_v3, 17 }
  0xc6   :  { %v2092_v44 = vmax.f32 %v1987_v31, 0.0  ;;  %1786 = vmatmul.f32.gmra.mxu0 %v1574_v28  ;;  %v1865_v59 = vadd.f32 %v1864_v37, %v1740_v36  ;;  %v390_v31 = vshll.u32 %v4828_v16, 16  ;;  %v392_v37 = vshll.u32 %v4842_v23, 16 }
  0xc7   :  { %1911 = vmatmul.f32.gmra.mxu1 %v4623_v27  ;;  %v346_v27 = vshrl.u32 %v345_v49, 4  ;;  %v393_v63 = vshrl.u32 %v4842_v23, 16 }
  0xc8   :  { %v2200_v50 = vsel %vm4778_vm15, %v2092_v44, 0.0  ;;  %2036 = vmatmul.f32.gmra.mxu2 %v1646_v38  ;;  %v2271_v51 = vld [vmem:[#allocation3 + $0x7] sm:$0xff]  ;;  %v412_v38 = vand.u32 65535, %v4831_v17  ;;  %v374_v44 = vadd.s32 %v373_v29, %v364_v19  ;;  %vm394_vm13 = vc.u32 %v386_v20, %v390_v31 }
  0xc9   :  { %2236 = vst [vmem:[#allocation3 + $0x10] sm:$0xff] %v2200_v50  ;;  %2447 = vmatmul.f32.vlgmr.msra.gmra.mxu3 %v2271_v51  ;;  %v347_v41 = vmul.u32 18, %v346_v27  ;;  %v395_v49 = vsel %vm394_vm13, 1, %v6753_v52  ;;  %v391_v51 = vshrl.u32 %v4828_v16, 16  ;;  %v1576_v27 = vld [vmem:[#allocation2 + $0xa7] sm:$0xff]  ;;  %v418_v19 = vmul.u32 58254, %v413_v57 }
  0xca   :  { %v397_v56 = vadd.s32 %v395_v49, %v389_v33  ;;  %v4881_v1 = vmul.u32 58254, %v412_v38  ;;  %v375_v8 = vshrl.u32 %v374_v44, 4  ;;  %vm1377_vm13 = vcmp.ge.s32.totalorder %v4902_v3, 1 }
  0xcb   :  { %v1989_v2 = vpop.f32.mrf.mxu2  ;;  %v1742_v13 = vpop.f32.mrf.mxu0  ;;  %v4866_v46 = vsub.s32 %v4693_v10, %v347_v41  ;;  %v4904_v41 = vld [vmem:[#allocation4 + $0xd0] sm:$0xff] }
  0xcc   :  { %v1990_v12 = vadd.f32 %v1989_v2, %v1865_v59  ;;  %v1867_v18 = vpop.f32.mrf.mxu1  ;;  %v1743_v26 = vadd.f32 %v4683_v61, %v1742_v13  ;;  %v415_v13 = vmul.u32 14564, %v412_v38  ;;  %v419_v16 = vshll.u32 %v4881_v1, 16  ;;  %1546 = vst [vmem:[#allocation2 + $0xd8] sm:$0xff] %v4904_v41 }
  0xcd   :  { %vm1198_vm4 = vcmp.ne.s32.totalorder %v4866_v46, 0  ;;  %vm1234_vm5 = vcmp.lt.s32.totalorder %v4866_v46, 0  ;;  %v420_v34 = vshrl.u32 %v4881_v1, 16  ;;  %v4950_v1 = vld [vmem:[#allocation4 + $0xd8] sm:$0xff] }
  0xce   :  { %v2093_v25 = vmax.f32 %v1990_v12, 0.0  ;;  %1789 = vmatmul.f32.gmra.mxu0 %v1575_v14  ;;  %v1868_v45 = vadd.f32 %v1867_v18, %v1743_v26  ;;  %v4891_v14 = vmul.u32 14564, %v413_v57  ;;  %v4896_v18 = vadd.s32 80, %v4593_v35  ;;  %vm4922_vm9 = vmand %vm1234_vm5, %vm1198_vm4  ;;  %1547 = vst [vmem:[#allocation2 + $0xe0] sm:$0xff] %v4950_v1 }
  0xcf   :  { %1914 = vmatmul.f32.gmra.mxu1 %v4634_v53  ;;  %v396_v53 = vadd.s32 %v390_v31, %v386_v20  ;;  %vm423_vm6 = vc.u32 %v415_v13, %v419_v16  ;;  %v425_v29 = vadd.s32 %v419_v16, %v415_v13  ;;  %vm4983_vm5 = vmand %vm1377_vm13, %vm1413_vm14 }
  0xd0   :  { %v2201_v28 = vsel %vm4837_vm7, %v2093_v25, 0.0  ;;  %2039 = vmatmul.f32.gmra.mxu2 %v1647_v60  ;;  %v2272_v36 = vld [vmem:[#allocation3 + $0xf] sm:$0xff]  ;;  %v421_v7 = vshll.u32 %v4891_v14, 16  ;;  %v376_v25 = vmul.u32 18, %v375_v8  ;;  %v424_v33 = vsel %vm423_vm6, 1, %v6753_v52 }
  0xd1   :  { %2237 = vst [vmem:[#allocation3 + $0x18] sm:$0xff] %v2201_v28  ;;  %2450 = vmatmul.f32.gmra.mxu3 %v2272_v36  ;;  %vm398_vm0 = vc.u32 %v396_v53, %v392_v37  ;;  %v442_v28 = vshrl.u32 %v4896_v18, 16  ;;  %v1306_v37 = vadd.s32 18, %v4866_v46  ;;  %v426_v40 = vadd.s32 %v424_v33, %v418_v19  ;;  %v1577_v53 = vld [vmem:[#allocation2 + $0xaf] sm:$0xff] }
  0xd2   :  { %v399_v0 = vsel %vm398_vm0, 1, %v6753_v52  ;;  %vm427_vm10 = vc.u32 %v425_v29, %v421_v7  ;;  %v422_v57 = vshrl.u32 %v4891_v14, 16 }
  0xd3   :  { %v1992_v50 = vpop.f32.mrf.mxu2  ;;  %v1745_v59 = vpop.f32.mrf.mxu0  ;;  %v401_v12 = vadd.s32 %v399_v0, %v397_v56  ;;  %v4937_v56 = vsub.s32 %v4745_v32, %v376_v25  ;;  %v4948_v0 = vsel %vm4922_vm9, %v1306_v37, %v4866_v46  ;;  %v4962_v46 = vadd.s32 88, %v4593_v35 }
  0xd4   :  { %v1993_v58 = vadd.f32 %v1992_v50, %v1868_v45  ;;  %v1870_v2 = vpop.f32.mrf.mxu1  ;;  %v1746_v11 = vadd.f32 %v4683_v61, %v1745_v59  ;;  %v4941_v59 = vmul.u32 14564, %v442_v28  ;;  %vm1378_vm1 = vcmp.ge.s32.totalorder %v4948_v0, 1 }
  0xd5   :  { %v402_v60 = vadd.s32 %v401_v12, %v391_v51  ;;  %v1649_v51 = vld [vmem:[#allocation2 + $0xb1] sm:$0xff]  ;;  %vm1199_vm0 = vcmp.ne.s32.totalorder %v4937_v56, 0  ;;  %v471_v29 = vshrl.u32 %v4962_v46, 16  ;;  %vm1235_vm4 = vcmp.lt.s32.totalorder %v4937_v56, 0 }
  0xd6   :  { %v2094_v15 = vmax.f32 %v1993_v58, 0.0  ;;  %1792 = vmatmul.f32.gmra.mxu0 %v1576_v27  ;;  %v1871_v31 = vadd.f32 %v1870_v2, %v1746_v11  ;;  %v428_v58 = vsel %vm427_vm10, 1, %v6753_v52  ;;  %v447_v2 = vmul.u32 58254, %v442_v28  ;;  %vm5008_vm10 = vmand %vm1235_vm4, %vm1199_vm0 }
  0xd7   :  { %1917 = vmatmul.f32.gmra.mxu1 %v4654_v22  ;;  %v403_v26 = vadd.s32 %v402_v60, %v393_v63  ;;  %v441_v22 = vand.u32 65535, %v4896_v18  ;;  %v430_v63 = vadd.s32 %v428_v58, %v426_v40  ;;  %v3086_v60 = vld [vmem:[#allocation10 + $0xe0] sm:$0xff]  ;;  %v1307_v3 = vadd.s32 18, %v4937_v56 }
  0xd8   :  { %v2202_v20 = vsel %vm4887_vm2, %v2094_v15, 0.0  ;;  %2042 = vmatmul.f32.gmra.mxu2 %v1648_v4  ;;  %v2273_v23 = vld [vmem:[#allocation3 + $0x17] sm:$0xff]  ;;  %v450_v4 = vshll.u32 %v4941_v59, 16  ;;  %3238 = vmatpush.msrb.mxu3 %v3086_v60  ;;  %vm1414_vm13 = vcmp.lt.s32.totalorder %v4948_v0, 17 }
  0xd9   :  { %2238 = vst [vmem:[#allocation3 + $0x20] sm:$0xff] %v2202_v20  ;;  %2453 = vmatmul.f32.gmra.mxu3 %v2273_v23  ;;  %v404_v38 = vshrl.u32 %v403_v26, 4  ;;  %v444_v5 = vmul.u32 14564, %v441_v22  ;;  %v4926_v48 = vmul.u32 58254, %v441_v22  ;;  %v431_v13 = vadd.s32 %v430_v63, %v420_v34  ;;  %v3070_v15 = vld [vmem:[#allocation10 + $0x60] sm:$0xff]  ;;  %v1578_v22 = vld [vmem:[#allocation2 + $0xb7] sm:$0xff] }
  0xda   :  { %3113 = vmatpush.msrb.mxu2 %v3070_v15  ;;  %v470_v23 = vand.u32 65535, %v4962_v46 }
  0xdb   :  { %v1995_v36 = vpop.f32.mrf.mxu2  ;;  %v1748_v44 = vpop.f32.mrf.mxu0  ;;  %v448_v62 = vshll.u32 %v4926_v48, 16  ;;  %v405_v32 = vmul.u32 18, %v404_v38  ;;  %v432_v19 = vadd.s32 %v431_v13, %v422_v57  ;;  %v449_v28 = vshrl.u32 %v4926_v48, 16  ;;  %v1650_v38 = vld [vmem:[#allocation2 + $0xb9] sm:$0xff] }
  0xdc   :  { %v1996_v42 = vadd.f32 %v1995_v36, %v1871_v31  ;;  %v1873_v50 = vpop.f32.mrf.mxu1  ;;  %v1749_v10 = vadd.f32 %v4683_v61, %v1748_v44  ;;  %v451_v36 = vshrl.u32 %v4941_v59, 16  ;;  %v4988_v44 = vmul.u32 58254, %v470_v23 }
  0xdd   :  { %vm4957_vm12 = vc.u32 %v444_v5, %v448_v62  ;;  %v454_v11 = vadd.s32 %v448_v62, %v444_v5  ;;  %v4973_v25 = vsub.s32 %v4787_v47, %v405_v32  ;;  %v433_v34 = vshrl.u32 %v432_v19, 4  ;;  %v2415_v62 = vld [vmem:[#allocation9 + $0x120] sm:$0xff] }
  0xde   :  { %v2095_v27 = vmax.f32 %v1996_v42, 0.0  ;;  %1795 = vmatmul.f32.gmra.mxu0 %v1577_v53  ;;  %v1874_v16 = vadd.f32 %v1873_v50, %v1749_v10  ;;  %v453_v20 = vsel %vm4957_vm12, 1, %v6753_v52  ;;  %v473_v42 = vmul.u32 14564, %v470_v23  ;;  %v4996_v50 = vld [vmem:[#allocation4 + $0xe0] sm:$0xff]  ;;  %2692 = vmatpush.msrb.mxu1 %v2415_v62 }
  0xdf   :  { %1920 = vmatmul.f32.gmra.mxu1 %v4672_v54  ;;  %v2399_v54 = vld [vmem:[#allocation9 + $0xa0] sm:$0xff]  ;;  %v455_v26 = vadd.s32 %v453_v20, %v447_v2  ;;  %vm456_vm3 = vc.u32 %v454_v11, %v450_v4  ;;  %v4991_v48 = vmul.u32 14564, %v471_v29  ;;  %vm1200_vm6 = vcmp.ne.s32.totalorder %v4973_v25, 0  ;;  %1548 = vst [vmem:[#allocation2 + $0xe8] sm:$0xff] %v4996_v50 }
  0xe0   :  { %v2203_v8 = vsel %vm4932_vm11, %v2095_v27, 0.0  ;;  %2045 = vmatmul.f32.gmra.mxu2 %v1649_v51  ;;  %v2274_v12 = vld [vmem:[#allocation3 + $0x1f] sm:$0xff]  ;;  %2567 = vmatpush.msrb.mxu0 %v2399_v54  ;;  %v457_v40 = vsel %vm456_vm3, 1, %v6753_v52  ;;  %vm1236_vm9 = vcmp.lt.s32.totalorder %v4973_v25, 0  ;;  %v477_v51 = vshll.u32 %v4988_v44, 16  ;;  %v1579_v19 = vld [vmem:[#allocation2 + $0xbf] sm:$0xff]  ;;  %vm5033_vm3 = vmand %vm1378_vm1, %vm1414_vm13 }
  0xe1   :  { %2239 = vst [vmem:[#allocation3 + $0x28] sm:$0xff] %v2203_v8  ;;  %2456 = vmatmul.f32.gmra.mxu3 %v2274_v12  ;;  %v459_v5 = vadd.s32 %v457_v40, %v455_v26  ;;  %v476_v27 = vmul.u32 58254, %v471_v29  ;;  %v479_v10 = vshll.u32 %v4991_v48, 16  ;;  %v5014_v2 = vadd.s32 96, %v4593_v35  ;;  %vm5021_vm14 = vmand %vm1236_vm9, %vm1200_vm6  ;;  %v5048_v40 = vld [vmem:[#allocation4 + $0xe8] sm:$0xff] }
  0xe2   :  { %vm481_vm12 = vc.u32 %v473_v42, %v477_v51  ;;  %v483_v32 = vadd.s32 %v477_v51, %v473_v42  ;;  %v434_v12 = vmul.u32 18, %v433_v34  ;;  %v478_v23 = vshrl.u32 %v4988_v44, 16  ;;  %1549 = vst [vmem:[#allocation2 + $0xf0] sm:$0xff] %v5048_v40  ;;  %v2398_v51 = vld [vmem:[#allocation9 + $0x98] sm:$0xff] }
  0xe3   :  { %v1998_v7 = vpop.f32.mrf.mxu2  ;;  %v1751_v33 = vpop.f32.mrf.mxu0  ;;  %v460_v59 = vadd.s32 %v459_v5, %v449_v28  ;;  %v482_v54 = vsel %vm481_vm12, 1, %v6753_v52  ;;  %v499_v15 = vand.u32 65535, %v5014_v2  ;;  %v500_v11 = vshrl.u32 %v5014_v2, 16  ;;  %2568 = vmatpush.msrb.mxu0 %v2398_v51 }
  0xe4   :  { %v1999_v31 = vadd.f32 %v1998_v7, %v1874_v16  ;;  %v1876_v37 = vpop.f32.mrf.mxu1  ;;  %v1752_v45 = vadd.f32 %v4683_v61, %v1751_v33  ;;  %vm485_vm0 = vc.u32 %v483_v32, %v479_v10  ;;  %v484_v7 = vadd.s32 %v482_v54, %v476_v27  ;;  %v1580_v32 = vld [vmem:[#allocation2 + $0xc7] sm:$0xff] }
  0xe5   :  { %v461_v13 = vadd.s32 %v460_v59, %v451_v36  ;;  %v1343_v33 = vsel %vm5008_vm10, %v1307_v3, %v4937_v56  ;;  %v486_v28 = vsel %vm485_vm0, 1, %v6753_v52  ;;  %v480_v34 = vshrl.u32 %v4991_v48, 16 }
  0xe6   :  { %v2096_v53 = vmax.f32 %v1999_v31, 0.0  ;;  %1798 = vmatmul.f32.gmra.mxu0 %v1578_v22  ;;  %v1877_v4 = vadd.f32 %v1876_v37, %v1752_v45  ;;  %v1651_v31 = vld [vmem:[#allocation2 + $0xc1] sm:$0xff]  ;;  %v502_v42 = vmul.u32 14564, %v499_v15  ;;  %v5050_v44 = vmul.u32 58254, %v499_v15 }
  0xe7   :  { %1923 = vmatmul.f32.gmra.mxu1 %v4713_v30  ;;  %v1308_v30 = vadd.s32 18, %v4973_v25  ;;  %v462_v20 = vshrl.u32 %v461_v13, 4  ;;  %v5052_v56 = vmul.u32 14564, %v500_v11  ;;  %v5058_v45 = vsub.s32 %v4831_v17, %v434_v12  ;;  %v1652_v13 = vld [vmem:[#allocation2 + $0xc9] sm:$0xff] }
  0xe8   :  { %v2204_v57 = vsel %vm4983_vm5, %v2096_v53, 0.0  ;;  %2048 = vmatmul.f32.gmra.mxu2 %v1650_v38  ;;  %v2275_v58 = vld [vmem:[#allocation3 + $0x27] sm:$0xff]  ;;  %v488_v38 = vadd.s32 %v486_v28, %v484_v7  ;;  %v5062_v48 = vadd.s32 104, %v4593_v35  ;;  %vm1379_vm1 = vcmp.ge.s32.totalorder %v1343_v33, 1 }
  0xe9   :  { %2240 = vst [vmem:[#allocation3 + $0x30] sm:$0xff] %v2204_v57  ;;  %2459 = vmatmul.f32.gmra.mxu3 %v2275_v58  ;;  %v5043_v22 = vsel %vm5021_vm14, %v1308_v30, %v4973_v25  ;;  %v463_v37 = vmul.u32 18, %v462_v20  ;;  %v3069_v57 = vld [vmem:[#allocation10 + $0x58] sm:$0xff]  ;;  %v506_v58 = vshll.u32 %v5050_v44, 16  ;;  %vm1415_vm4 = vcmp.lt.s32.totalorder %v1343_v33, 17 }
  0xea   :  { %v489_v5 = vadd.s32 %v488_v38, %v478_v23  ;;  %vm1380_vm6 = vcmp.ge.s32.totalorder %v5043_v22, 1  ;;  %3114 = vmatpush.msrb.mxu2 %v3069_v57  ;;  %v508_v17 = vshll.u32 %v5052_v56, 16  ;;  %vm1201_vm10 = vcmp.ne.s32.totalorder %v5058_v45, 0  ;;  %vm5076_vm13 = vmand %vm1379_vm1, %vm1415_vm4  ;;  %v5086_v23 = vld [vmem:[#allocation4 + $0xf0] sm:$0xff]  ;;  %v2414_v38 = vld [vmem:[#allocation9 + $0x118] sm:$0xff] }
  0xeb   :  { %v2001_v14 = vpop.f32.mrf.mxu2  ;;  %v1754_v60 = vpop.f32.mrf.mxu0  ;;  %v5065_v3 = vsub.s32 %v4896_v18, %v463_v37  ;;  %vm510_vm9 = vc.u32 %v502_v42, %v506_v58  ;;  %v512_v63 = vadd.s32 %v506_v58, %v502_v42  ;;  %v528_v18 = vand.u32 65535, %v5062_v48  ;;  %1550 = vst [vmem:[#allocation2 + $0xf8] sm:$0xff] %v5086_v23  ;;  %v3085_v37 = vld [vmem:[#allocation10 + $0xd8] sm:$0xff]  ;;  %2693 = vmatpush.msrb.mxu1 %v2414_v38 }
  0xec   :  { %v2002_v16 = vadd.f32 %v2001_v14, %v1877_v4  ;;  %v1879_v29 = vpop.f32.mrf.mxu1  ;;  %v1755_v0 = vadd.f32 %v4683_v61, %v1754_v60  ;;  %v490_v10 = vadd.s32 %v489_v5, %v480_v34  ;;  %vm1237_vm12 = vcmp.lt.s32.totalorder %v5058_v45, 0  ;;  %3239 = vmatpush.msrb.mxu3 %v3085_v37 }
  0xed   :  { %v511_v4 = vsel %vm510_vm9, 1, %v6753_v52  ;;  %v1309_v14 = vadd.s32 18, %v5058_v45  ;;  %vm1202_vm14 = vcmp.ne.s32.totalorder %v5065_v3, 0  ;;  %v507_v54 = vshrl.u32 %v5050_v44, 16  ;;  %vm5104_vm9 = vmand %vm1237_vm12, %vm1201_vm10 }
  0xee   :  { %v2097_v36 = vmax.f32 %v2002_v16, 0.0  ;;  %1801 = vmatmul.f32.gmra.mxu0 %v1579_v19  ;;  %v1880_v59 = vadd.f32 %v1879_v29, %v1755_v0  ;;  %vm514_vm0 = vc.u32 %v512_v63, %v508_v17  ;;  %v529_v60 = vshrl.u32 %v5062_v48, 16 }
  0xef   :  { %1926 = vmatmul.f32.gmra.mxu1 %v4752_v6  ;;  %v505_v6 = vmul.u32 58254, %v500_v11  ;;  %v491_v19 = vshrl.u32 %v490_v10, 4  ;;  %v515_v20 = vsel %vm514_vm0, 1, %v6753_v52  ;;  %v531_v7 = vmul.u32 14564, %v528_v18 }
  0xf0   :  { %v2205_v25 = vsel %vm5033_vm3, %v2097_v36, 0.0  ;;  %2051 = vmatmul.f32.gmra.mxu2 %v1651_v31  ;;  %v2276_v53 = vld [vmem:[#allocation3 + $0x2f] sm:$0xff]  ;;  %v5088_v29 = vmul.u32 58254, %v528_v18  ;;  %v509_v28 = vshrl.u32 %v5052_v56, 16  ;;  %v5095_v0 = vmul.u32 14564, %v529_v60 }
  0xf1   :  { %2241 = vst [vmem:[#allocation3 + $0x38] sm:$0xff] %v2205_v25  ;;  %2462 = vmatmul.f32.gmra.mxu3 %v2276_v53  ;;  %v513_v15 = vadd.s32 %v511_v4, %v505_v6  ;;  %vm1238_vm1 = vcmp.lt.s32.totalorder %v5065_v3, 0  ;;  %v534_v34 = vmul.u32 58254, %v529_v60  ;;  %vm1416_vm4 = vcmp.lt.s32.totalorder %v5043_v22, 17 }
  0xf2   :  { %v535_v42 = vshll.u32 %v5088_v29, 16  ;;  %v1310_v56 = vadd.s32 18, %v5065_v3  ;;  %v492_v5 = vmul.u32 18, %v491_v19  ;;  %v537_v51 = vshll.u32 %v5095_v0, 16  ;;  %vm1274_vm10 = vmand %vm1238_vm1, %vm1202_vm14  ;;  %v2397_v19 = vld [vmem:[#allocation9 + $0x90] sm:$0xff] }
  0xf3   :  { %v2004_v27 = vpop.f32.mrf.mxu2  ;;  %v1757_v62 = vpop.f32.mrf.mxu0  ;;  %v517_v36 = vadd.s32 %v515_v20, %v513_v15  ;;  %vm5119_vm12 = vmand %vm1380_vm6, %vm1416_vm4  ;;  %v6891_v10 = vmov 0  ;;  %v5129_v22 = vadd.s32 112, %v4593_v35  ;;  %v538_v20 = vshrl.u32 %v5095_v0, 16  ;;  %2569 = vmatpush.msrb.mxu0 %v2397_v19 }
  0xf4   :  { %v2005_v30 = vadd.f32 %v2004_v27, %v1880_v59  ;;  %v1882_v12 = vpop.f32.mrf.mxu1  ;;  %v1758_v16 = vadd.f32 %v4683_v61, %v1757_v62  ;;  %vm539_vm0 = vc.u32 %v531_v7, %v535_v42  ;;  %v541_v57 = vadd.s32 %v535_v42, %v531_v7  ;;  %v1581_v59 = vld [vmem:[#allocation2 + $0xcf] sm:$0xff] }
  0xf5   :  { %v518_v25 = vadd.s32 %v517_v36, %v507_v54  ;;  %v540_v27 = vsel %vm539_vm0, 1, %v6753_v52  ;;  %v6892_v10 = vsel %vm5119_vm12, 4294967295, %v6891_v10  ;;  %v1345_v62 = vsel %vm5104_vm9, %v1309_v14, %v5058_v45 }
  0xf6   :  { %v2098_v11 = vmax.f32 %v2005_v30, 0.0  ;;  %1804 = vmatmul.f32.gmra.mxu0 %v1580_v32  ;;  %v1883_v44 = vadd.f32 %v1882_v12, %v1758_v16  ;;  %v1653_v30 = vld [vmem:[#allocation2 + $0xd1] sm:$0xff]  ;;  %v536_v32 = vshrl.u32 %v5088_v29, 16  ;;  %v542_v4 = vadd.s32 %v540_v27, %v534_v34 }
  0xf7   :  { %1929 = vmatmul.f32.gmra.mxu1 %v4802_v55  ;;  %v519_v17 = vadd.s32 %v518_v25, %v509_v28  ;;  %vm543_vm14 = vc.u32 %v541_v57, %v537_v51  ;;  %v5132_v54 = vsel %vm1274_vm10, %v1310_v56, %v5065_v3  ;;  %v5141_v45 = vadd.s32 120, %v4593_v35  ;;  %v1582_v34 = vld [vmem:[#allocation2 + $0xd7] sm:$0xff] }
  0xf8   :  { %v2206_v31 = vsel %vm5076_vm13, %v2098_v11, 0.0  ;;  %2054 = vmatmul.f32.gmra.mxu2 %v1652_v13  ;;  %v2277_v33 = vld [vmem:[#allocation3 + $0x37] sm:$0xff]  ;;  %v544_v15 = vsel %vm543_vm14, 1, %v6753_v52  ;;  %v5138_v11 = vld [vmem:[#allocation4 + $0xf8] sm:$0xff]  ;;  %vm1381_vm6 = vcmp.ge.s32.totalorder %v1345_v62, 1  ;;  %vm1417_vm1 = vcmp.lt.s32.totalorder %v1345_v62, 17 }
  0xf9   :  { %2242 = vst [vmem:[#allocation3 + $0x40] sm:$0xff] %v2206_v31  ;;  %2465 = vmatmul.f32.gmra.mxu3 %v2277_v33  ;;  %v520_v13 = vshrl.u32 %v519_v17, 4  ;;  %v546_v3 = vadd.s32 %v544_v15, %v542_v4  ;;  %v558_v7 = vshrl.u32 %v5129_v22, 16  ;;  %vm1418_vm9 = vcmp.lt.s32.totalorder %v5132_v54, 17  ;;  %vm5166_vm14 = vmand %vm1381_vm6, %vm1417_vm1  ;;  %v5191_v62 = vld [vmem:[#allocation4 + $0x100] sm:$0xff]  ;;  %v5239_v17 = vld [vmem:[#allocation4 + $0x108] sm:$0xff] }
  0xfa   :  { %1551 = vst [vmem:[#allocation2 + $0x100] sm:$0xff] %v5138_v11  ;;  %v586_v33 = vand.u32 65535, %v5141_v45  ;;  %v587_v55 = vshrl.u32 %v5141_v45, 16  ;;  %v6893_v56 = vmov 0 }
  0xfb   :  { %v2007_v53 = vpop.f32.mrf.mxu2  ;;  %v1760_v58 = vpop.f32.mrf.mxu0  ;;  %v521_v60 = vmul.u32 18, %v520_v13  ;;  %v5160_v0 = vmul.u32 14564, %v558_v7  ;;  %v6894_v56 = vsel %vm5166_vm14, 4294967295, %v6893_v56  ;;  %1552 = vst [vmem:[#allocation2 + $0x108] sm:$0xff] %v5191_v62 }
  0xfc   :  { %v2008_v6 = vadd.f32 %v2007_v53, %v1883_v44  ;;  %v1761_v63 = vadd.f32 %v4683_v61, %v1760_v58  ;;  %v1885_v18 = vpop.f32.mrf.mxu1  ;;  %v5135_v61 = vsub.s32 %v4962_v46, %v492_v5  ;;  %v557_v46 = vand.u32 65535, %v5129_v22  ;;  %v1654_v53 = vld [vmem:[#allocation2 + $0xd9] sm:$0xff]  ;;  %1553 = vst [vmem:[#allocation2 + $0x110] sm:$0xff] %v5239_v17 }
  0xfd   :  { %v5158_v36 = vsub.s32 %v5014_v2, %v521_v60  ;;  %v563_v5 = vmul.u32 58254, %v558_v7  ;;  %v589_v57 = vmul.u32 14564, %v586_v33  ;;  %v5174_v58 = vld [vmem:[%s6717_s2] ss:$0 sm:$0xff]  ;;  %v566_v27 = vshll.u32 %v5160_v0, 16  ;;  %v3084_v60 = vld [vmem:[#allocation10 + $0xd0] sm:$0xff] }
  0xfe   :  { %v2099_v12 = vmax.f32 %v2008_v6, 0.0  ;;  %1807 = vmatmul.f32.gmra.mxu0 %v1581_v59  ;;  %v1886_v29 = vadd.f32 %v1885_v18, %v1761_v63  ;;  %v5152_v31 = vmul.u32 58254, %v557_v46  ;;  %vm1203_vm0 = vcmp.ne.s32.totalorder %v5135_v61, 0  ;;  %3240 = vmatpush.msrb.mxu3 %v3084_v60 }
  0xff   :  { %1932 = vmatmul.f32.gmra.mxu1 %v4853_v9  ;;  %v547_v9 = vadd.s32 %v546_v3, %v536_v32  ;;  %vm1239_vm10 = vcmp.lt.s32.totalorder %v5135_v61, 0  ;;  %v1311_v42 = vadd.s32 18, %v5135_v61  ;;  %v560_v44 = vmul.u32 14564, %v557_v46  ;;  %v2413_v3 = vld [vmem:[#allocation9 + $0x110] sm:$0xff] }
 0x100   :  { %v2207_v14 = vsel %vm5119_vm12, %v2099_v12, 0.0  ;;  %2057 = vmatmul.f32.gmra.mxu2 %v1653_v30  ;;  %v2278_v16 = vld [vmem:[#allocation3 + $0x3f] sm:$0xff]  ;;  %v564_v51 = vshll.u32 %v5152_v31, 16  ;;  %vm5181_vm6 = vmand %vm1239_vm10, %vm1203_vm0  ;;  %v5186_v63 = vmul.u32 58254, %v586_v33  ;;  %vm1204_vm1 = vcmp.ne.s32.totalorder %v5158_v36, 0  ;;  %2694 = vmatpush.msrb.mxu1 %v2413_v3 }
 0x101   :  { %2243 = vst [vmem:[#allocation3 + $0x48] sm:$0xff] %v2207_v14  ;;  %2468 = vmatmul.f32.gmra.mxu3 %v2278_v16  ;;  %v548_v2 = vadd.s32 %v547_v9, %v538_v20  ;;  %vm1240_vm4 = vcmp.lt.s32.totalorder %v5158_v36, 0  ;;  %v565_v30 = vshrl.u32 %v5152_v31, 16  ;;  %v5197_v13 = vmul.u32 14564, %v587_v55  ;;  %v3068_v16 = vld [vmem:[#allocation10 + $0x50] sm:$0xff] }
 0x102   :  { %vm568_vm0 = vc.u32 %v560_v44, %v564_v51  ;;  %v570_v12 = vadd.s32 %v564_v51, %v560_v44  ;;  %v5202_v15 = vsel %vm5181_vm6, %v1311_v42, %v5135_v61  ;;  %3115 = vmatpush.msrb.mxu2 %v3068_v16  ;;  %v593_v20 = vshll.u32 %v5186_v63, 16  ;;  %vm5213_vm6 = vmand %vm1240_vm4, %vm1204_vm1 }
 0x103   :  { %v2010_v28 = vpop.f32.mrf.mxu2  ;;  %v1763_v38 = vpop.f32.mrf.mxu0  ;;  %v549_v18 = vshrl.u32 %v548_v2, 4  ;;  %v567_v61 = vshrl.u32 %v5160_v0, 16  ;;  %v592_v31 = vmul.u32 58254, %v587_v55  ;;  %v6900_v0 = vmov 0 }
 0x104   :  { %v2011_v37 = vadd.f32 %v2010_v28, %v1886_v29  ;;  %v1888_v25 = vpop.f32.mrf.mxu1  ;;  %v1764_v59 = vadd.f32 %v5174_v58, %v1763_v38  ;;  %vm572_vm10 = vc.u32 %v570_v12, %v566_v27  ;;  %v1312_v29 = vadd.s32 18, %v5158_v36 }
 0x105   :  { %v550_v14 = vmul.u32 18, %v549_v18  ;;  %v573_v9 = vsel %vm572_vm10, 1, %v6753_v52  ;;  %vm6899_vm10 = vcmp.ge.s32.totalorder %v5132_v54, 1  ;;  %vm1383_vm4 = vcmp.ge.s32.totalorder %v5202_v15, 1 }
 0x106   :  { %v2100_v6 = vmax.f32 %v2011_v37, 0.0  ;;  %1810 = vmatmul.f32.gmra.mxu0 %v1582_v34  ;;  %v1889_v46 = vadd.f32 %v1888_v25, %v1764_v59  ;;  %v1583_v37 = vld [vmem:[#allocation2 + $0xdf] sm:$0xff]  ;;  %vm1419_vm1 = vcmp.lt.s32.totalorder %v5202_v15, 17  ;;  %v599_v51 = vadd.s32 %v593_v20, %v589_v57 }
 0x107   :  { %1935 = vmatmul.f32.gmra.mxu1 %v4904_v41  ;;  %v569_v41 = vsel %vm568_vm0, 1, %v6753_v52  ;;  %v5218_v34 = vsub.s32 %v5062_v48, %v550_v14  ;;  %vm597_vm0 = vc.u32 %v589_v57, %v593_v20  ;;  %v1655_v25 = vld [vmem:[#allocation2 + $0xe1] sm:$0xff]  ;;  %v595_v48 = vshll.u32 %v5197_v13, 16 }
 0x108   :  { %v2208_v32 = vsel %vm5166_vm14, %v2100_v6, 0.0  ;;  %2060 = vmatmul.f32.gmra.mxu2 %v1654_v53  ;;  %v2279_v4 = vld [vmem:[#allocation3 + $0x47] sm:$0xff]  ;;  %v571_v19 = vadd.s32 %v569_v41, %v563_v5  ;;  %vm5224_vm14 = vmand %vm6899_vm10, %vm1418_vm9  ;;  %v598_v5 = vsel %vm597_vm0, 1, %v6753_v52  ;;  %v5236_v54 = vsel %vm5213_vm6, %v1312_v29, %v5158_v36 }
 0x109   :  { %2244 = vst [vmem:[#allocation3 + $0x50] sm:$0xff] %v2208_v32  ;;  %2471 = vmatmul.f32.gmra.mxu3 %v2279_v4  ;;  %v6901_v0 = vsel %vm5224_vm14, 4294967295, %v6900_v0  ;;  %v594_v6 = vshrl.u32 %v5186_v63, 16  ;;  %v600_v59 = vadd.s32 %v598_v5, %v592_v31  ;;  %v5242_v27 = vadd.s32 128, %v4593_v35  ;;  %vm5265_vm10 = vmand %vm1383_vm4, %vm1419_vm1  ;;  %v1656_v31 = vld [vmem:[#allocation2 + $0xe9] sm:$0xff] }
 0x10a   :  { %v575_v42 = vadd.s32 %v573_v9, %v571_v19  ;;  %vm1205_vm9 = vcmp.ne.s32.totalorder %v5218_v34, 0  ;;  %v596_v36 = vshrl.u32 %v5197_v13, 16  ;;  %vm601_vm0 = vc.u32 %v599_v51, %v595_v48 }
 0x10b   :  { %v2013_v7 = vpop.f32.mrf.mxu2  ;;  %v1766_v28 = vpop.f32.mrf.mxu0  ;;  %v615_v63 = vand.u32 65535, %v5242_v27  ;;  %v616_v32 = vshrl.u32 %v5242_v27, 16  ;;  %v602_v12 = vsel %vm601_vm0, 1, %v6753_v52  ;;  %v5255_v14 = vadd.s32 136, %v4593_v35 }
 0x10c   :  { %v2014_v33 = vadd.f32 %v2013_v7, %v1889_v46  ;;  %v1767_v44 = vadd.f32 %v5174_v58, %v1766_v28  ;;  %v1891_v55 = vpop.f32.mrf.mxu1  ;;  %v576_v2 = vadd.s32 %v575_v42, %v565_v30  ;;  %v604_v13 = vadd.s32 %v602_v12, %v600_v59  ;;  %v1584_v7 = vld [vmem:[#allocation2 + $0xe7] sm:$0xff] }
 0x10d   :  { %v618_v60 = vmul.u32 14564, %v615_v63  ;;  %v5257_v3 = vmul.u32 58254, %v615_v63  ;;  %v5259_v41 = vmul.u32 14564, %v616_v32  ;;  %v6902_v46 = vmov 0  ;;  %v2412_v63 = vld [vmem:[#allocation9 + $0x108] sm:$0xff] }
 0x10e   :  { %v2101_v53 = vmax.f32 %v2014_v33, 0.0  ;;  %1813 = vmatmul.f32.gmra.mxu0 %v1583_v37  ;;  %v577_v30 = vadd.s32 %v576_v2, %v567_v61  ;;  %v1892_v4 = vadd.f32 %v1891_v55, %v1767_v44  ;;  %v6903_v46 = vsel %vm5265_vm10, 4294967295, %v6902_v46  ;;  %v5288_v2 = vld [vmem:[#allocation4 + $0x110] sm:$0xff]  ;;  %2695 = vmatpush.msrb.mxu1 %v2412_v63 }
 0x10f   :  { %1938 = vmatmul.f32.gmra.mxu1 %v4950_v1  ;;  %v1313_v29 = vadd.s32 18, %v5218_v34  ;;  %vm1420_vm6 = vcmp.lt.s32.totalorder %v5236_v54, 17  ;;  %v605_v33 = vadd.s32 %v604_v13, %v594_v6  ;;  %v621_v28 = vmul.u32 58254, %v616_v32  ;;  %1554 = vst [vmem:[#allocation2 + $0x118] sm:$0xff] %v5288_v2 }
 0x110   :  { %v2209_v18 = vsel %vm5224_vm14, %v2101_v53, 0.0  ;;  %2063 = vmatmul.f32.gmra.mxu2 %v1655_v25  ;;  %v2280_v57 = vld [vmem:[#allocation3 + $0x4f] sm:$0xff]  ;;  %v578_v1 = vshrl.u32 %v577_v30, 4  ;;  %vm6904_vm14 = vcmp.lt.s32.totalorder %v5218_v34, 0  ;;  %v622_v37 = vshll.u32 %v5257_v3, 16 }
 0x111   :  { %2245 = vst [vmem:[#allocation3 + $0x58] sm:$0xff] %v2209_v18  ;;  %2474 = vmatmul.f32.gmra.mxu3 %v2280_v57  ;;  %vm5276_vm4 = vmand %vm6904_vm14, %vm1205_vm9  ;;  %v624_v55 = vshll.u32 %v5259_v41, 16  ;;  %v606_v25 = vadd.s32 %v605_v33, %v596_v36  ;;  %v644_v5 = vand.u32 65535, %v5255_v14  ;;  %v2396_v18 = vld [vmem:[#allocation9 + $0x88] sm:$0xff]  ;;  %v645_v30 = vshrl.u32 %v5255_v14, 16  ;;  %v1657_v33 = vld [vmem:[#allocation2 + $0xf1] sm:$0xff] }
 0x112   :  { %v579_v61 = vmul.u32 18, %v578_v1  ;;  %vm5284_vm1 = vc.u32 %v618_v60, %v622_v37  ;;  %v628_v53 = vadd.s32 %v622_v37, %v618_v60  ;;  %v5297_v6 = vsel %vm5276_vm4, %v1313_v29, %v5218_v34  ;;  %v3067_v57 = vld [vmem:[#allocation10 + $0x48] sm:$0xff]  ;;  %2570 = vmatpush.msrb.mxu0 %v2396_v18 }
 0x113   :  { %v2016_v16 = vpop.f32.mrf.mxu2  ;;  %v1769_v20 = vpop.f32.mrf.mxu0  ;;  %v607_v59 = vshrl.u32 %v606_v25, 4  ;;  %3116 = vmatpush.msrb.mxu2 %v3067_v57  ;;  %v3083_v34 = vld [vmem:[#allocation10 + $0xc8] sm:$0xff]  ;;  %v623_v32 = vshrl.u32 %v5257_v3, 16  ;;  %v625_v60 = vshrl.u32 %v5259_v41, 16  ;;  %v6912_v41 = vmov 0 }
 0x114   :  { %v2017_v19 = vadd.f32 %v2016_v16, %v1892_v4  ;;  %v1894_v9 = vpop.f32.mrf.mxu1  ;;  %v1770_v42 = vadd.f32 %v5174_v58, %v1769_v20  ;;  %v580_v44 = vsub.s32 %v5129_v22, %v579_v61  ;;  %vm630_vm0 = vc.u32 %v628_v53, %v624_v55  ;;  %3241 = vmatpush.msrb.mxu3 %v3083_v34  ;;  %v1585_v29 = vld [vmem:[#allocation2 + $0xef] sm:$0xff]  ;;  %v1658_v61 = vld [vmem:[#allocation2 + $0xf9] sm:$0xff] }
 0x115   :  { %v631_v1 = vsel %vm630_vm0, 1, %v6753_v52  ;;  %v608_v13 = vmul.u32 18, %v607_v59  ;;  %vm6911_vm0 = vcmp.ge.s32.totalorder %v5236_v54, 1  ;;  %v650_v25 = vmul.u32 58254, %v645_v30 }
 0x116   :  { %v2102_v38 = vmax.f32 %v2017_v19, 0.0  ;;  %1816 = vmatmul.f32.gmra.mxu0 %v1584_v7  ;;  %vm1206_vm14 = vcmp.ne.s32.totalorder %v580_v44, 0  ;;  %vm1242_vm9 = vcmp.lt.s32.totalorder %v580_v44, 0  ;;  %v1895_v36 = vadd.f32 %v1894_v9, %v1770_v42 }
 0x117   :  { %1941 = vmatmul.f32.gmra.mxu1 %v4996_v50  ;;  %v627_v50 = vsel %vm5284_vm1, 1, %v6753_v52  ;;  %v1314_v16 = vadd.s32 18, %v580_v44  ;;  %v5307_v19 = vmul.u32 58254, %v644_v5  ;;  %vm5311_vm4 = vmand %vm1242_vm9, %vm1206_vm14  ;;  %v647_v9 = vmul.u32 14564, %v644_v5  ;;  %v5336_v5 = vld [vmem:[#allocation4 + $0x118] sm:$0xff] }
 0x118   :  { %v2210_v51 = vsel %vm5265_vm10, %v2102_v38, 0.0  ;;  %2066 = vmatmul.f32.gmra.mxu2 %v1656_v31  ;;  %v2281_v22 = vld [vmem:[#allocation3 + $0x57] sm:$0xff]  ;;  %v629_v4 = vadd.s32 %v627_v50, %v621_v28  ;;  %v5315_v31 = vmul.u32 14564, %v645_v30  ;;  %vm5321_vm1 = vmand %vm6911_vm0, %vm1420_vm6  ;;  %v609_v28 = vsub.s32 %v5141_v45, %v608_v13  ;;  %1555 = vst [vmem:[#allocation2 + $0x120] sm:$0xff] %v5336_v5 }
 0x119   :  { %2246 = vst [vmem:[#allocation3 + $0x60] sm:$0xff] %v2210_v51  ;;  %2477 = vmatmul.f32.gmra.mxu3 %v2281_v22  ;;  %v6913_v41 = vsel %vm5321_vm1, 4294967295, %v6912_v41  ;;  %v651_v37 = vshll.u32 %v5307_v19, 16  ;;  %vm1421_vm14 = vcmp.lt.s32.totalorder %v5297_v6, 17  ;;  %v5332_v54 = vsel %vm5311_vm4, %v1314_v16, %v580_v44 }
 0x11a   :  { %v633_v3 = vadd.s32 %v631_v1, %v629_v4  ;;  %v652_v48 = vshrl.u32 %v5307_v19, 16  ;;  %v653_v53 = vshll.u32 %v5315_v31, 16  ;;  %vm1207_vm9 = vcmp.ne.s32.totalorder %v609_v28, 0 }
 0x11b   :  { %v2019_v12 = vpop.f32.mrf.mxu2  ;;  %v1772_v7 = vpop.f32.mrf.mxu0  ;;  %vm655_vm6 = vc.u32 %v647_v9, %v651_v37  ;;  %v657_v59 = vadd.s32 %v651_v37, %v647_v9  ;;  %vm1243_vm4 = vcmp.lt.s32.totalorder %v609_v28, 0  ;;  %v5343_v18 = vadd.s32 144, %v4593_v35 }
 0x11c   :  { %v2020_v20 = vadd.f32 %v2019_v12, %v1895_v36  ;;  %v1897_v15 = vpop.f32.mrf.mxu1  ;;  %v1773_v42 = vadd.f32 %v5174_v58, %v1772_v7  ;;  %v634_v55 = vadd.s32 %v633_v3, %v623_v32  ;;  %v656_v44 = vsel %vm655_vm6, 1, %v6753_v52  ;;  %v1586_v12 = vld [vmem:[#allocation2 + $0xf7] sm:$0xff]  ;;  %vm5352_vm6 = vmand %vm1243_vm4, %vm1207_vm9 }
 0x11d   :  { %v658_v30 = vadd.s32 %v656_v44, %v650_v25  ;;  %v1315_v34 = vadd.s32 18, %v609_v28  ;;  %vm659_vm10 = vc.u32 %v657_v59, %v653_v53  ;;  %v673_v63 = vand.u32 65535, %v5343_v18 }
 0x11e   :  { %v2103_v38 = vmax.f32 %v2020_v20, 0.0  ;;  %1819 = vmatmul.f32.gmra.mxu0 %v1585_v29  ;;  %v635_v22 = vadd.s32 %v634_v55, %v625_v60  ;;  %v1898_v57 = vadd.f32 %v1897_v15, %v1773_v42  ;;  %v674_v32 = vshrl.u32 %v5343_v18, 16 }
 0x11f   :  { %1944 = vmatmul.f32.gmra.mxu1 %v5048_v40  ;;  %v654_v40 = vshrl.u32 %v5315_v31, 16  ;;  %v660_v60 = vsel %vm659_vm10, 1, %v6753_v52  ;;  %v5358_v19 = vadd.s32 152, %v4593_v35  ;;  %vm6916_vm0 = vcmp.ge.s32.totalorder %v5297_v6, 1 }
 0x120   :  { %v2211_v45 = vsel %vm5321_vm1, %v2103_v38, 0.0  ;;  %2069 = vmatmul.f32.gmra.mxu2 %v1657_v33  ;;  %v2282_v51 = vld [vmem:[#allocation3 + $0x5f] sm:$0xff]  ;;  %v636_v50 = vshrl.u32 %v635_v22, 4  ;;  %vm5364_vm1 = vmand %vm6916_vm0, %vm1421_vm14  ;;  %v6917_v20 = vmov 0  ;;  %v662_v3 = vadd.s32 %v660_v60, %v658_v30  ;;  %v2395_v22 = vld [vmem:[#allocation9 + $0x80] sm:$0xff] }
 0x121   :  { %2247 = vst [vmem:[#allocation3 + $0x68] sm:$0xff] %v2211_v45  ;;  %2480 = vmatmul.f32.gmra.mxu3 %v2282_v51  ;;  %v6918_v20 = vsel %vm5364_vm1, 4294967295, %v6917_v20  ;;  %v676_v9 = vmul.u32 14564, %v673_v63  ;;  %v5369_v31 = vmul.u32 58254, %v673_v63  ;;  %vm1422_vm10 = vcmp.lt.s32.totalorder %v5332_v54, 17  ;;  %2571 = vmatpush.msrb.mxu0 %v2395_v22 }
 0x122   :  { %v637_v13 = vmul.u32 18, %v636_v50  ;;  %v5375_v37 = vmul.u32 14564, %v674_v32  ;;  %v5379_v6 = vsel %vm5352_vm6, %v1315_v34, %v609_v28  ;;  %v663_v38 = vadd.s32 %v662_v3, %v652_v48  ;;  %v3066_v48 = vld [vmem:[#allocation10 + $0x40] sm:$0xff] }
 0x123   :  { %v2022_v36 = vpop.f32.mrf.mxu2  ;;  %v1775_v1 = vpop.f32.mrf.mxu0  ;;  %v679_v42 = vmul.u32 58254, %v674_v32  ;;  %v680_v55 = vshll.u32 %v5369_v31, 16  ;;  %v702_v45 = vand.u32 65535, %v5358_v19  ;;  %v703_v51 = vshrl.u32 %v5358_v19, 16  ;;  %3117 = vmatpush.msrb.mxu2 %v3066_v48 }
 0x124   :  { %v2023_v4 = vadd.f32 %v2022_v36, %v1898_v57  ;;  %v1776_v7 = vadd.f32 %v5174_v58, %v1775_v1  ;;  %v1900_v29 = vpop.f32.mrf.mxu1  ;;  %v5373_v33 = vsub.s32 %v5242_v27, %v637_v13  ;;  %v664_v28 = vadd.s32 %v663_v38, %v654_v40  ;;  %v1587_v1 = vld [vmem:[#allocation2 + $0xff] sm:$0xff] }
 0x125   :  { %v681_v59 = vshrl.u32 %v5369_v31, 16  ;;  %v682_v44 = vshll.u32 %v5375_v37, 16  ;;  %vm684_vm14 = vc.u32 %v676_v9, %v680_v55  ;;  %v686_v50 = vadd.s32 %v680_v55, %v676_v9 }
 0x126   :  { %v2104_v15 = vmax.f32 %v2023_v4, 0.0  ;;  %1822 = vmatmul.f32.gmra.mxu0 %v1586_v12  ;;  %v1901_v53 = vadd.f32 %v1900_v29, %v1776_v7  ;;  %vm1208_vm9 = vcmp.ne.s32.totalorder %v5373_v33, 0  ;;  %vm1244_vm4 = vcmp.lt.s32.totalorder %v5373_v33, 0  ;;  %v1659_v29 = vld [vmem:[#allocation2 + $0x101] sm:$0xff] }
 0x127   :  { %1947 = vmatmul.f32.gmra.mxu1 %v5086_v23  ;;  %v3082_v23 = vld [vmem:[#allocation10 + $0xc0] sm:$0xff]  ;;  %v685_v57 = vsel %vm684_vm14, 1, %v6753_v52  ;;  %v1316_v40 = vadd.s32 18, %v5373_v33  ;;  %v665_v36 = vshrl.u32 %v664_v28, 4  ;;  %v705_v63 = vmul.u32 14564, %v702_v45 }
 0x128   :  { %v2212_v25 = vsel %vm5364_vm1, %v2104_v15, 0.0  ;;  %2072 = vmatmul.f32.gmra.mxu2 %v1658_v61  ;;  %v2283_v27 = vld [vmem:[#allocation3 + $0x67] sm:$0xff]  ;;  %3242 = vmatpush.msrb.mxu3 %v3082_v23  ;;  %v687_v34 = vadd.s32 %v685_v57, %v679_v42  ;;  %vm688_vm0 = vc.u32 %v686_v50, %v682_v44  ;;  %v5393_v12 = vmul.u32 58254, %v702_v45  ;;  %vm5412_vm1 = vmand %vm1244_vm4, %vm1208_vm9  ;;  %v2411_v28 = vld [vmem:[#allocation9 + $0x100] sm:$0xff] }
 0x129   :  { %2248 = vst [vmem:[#allocation3 + $0x70] sm:$0xff] %v2212_v25  ;;  %2483 = vmatmul.f32.gmra.mxu3 %v2283_v27  ;;  %v5395_v16 = vmul.u32 14564, %v703_v51  ;;  %vm6919_vm6 = vcmp.ge.s32.totalorder %v5332_v54, 1  ;;  %v6920_v13 = vmov 0  ;;  %v666_v61 = vmul.u32 18, %v665_v36  ;;  %2696 = vmatpush.msrb.mxu1 %v2411_v28 }
 0x12a   :  { %vm5401_vm14 = vmand %vm6919_vm6, %vm1422_vm10  ;;  %v683_v3 = vshrl.u32 %v5375_v37, 16  ;;  %v689_v9 = vsel %vm688_vm0, 1, %v6753_v52  ;;  %v708_v38 = vmul.u32 58254, %v703_v51  ;;  %v709_v42 = vshll.u32 %v5393_v12, 16 }
 0x12b   :  { %v2025_v30 = vpop.f32.mrf.mxu2  ;;  %v1778_v4 = vpop.f32.mrf.mxu0  ;;  %v6921_v13 = vsel %vm5401_vm14, 4294967295, %v6920_v13  ;;  %v691_v15 = vadd.s32 %v689_v9, %v687_v34  ;;  %v667_v37 = vsub.s32 %v5255_v14, %v666_v61  ;;  %v711_v55 = vshll.u32 %v5395_v16, 16 }
 0x12c   :  { %v2026_v32 = vadd.f32 %v2025_v30, %v1901_v53  ;;  %v1779_v60 = vadd.f32 %v5174_v58, %v1778_v4  ;;  %v1903_v7 = vpop.f32.mrf.mxu1  ;;  %vm713_vm9 = vc.u32 %v705_v63, %v709_v42  ;;  %v715_v45 = vadd.s32 %v709_v42, %v705_v63  ;;  %v1588_v30 = vld [vmem:[#allocation2 + $0x107] sm:$0xff] }
 0x12d   :  { %v692_v27 = vadd.s32 %v691_v15, %v681_v59  ;;  %vm1423_vm4 = vcmp.lt.s32.totalorder %v5379_v6, 17  ;;  %v5427_v14 = vsel %vm5412_vm1, %v1316_v40, %v5373_v33  ;;  %v714_v22 = vsel %vm713_vm9, 1, %v6753_v52  ;;  %v1660_v4 = vld [vmem:[#allocation2 + $0x109] sm:$0xff] }
 0x12e   :  { %v2105_v31 = vmax.f32 %v2026_v32, 0.0  ;;  %1825 = vmatmul.f32.gmra.mxu0 %v1587_v1  ;;  %v1904_v51 = vadd.f32 %v1903_v7, %v1779_v60  ;;  %vm717_vm0 = vc.u32 %v715_v45, %v711_v55  ;;  %v5431_v59 = vadd.s32 160, %v4593_v35  ;;  %v3065_v45 = vld [vmem:[#allocation10 + $0x38] sm:$0xff] }
 0x12f   :  { %1950 = vmatmul.f32.gmra.mxu1 %v5138_v11  ;;  %v693_v48 = vadd.s32 %v692_v27, %v683_v3  ;;  %v716_v11 = vadd.s32 %v714_v22, %v708_v38  ;;  %vm1209_vm6 = vcmp.ne.s32.totalorder %v667_v37, 0  ;;  %vm1245_vm10 = vcmp.lt.s32.totalorder %v667_v37, 0  ;;  %v3105_v27 = vld [vmem:[#allocation10 + $0x178] sm:$0xff]  ;;  %3118 = vmatpush.msrb.mxu2 %v3065_v45 }
 0x130   :  { %v2213_v25 = vsel %vm5401_vm14, %v2105_v31, 0.0  ;;  %2075 = vmatmul.f32.gmra.mxu2 %v1659_v29  ;;  %v2284_v53 = vld [vmem:[#allocation3 + $0x6f] sm:$0xff]  ;;  %v710_v23 = vshrl.u32 %v5393_v12, 16  ;;  %v718_v57 = vsel %vm717_vm0, 1, %v6753_v52  ;;  %v712_v36 = vshrl.u32 %v5395_v16, 16  ;;  %vm5453_vm14 = vmand %vm1245_vm10, %vm1209_vm6  ;;  %3360 = vmatpush.msra.mxu0 %v3105_v27 }
 0x131   :  { %2249 = vst [vmem:[#allocation3 + $0x78] sm:$0xff] %v2213_v25  ;;  %2486 = vmatmul.f32.gmra.mxu3 %v2284_v53  ;;  %v694_v40 = vshrl.u32 %v693_v48, 4  ;;  %v5437_v34 = vadd.s32 168, %v4593_v35  ;;  %vm6924_vm1 = vcmp.ge.s32.totalorder %v5379_v6, 1  ;;  %v6925_v63 = vmov 0 }
 0x132   :  { %vm5443_vm9 = vmand %vm6924_vm1, %vm1423_vm4  ;;  %v1317_v1 = vadd.s32 18, %v667_v37  ;;  %v720_v12 = vadd.s32 %v718_v57, %v716_v11  ;;  %v731_v60 = vand.u32 65535, %v5431_v59  ;;  %v732_v7 = vshrl.u32 %v5431_v59, 16  ;;  %v1589_v57 = vld [vmem:[#allocation2 + $0x10f] sm:$0xff] }
 0x133   :  { %v2028_v44 = vpop.f32.mrf.mxu2  ;;  %v1781_v33 = vpop.f32.mrf.mxu0  ;;  %v6926_v63 = vsel %vm5443_vm9, 4294967295, %v6925_v63  ;;  %vm1388_vm0 = vcmp.ge.s32.totalorder %v5427_v14, 1  ;;  %v695_v61 = vmul.u32 18, %v694_v40  ;;  %vm1424_vm4 = vcmp.lt.s32.totalorder %v5427_v14, 17 }
 0x134   :  { %v2029_v50 = vadd.f32 %v2028_v44, %v1904_v51  ;;  %v1906_v32 = vpop.f32.mrf.mxu1  ;;  %v1782_v29 = vadd.f32 %v5174_v58, %v1781_v33  ;;  %v721_v3 = vadd.s32 %v720_v12, %v710_v23  ;;  %v734_v9 = vmul.u32 14564, %v731_v60 }
 0x135   :  { %v5458_v31 = vmul.u32 58254, %v731_v60  ;;  %v696_v38 = vsub.s32 %v5343_v18, %v695_v61  ;;  %v5464_v42 = vmul.u32 14564, %v732_v7  ;;  %v760_v55 = vand.u32 65535, %v5437_v34 }
 0x136   :  { %v2106_v16 = vmax.f32 %v2029_v50, 0.0  ;;  %1828 = vmatmul.f32.gmra.mxu0 %v1588_v30  ;;  %v5469_v25 = vsel %vm5453_vm14, %v1317_v1, %v667_v37  ;;  %v722_v53 = vadd.s32 %v721_v3, %v712_v36  ;;  %v1907_v28 = vadd.f32 %v1906_v32, %v1782_v29  ;;  %vm5482_vm14 = vmand %vm1388_vm0, %vm1424_vm4 }
 0x137   :  { %1953 = vmatmul.f32.gmra.mxu1 %v5191_v62  ;;  %v738_v51 = vshll.u32 %v5458_v31, 16  ;;  %v761_v62 = vshrl.u32 %v5437_v34, 16  ;;  %vm1210_vm10 = vcmp.ne.s32.totalorder %v696_v38, 0  ;;  %v737_v18 = vmul.u32 58254, %v732_v7 }
 0x138   :  { %v2214_v54 = vsel %vm5443_vm9, %v2106_v16, 0.0  ;;  %2078 = vmatmul.f32.gmra.mxu2 %v1660_v4  ;;  %v2285_v15 = vld [vmem:[#allocation3 + $0x77] sm:$0xff]  ;;  %v740_v22 = vshll.u32 %v5464_v42, 16  ;;  %vm1246_vm6 = vcmp.lt.s32.totalorder %v696_v38, 0  ;;  %v723_v11 = vshrl.u32 %v722_v53, 4  ;;  %v1661_v4 = vld [vmem:[#allocation2 + $0x111] sm:$0xff] }
 0x139   :  { %2250 = vst [vmem:[#allocation3 + $0x80] sm:$0xff] %v2214_v54  ;;  %2489 = vmatmul.f32.gmra.mxu3 %v2285_v15  ;;  %vm742_vm1 = vc.u32 %v734_v9, %v738_v51  ;;  %v744_v37 = vadd.s32 %v738_v51, %v734_v9  ;;  %v739_v50 = vshrl.u32 %v5458_v31, 16  ;;  %v5476_v30 = vmul.u32 58254, %v760_v55  ;;  %v3081_v53 = vld [vmem:[#allocation10 + $0xb8] sm:$0xff] }
 0x13a   :  { %v743_v33 = vsel %vm742_vm1, 1, %v6753_v52  ;;  %v6929_v40 = vmov 0  ;;  %v1318_v1 = vadd.s32 18, %v696_v38  ;;  %v724_v12 = vmul.u32 18, %v723_v11  ;;  %vm5489_vm1 = vmand %vm1246_vm6, %vm1210_vm10  ;;  %3243 = vmatpush.msrb.mxu3 %v3081_v53  ;;  %v1590_v11 = vld [vmem:[#allocation2 + $0x117] sm:$0xff] }
 0x13b   :  { %v2031_v48 = vpop.f32.mrf.mxu2  ;;  %v1784_v23 = vpop.f32.mrf.mxu0  ;;  %v6930_v40 = vsel %vm5482_vm14, 4294967295, %v6929_v40  ;;  %v763_v60 = vmul.u32 14564, %v760_v55  ;;  %v745_v29 = vadd.s32 %v743_v33, %v737_v18  ;;  %vm746_vm9 = vc.u32 %v744_v37, %v740_v22  ;;  %v1662_v33 = vld [vmem:[#allocation2 + $0x119] sm:$0xff] }
 0x13c   :  { %v2032_v44 = vadd.f32 %v2031_v48, %v1907_v28  ;;  %v1785_v36 = vadd.f32 %v5174_v58, %v1784_v23  ;;  %v1909_v32 = vpop.f32.mrf.mxu1  ;;  %v5493_v14 = vmul.u32 14564, %v761_v62  ;;  %vm1389_vm0 = vcmp.ge.s32.totalorder %v5469_v25, 1 }
 0x13d   :  { %vm1425_vm4 = vcmp.lt.s32.totalorder %v5469_v25, 17  ;;  %v725_v6 = vsub.s32 %v5358_v19, %v724_v12  ;;  %v747_v61 = vsel %vm746_vm9, 1, %v6753_v52  ;;  %v741_v31 = vshrl.u32 %v5464_v42, 16 }
 0x13e   :  { %v2107_v7 = vmax.f32 %v2032_v44, 0.0  ;;  %1831 = vmatmul.f32.gmra.mxu0 %v1589_v57  ;;  %v749_v54 = vadd.s32 %v747_v61, %v745_v29  ;;  %v767_v15 = vshll.u32 %v5476_v30, 16  ;;  %v1910_v55 = vadd.f32 %v1909_v32, %v1785_v36 }
 0x13f   :  { %1956 = vmatmul.f32.gmra.mxu1 %v5239_v17  ;;  %v5506_v19 = vsel %vm5489_vm1, %v1318_v1, %v696_v38  ;;  %v766_v27 = vmul.u32 58254, %v761_v62  ;;  %v769_v45 = vshll.u32 %v5493_v14, 16  ;;  %v768_v17 = vshrl.u32 %v5476_v30, 16  ;;  %vm5519_vm1 = vmand %vm1389_vm0, %vm1425_vm4 }
 0x140   :  { %v2215_v3 = vsel %vm5482_vm14, %v2107_v7, 0.0  ;;  %2081 = vmatmul.f32.gmra.mxu2 %v1661_v4  ;;  %v2286_v9 = vld [vmem:[#allocation3 + $0x7f] sm:$0xff]  ;;  %v750_v51 = vadd.s32 %v749_v54, %v739_v50  ;;  %vm771_vm9 = vc.u32 %v763_v60, %v767_v15  ;;  %v773_v42 = vadd.s32 %v767_v15, %v763_v60 }
 0x141   :  { %2251 = vst [vmem:[#allocation3 + $0x88] sm:$0xff] %v2215_v3  ;;  %2492 = vmatmul.f32.gmra.mxu3 %v2286_v9  ;;  %vm1211_vm10 = vcmp.ne.s32.totalorder %v725_v6, 0  ;;  %vm1247_vm6 = vcmp.lt.s32.totalorder %v725_v6, 0  ;;  %v772_v18 = vsel %vm771_vm9, 1, %v6753_v52  ;;  %v5512_v22 = vadd.s32 176, %v4593_v35  ;;  %v3104_v15 = vld [vmem:[#allocation10 + $0x170] sm:$0xff] }
 0x142   :  { %v1319_v62 = vadd.s32 18, %v725_v6  ;;  %v751_v37 = vadd.s32 %v750_v51, %v741_v31  ;;  %v770_v44 = vshrl.u32 %v5493_v14, 16  ;;  %v6933_v23 = vmov 0  ;;  %vm5527_vm14 = vmand %vm1247_vm6, %vm1211_vm10  ;;  %3361 = vmatpush.msra.mxu0 %v3104_v15  ;;  %v3064_v15 = vld [vmem:[#allocation10 + $0x30] sm:$0xff] }
 0x143   :  { %v2034_v28 = vpop.f32.mrf.mxu2  ;;  %v1787_v48 = vpop.f32.mrf.mxu0  ;;  %v6934_v23 = vsel %vm5519_vm1, 4294967295, %v6933_v23  ;;  %v774_v30 = vadd.s32 %v772_v18, %v766_v27  ;;  %vm775_vm9 = vc.u32 %v773_v42, %v769_v45  ;;  %v789_v36 = vand.u32 65535, %v5512_v22  ;;  %3119 = vmatpush.msrb.mxu2 %v3064_v15 }
 0x144   :  { %v2035_v38 = vadd.f32 %v2034_v28, %v1910_v55  ;;  %6935 = vst [vmem:[#allocation18_spill] sm:$0xff] %v6934_v23  ;;  %v1788_v57 = vadd.f32 %v5174_v58, %v1787_v48  ;;  %v1912_v50 = vpop.f32.mrf.mxu1  ;;  %v752_v25 = vshrl.u32 %v751_v37, 4  ;;  %v776_v1 = vsel %vm775_vm9, 1, %v6753_v52 }
 0x145   :  { %v790_v12 = vshrl.u32 %v5512_v22, 16  ;;  %v778_v60 = vadd.s32 %v776_v1, %v774_v30  ;;  %v792_v7 = vmul.u32 14564, %v789_v36  ;;  %v5533_v16 = vmul.u32 58254, %v789_v36 }
 0x146   :  { %v2108_v32 = vmax.f32 %v2035_v38, 0.0  ;;  %1834 = vmatmul.f32.gmra.mxu0 %v1590_v11  ;;  %v5536_v29 = vadd.s32 184, %v4593_v35  ;;  %vm1390_vm0 = vcmp.ge.s32.totalorder %v5506_v19, 1  ;;  %v753_v3 = vmul.u32 18, %v752_v25  ;;  %v1591_v11 = vld [vmem:[#allocation2 + $0x11f] sm:$0xff] }
 0x147   :  { %1959 = vmatmul.f32.gmra.mxu1 %v5288_v2  ;;  %v5542_v9 = vmul.u32 14564, %v790_v12  ;;  %vm1426_vm4 = vcmp.lt.s32.totalorder %v5506_v19, 17  ;;  %v5547_v31 = vsel %vm5527_vm14, %v1319_v62, %v725_v6  ;;  %v779_v54 = vadd.s32 %v778_v60, %v768_v17 }
 0x148   :  { %v2216_v14 = vsel %vm5519_vm1, %v2108_v32, 0.0  ;;  %2084 = vmatmul.f32.gmra.mxu2 %v1662_v33  ;;  %v2287_v61 = vld [vmem:[#allocation3 + $0x87] sm:$0xff]  ;;  %v796_v55 = vshll.u32 %v5533_v16, 16  ;;  %v1913_v2 = vadd.f32 %v1912_v50, %v1788_v57  ;;  %v754_v53 = vsub.s32 %v5431_v59, %v753_v3  ;;  %vm5564_vm9 = vmand %vm1390_vm0, %vm1426_vm4 }
 0x149   :  { %2252 = vst [vmem:[#allocation3 + $0x90] sm:$0xff] %v2216_v14  ;;  %2495 = vmatmul.f32.gmra.mxu3 %v2287_v61  ;;  %v795_v27 = vmul.u32 58254, %v790_v12  ;;  %v798_v45 = vshll.u32 %v5542_v9, 16  ;;  %v780_v42 = vadd.s32 %v779_v54, %v770_v44  ;;  %v818_v6 = vand.u32 65535, %v5536_v29  ;;  %v1663_v44 = vld [vmem:[#allocation2 + $0x121] sm:$0xff] }
 0x14a   :  { %vm5552_vm10 = vc.u32 %v792_v7, %v796_v55  ;;  %v802_v18 = vadd.s32 %v796_v55, %v792_v7  ;;  %vm1212_vm14 = vcmp.ne.s32.totalorder %v754_v53, 0  ;;  %v819_v59 = vshrl.u32 %v5536_v29, 16  ;;  %v3080_v55 = vld [vmem:[#allocation10 + $0xb0] sm:$0xff] }
 0x14b   :  { %v2037_v51 = vpop.f32.mrf.mxu2  ;;  %v1790_v48 = vpop.f32.mrf.mxu0  ;;  %v6940_v62 = vmov 0  ;;  %vm1391_vm1 = vcmp.ge.s32.totalorder %v5547_v31, 1  ;;  %v1320_v57 = vadd.s32 18, %v754_v53  ;;  %v781_v50 = vshrl.u32 %v780_v42, 4  ;;  %3244 = vmatpush.msrb.mxu3 %v3080_v55 }
 0x14c   :  { %v2038_v17 = vadd.f32 %v2037_v51, %v1913_v2  ;;  %v5557_v38 = vpop.f32.mrf.mxu3  ;;  %v6941_v62 = vsel %vm5564_vm9, 4294967295, %v6940_v62  ;;  %v1915_v37 = vpop.f32.mrf.mxu1  ;;  %v801_v33 = vsel %vm5552_vm10, 1, %v6753_v52  ;;  %v1791_v36 = vadd.f32 %v5174_v58, %v1790_v48 }
 0x14d   :  { %6942 = vst [vmem:[#allocation19_spill] sm:$0xff] %v6941_v62  ;;  %v803_v32 = vadd.s32 %v801_v33, %v795_v27  ;;  %vm804_vm6 = vc.u32 %v802_v18, %v798_v45  ;;  %vm1427_vm0 = vcmp.lt.s32.totalorder %v5547_v31, 17  ;;  %vm6943_vm4 = vcmp.lt.s32.totalorder %v754_v53, 0 }
 0x14e   :  { %v2109_v30 = vmax.f32 %v2038_v17, 0.0  ;;  %1837 = vmatmul.f32.gmra.mxu0 %v1591_v11  ;;  %vm5576_vm12 = vmand %vm6943_vm4, %vm1212_vm14  ;;  %v782_v4 = vmul.u32 18, %v781_v50  ;;  %v797_v25 = vshrl.u32 %v5533_v16, 16  ;;  %v821_v1 = vmul.u32 14564, %v818_v6  ;;  %v2307_v50 = vld [vmem:[#allocation3 + $0x8] sm:$0xff] }
 0x14f   :  { %1962 = vmatmul.f32.gmra.mxu1 %v5336_v5  ;;  %v805_v7 = vsel %vm804_vm6, 1, %v6753_v52  ;;  %v5585_v14 = vmul.u32 58254, %v818_v6  ;;  %v5587_v61 = vmul.u32 14564, %v819_v59  ;;  %v799_v16 = vshrl.u32 %v5542_v9, 16  ;;  %vm5602_vm6 = vmand %vm1391_vm1, %vm1427_vm0 }
 0x150   :  { %v2217_v12 = vsel %vm5564_vm9, %v2109_v30, 0.0  ;;  %2087 = vmatmul.f32.gmra.mxu2 %v1663_v44  ;;  %v2288_v60 = vld [vmem:[#allocation3 + $0x8f] sm:$0xff]  ;;  %v783_v3 = vsub.s32 %v5437_v34, %v782_v4  ;;  %v807_v54 = vadd.s32 %v805_v7, %v803_v32  ;;  %v5592_v2 = vadd.s32 192, %v4593_v35 }
 0x151   :  { %2253 = vst [vmem:[#allocation3 + $0x98] sm:$0xff] %v2217_v12  ;;  %2498 = vmatmul.f32.gmra.mxu3 %v2288_v60  ;;  %v1916_v5 = vadd.f32 %v1915_v37, %v1791_v36  ;;  %v1356_v27 = vsel %vm5576_vm12, %v1320_v57, %v754_v53  ;;  %v824_v45 = vmul.u32 58254, %v819_v59  ;;  %v825_v51 = vshll.u32 %v5585_v14, 16  ;;  %v2343_v30 = vld [vmem:[#allocation3 + $0x9] sm:$0xff] }
 0x152   :  { %vm1213_vm10 = vcmp.ne.s32.totalorder %v783_v3, 0  ;;  %vm1249_vm14 = vcmp.lt.s32.totalorder %v783_v3, 0  ;;  %v808_v34 = vadd.s32 %v807_v54, %v797_v25  ;;  %v827_v9 = vshll.u32 %v5587_v61, 16  ;;  %v5649_v59 = vld [vmem:[%s6717_s2] ss:$0 sm:$0xff] }
 0x153   :  { %v2040_v42 = vpop.f32.mrf.mxu2  ;;  %v6946_v28 = vmov 0  ;;  %v1793_v6 = vpop.f32.mrf.mxu0  ;;  %v1321_v17 = vadd.s32 18, %v783_v3  ;;  %vm829_vm12 = vc.u32 %v821_v1, %v825_v51  ;;  %v831_v48 = vadd.s32 %v825_v51, %v821_v1  ;;  %vm5608_vm9 = vmand %vm1249_vm14, %vm1213_vm10 }
 0x154   :  { %v6947_v28 = vsel %vm5602_vm6, 4294967295, %v6946_v28  ;;  %v2041_v53 = vadd.f32 %v2040_v42, %v1916_v5  ;;  %v5606_v18 = vpop.f32.mrf.mxu3  ;;  %v1918_v11 = vpop.f32.mrf.mxu1  ;;  %vm1392_vm4 = vcmp.ge.s32.totalorder %v1356_v27, 1  ;;  %v809_v37 = vadd.s32 %v808_v34, %v799_v16 }
 0x155   :  { %6948 = vst [vmem:[#allocation20_spill] sm:$0xff] %v6947_v28  ;;  %v847_v31 = vand.u32 65535, %v5592_v2  ;;  %v1794_v57 = vadd.f32 %v5174_v58, %v1793_v6  ;;  %vm1428_vm1 = vcmp.lt.s32.totalorder %v1356_v27, 17  ;;  %v830_v33 = vsel %vm829_vm12, 1, %v6753_v52  ;;  %v2308_v27 = vld [vmem:[#allocation3 + $0x10] sm:$0xff]  ;;  %v3099_v28 = vld [vmem:[#allocation10 + $0x148] sm:$0xff] }
 0x156   :  { %v2110_v44 = vmax.f32 %v2041_v53, 0.0  ;;  %2572 = vmatmul.f32.vlgmr.msrb.gmra.mxu0 %v2307_v50  ;;  %v810_v36 = vshrl.u32 %v809_v37, 4  ;;  %v826_v32 = vshrl.u32 %v5585_v14, 16  ;;  %v832_v19 = vadd.s32 %v830_v33, %v824_v45  ;;  %vm5640_vm14 = vmand %vm1392_vm4, %vm1428_vm1 }
 0x157   :  { %vm833_vm0 = vc.u32 %v831_v48, %v827_v9  ;;  %2697 = vmatmul.f32.vlgmr.msrb.gmra.mxu1 %v2343_v30  ;;  %v5620_v1 = vsel %vm5608_vm9, %v1321_v17, %v783_v3  ;;  %v848_v12 = vshrl.u32 %v5592_v2, 16  ;;  %v5624_v14 = vmul.u32 58254, %v847_v31 }
 0x158   :  { %v2218_v4 = vsel %vm5602_vm6, %v2110_v44, 0.0  ;;  %v2289_v25 = vld [vmem:[#allocation3 + $0x97] sm:$0xff]  ;;  %v834_v58 = vsel %vm833_vm0, 1, %v6753_v52  ;;  %v811_v60 = vmul.u32 18, %v810_v36  ;;  %v5627_v16 = vadd.s32 200, %v4593_v35 }
 0x159   :  { %2254 = vst [vmem:[#allocation3 + $0xa0] sm:$0xff] %v2218_v4  ;;  %2501 = vmatmul.f32.gmra.mxu3 %v2289_v25  ;;  %v836_v7 = vadd.s32 %v834_v58, %v832_v19  ;;  %v1919_v54 = vadd.f32 %v1918_v11, %v1794_v57  ;;  %v828_v15 = vshrl.u32 %v5587_v61, 16  ;;  %v850_v55 = vmul.u32 14564, %v847_v31  ;;  %v2344_v44 = vld [vmem:[#allocation3 + $0x11] sm:$0xff] }
 0x15a   :  { %v5630_v5 = vmul.u32 14564, %v848_v12  ;;  %v812_v45 = vsub.s32 %v5512_v22, %v811_v60  ;;  %v854_v42 = vshll.u32 %v5624_v14, 16  ;;  %vm1393_vm9 = vcmp.ge.s32.totalorder %v5620_v1, 1 }
 0x15b   :  { %v2043_v3 = vpop.f32.mrf.mxu2  ;;  %v837_v51 = vadd.s32 %v836_v7, %v826_v32  ;;  %v1796_v53 = vpop.f32.mrf.mxu0  ;;  %vm1429_vm10 = vcmp.lt.s32.totalorder %v5620_v1, 17  ;;  %v853_v6 = vmul.u32 58254, %v848_v12  ;;  %v6951_v61 = vmov 0  ;;  %v3103_v7 = vld [vmem:[#allocation10 + $0x168] sm:$0xff] }
 0x15c   :  { %v2044_v34 = vadd.f32 %v2043_v3, %v1919_v54  ;;  %v5634_v9 = vpop.f32.mrf.mxu3  ;;  %v6952_v61 = vsel %vm5640_vm14, 4294967295, %v6951_v61  ;;  %v1921_v17 = vpop.f32.mrf.mxu1  ;;  %vm1214_vm12 = vcmp.ne.s32.totalorder %v812_v45, 0  ;;  %vm1250_vm0 = vcmp.lt.s32.totalorder %v812_v45, 0  ;;  %v3063_v54 = vld [vmem:[#allocation10 + $0x28] sm:$0xff]  ;;  %3362 = vmatpush.msra.mxu0 %v3103_v7 }
 0x15d   :  { %6953 = vst [vmem:[#allocation21_spill] sm:$0xff] %v6952_v61  ;;  %v856_v22 = vshll.u32 %v5630_v5, 16  ;;  %v876_v48 = vand.u32 65535, %v5627_v16  ;;  %v1797_v37 = vadd.f32 %v5649_v59, %v1796_v53  ;;  %v838_v31 = vadd.s32 %v837_v51, %v828_v15  ;;  %vm5658_vm1 = vmand %vm1250_vm0, %vm1214_vm12  ;;  %v3079_v15 = vld [vmem:[#allocation10 + $0xa8] sm:$0xff]  ;;  %3120 = vmatpush.msrb.mxu2 %v3063_v54 }
 0x15e   :  { %v2111_v11 = vmax.f32 %v2044_v34, 0.0  ;;  %vm858_vm4 = vc.u32 %v850_v55, %v854_v42  ;;  %2575 = vmatmul.f32.gmra.mxu0 %v2308_v27  ;;  %v1322_v57 = vadd.s32 18, %v812_v45  ;;  %v860_v33 = vadd.s32 %v854_v42, %v850_v55  ;;  %3245 = vmatpush.msrb.mxu3 %v3079_v15  ;;  %vm5682_vm12 = vmand %vm1393_vm9, %vm1429_vm10 }
 0x15f   :  { %v859_v50 = vsel %vm858_vm4, 1, %v6753_v52  ;;  %v877_v30 = vshrl.u32 %v5627_v16, 16  ;;  %2700 = vmatmul.f32.gmra.mxu1 %v2344_v44  ;;  %v839_v4 = vshrl.u32 %v838_v31, 4  ;;  %v5663_v58 = vadd.s32 208, %v4593_v35 }
 0x160   :  { %v2219_v36 = vsel %vm5640_vm14, %v2111_v11, 0.0  ;;  %v2290_v32 = vld [vmem:[#allocation3 + $0x9f] sm:$0xff]  ;;  %v861_v25 = vadd.s32 %v859_v50, %v853_v6  ;;  %v855_v12 = vshrl.u32 %v5624_v14, 16  ;;  %v857_v60 = vshrl.u32 %v5630_v5, 16 }
 0x161   :  { %2255 = vst [vmem:[#allocation3 + $0xa8] sm:$0xff] %v2219_v36  ;;  %2504 = vmatmul.f32.gmra.mxu3 %v2290_v32  ;;  %vm862_vm4 = vc.u32 %v860_v33, %v856_v22  ;;  %v1922_v55 = vadd.f32 %v1921_v17, %v1797_v37  ;;  %v840_v3 = vmul.u32 18, %v839_v4  ;;  %v5668_v42 = vmul.u32 58254, %v876_v48  ;;  %v2345_v32 = vld [vmem:[#allocation3 + $0x19] sm:$0xff] }
 0x162   :  { %v863_v51 = vsel %vm862_vm4, 1, %v6753_v52  ;;  %v1358_v53 = vsel %vm5658_vm1, %v1322_v57, %v812_v45  ;;  %v879_v14 = vmul.u32 14564, %v876_v48  ;;  %v5672_v5 = vmul.u32 14564, %v877_v30 }
 0x163   :  { %v2046_v34 = vpop.f32.mrf.mxu2  ;;  %v865_v6 = vadd.s32 %v863_v51, %v861_v25  ;;  %v1799_v17 = vpop.f32.mrf.mxu0  ;;  %v841_v37 = vsub.s32 %v5536_v29, %v840_v3  ;;  %v882_v27 = vmul.u32 58254, %v877_v30  ;;  %v883_v31 = vshll.u32 %v5668_v42, 16  ;;  %v2309_v30 = vld [vmem:[#allocation3 + $0x18] sm:$0xff] }
 0x164   :  { %v2047_v22 = vadd.f32 %v2046_v34, %v1922_v55  ;;  %v5674_v11 = vpop.f32.mrf.mxu3  ;;  %v6956_v45 = vmov 0  ;;  %v1800_v48 = vadd.f32 %v5649_v59, %v1799_v17  ;;  %v1924_v44 = vpop.f32.mrf.mxu1  ;;  %v885_v50 = vshll.u32 %v5672_v5, 16 }
 0x165   :  { %v6957_v45 = vsel %vm5682_vm12, 4294967295, %v6956_v45  ;;  %v866_v57 = vadd.s32 %v865_v6, %v855_v12  ;;  %v905_v33 = vand.u32 65535, %v5663_v58  ;;  %vm1215_vm0 = vcmp.ne.s32.totalorder %v841_v37, 0 }
 0x166   :  { %6958 = vst [vmem:[#allocation22_spill] sm:$0xff] %v6957_v45  ;;  %v2112_v29 = vmax.f32 %v2047_v22, 0.0  ;;  %vm1251_vm1 = vcmp.lt.s32.totalorder %v841_v37, 0  ;;  %v1323_v36 = vadd.s32 18, %v841_v37  ;;  %2578 = vmatmul.f32.gmra.mxu0 %v2309_v30  ;;  %vm1394_vm4 = vcmp.ge.s32.totalorder %v1358_v53, 1 }
 0x167   :  { %vm1287_vm9 = vmand %vm1251_vm1, %vm1215_vm0  ;;  %v867_v1 = vadd.s32 %v866_v57, %v857_v60  ;;  %vm887_vm10 = vc.u32 %v879_v14, %v883_v31  ;;  %2703 = vmatmul.f32.gmra.mxu1 %v2345_v32  ;;  %v889_v7 = vadd.s32 %v883_v31, %v879_v14  ;;  %vm1430_vm14 = vcmp.lt.s32.totalorder %v1358_v53, 17 }
 0x168   :  { %v2220_v19 = vsel %vm5682_vm12, %v2112_v29, 0.0  ;;  %v2291_v4 = vld [vmem:[#allocation3 + $0xa7] sm:$0xff]  ;;  %v5691_v25 = vsel %vm1287_vm9, %v1323_v36, %v841_v37  ;;  %v888_v12 = vsel %vm887_vm10, 1, %v6753_v52  ;;  %v884_v15 = vshrl.u32 %v5668_v42, 16  ;;  %vm5707_vm9 = vmand %vm1394_vm4, %vm1430_vm14 }
 0x169   :  { %2256 = vst [vmem:[#allocation3 + $0xb0] sm:$0xff] %v2220_v19  ;;  %2507 = vmatmul.f32.gmra.mxu3 %v2291_v4  ;;  %v868_v54 = vshrl.u32 %v867_v1, 4  ;;  %v890_v55 = vadd.s32 %v888_v12, %v882_v27  ;;  %v1925_v3 = vadd.f32 %v1924_v44, %v1800_v48  ;;  %vm891_vm0 = vc.u32 %v889_v7, %v885_v50  ;;  %v2310_v36 = vld [vmem:[#allocation3 + $0x20] sm:$0xff] }
 0x16a   :  { %v906_v60 = vshrl.u32 %v5663_v58, 16  ;;  %v5696_v51 = vmul.u32 58254, %v905_v33  ;;  %v886_v22 = vshrl.u32 %v5672_v5, 16  ;;  %v892_v14 = vsel %vm891_vm0, 1, %v6753_v52  ;;  %v2346_v1 = vld [vmem:[#allocation3 + $0x21] sm:$0xff] }
 0x16b   :  { %v2049_v34 = vpop.f32.mrf.mxu2  ;;  %v869_v6 = vmul.u32 18, %v868_v54  ;;  %v1802_v31 = vpop.f32.mrf.mxu0  ;;  %v894_v42 = vadd.s32 %v892_v14, %v890_v55  ;;  %v908_v27 = vmul.u32 14564, %v905_v33  ;;  %v6959_v44 = vmov 0 }
 0x16c   :  { %v2050_v17 = vadd.f32 %v2049_v34, %v1925_v3  ;;  %v5701_v37 = vpop.f32.mrf.mxu3  ;;  %v5703_v48 = vmul.u32 14564, %v906_v60  ;;  %v6960_v44 = vsel %vm5707_vm9, 4294967295, %v6959_v44  ;;  %v1927_v57 = vpop.f32.mrf.mxu1  ;;  %vm1431_vm10 = vcmp.lt.s32.totalorder %v5691_v25, 17  ;;  %v3102_v3 = vld [vmem:[#allocation10 + $0x160] sm:$0xff] }
 0x16d   :  { %6961 = vst [vmem:[#allocation23_spill] sm:$0xff] %v6960_v44  ;;  %v870_v5 = vsub.s32 %v5592_v2, %v869_v6  ;;  %v912_v50 = vshll.u32 %v5696_v51, 16  ;;  %v5715_v29 = vadd.s32 216, %v4593_v35  ;;  %v1803_v33 = vadd.f32 %v5649_v59, %v1802_v31  ;;  %v3078_v34 = vld [vmem:[#allocation10 + $0xa0] sm:$0xff]  ;;  %3363 = vmatpush.msra.mxu0 %v3102_v3 }
 0x16e   :  { %v2113_v30 = vmax.f32 %v2050_v17, 0.0  ;;  %v895_v32 = vadd.s32 %v894_v42, %v884_v15  ;;  %v911_v53 = vmul.u32 58254, %v906_v60  ;;  %2581 = vmatmul.f32.gmra.mxu0 %v2310_v36  ;;  %v914_v4 = vshll.u32 %v5703_v48, 16  ;;  %v3062_v60 = vld [vmem:[#allocation10 + $0x20] sm:$0xff]  ;;  %3246 = vmatpush.msrb.mxu3 %v3078_v34 }
 0x16f   :  { %vm1216_vm14 = vcmp.ne.s32.totalorder %v870_v5, 0  ;;  %vm1252_vm4 = vcmp.lt.s32.totalorder %v870_v5, 0  ;;  %v1324_v19 = vadd.s32 18, %v870_v5  ;;  %2706 = vmatmul.f32.gmra.mxu1 %v2346_v1  ;;  %vm916_vm1 = vc.u32 %v908_v27, %v912_v50  ;;  %3121 = vmatpush.msrb.mxu2 %v3062_v60 }
 0x170   :  { %v2221_v2 = vsel %vm5707_vm9, %v2113_v30, 0.0  ;;  %v2292_v12 = vld [vmem:[#allocation3 + $0xaf] sm:$0xff]  ;;  %vm1288_vm0 = vmand %vm1252_vm4, %vm1216_vm14  ;;  %v896_v7 = vadd.s32 %v895_v32, %v886_v22  ;;  %v5722_v54 = vadd.s32 224, %v4593_v35  ;;  %v917_v15 = vsel %vm916_vm1, 1, %v6753_v52 }
 0x171   :  { %2257 = vst [vmem:[#allocation3 + $0xb8] sm:$0xff] %v2221_v2  ;;  %2510 = vmatmul.f32.gmra.mxu3 %v2292_v12  ;;  %v918_v55 = vadd.s32 %v912_v50, %v908_v27  ;;  %v934_v6 = vand.u32 65535, %v5715_v29  ;;  %v1928_v14 = vadd.f32 %v1927_v57, %v1803_v33  ;;  %v1360_v17 = vsel %vm1288_vm0, %v1324_v19, %v870_v5 }
 0x172   :  { %v897_v31 = vshrl.u32 %v896_v7, 4  ;;  %v919_v42 = vadd.s32 %v917_v15, %v911_v53  ;;  %v913_v30 = vshrl.u32 %v5696_v51, 16  ;;  %v935_v36 = vshrl.u32 %v5715_v29, 16 }
 0x173   :  { %v2052_v22 = vpop.f32.mrf.mxu2  ;;  %vm920_vm14 = vc.u32 %v918_v55, %v914_v4  ;;  %v5728_v32 = vmul.u32 58254, %v934_v6  ;;  %v1805_v1 = vpop.f32.mrf.mxu0  ;;  %v915_v57 = vshrl.u32 %v5703_v48, 16  ;;  %vm6962_vm1 = vcmp.ge.s32.totalorder %v5691_v25, 1  ;;  %v2311_v48 = vld [vmem:[#allocation3 + $0x28] sm:$0xff] }
 0x174   :  { %v2053_v27 = vadd.f32 %v2052_v22, %v1928_v14  ;;  %v5730_v50 = vpop.f32.mrf.mxu3  ;;  %v898_v2 = vmul.u32 18, %v897_v31  ;;  %v921_v5 = vsel %vm920_vm14, 1, %v6753_v52  ;;  %vm5738_vm4 = vmand %vm6962_vm1, %vm1431_vm10  ;;  %v6963_v51 = vmov 0  ;;  %v1930_v33 = vpop.f32.mrf.mxu1  ;;  %v2347_v25 = vld [vmem:[#allocation3 + $0x29] sm:$0xff] }
 0x175   :  { %v6964_v51 = vsel %vm5738_vm4, 4294967295, %v6963_v51  ;;  %v923_v53 = vadd.s32 %v921_v5, %v919_v42  ;;  %v937_v19 = vmul.u32 14564, %v934_v6  ;;  %v5742_v4 = vmul.u32 14564, %v935_v36 }
 0x176   :  { %6965 = vst [vmem:[#allocation24_spill] sm:$0xff] %v6964_v51  ;;  %v2114_v12 = vmax.f32 %v2053_v27, 0.0  ;;  %v1806_v7 = vadd.f32 %v5649_v59, %v1805_v1  ;;  %v899_v15 = vsub.s32 %v5627_v16, %v898_v2  ;;  %v941_v55 = vshll.u32 %v5728_v32, 16  ;;  %2584 = vmatmul.f32.gmra.mxu0 %v2311_v48 }
 0x177   :  { %v924_v3 = vadd.s32 %v923_v53, %v913_v30  ;;  %v940_v60 = vmul.u32 58254, %v935_v36  ;;  %v943_v34 = vshll.u32 %v5742_v4, 16  ;;  %v963_v14 = vand.u32 65535, %v5722_v54  ;;  %2709 = vmatmul.f32.gmra.mxu1 %v2347_v25 }
 0x178   :  { %v2222_v6 = vsel %vm5738_vm4, %v2114_v12, 0.0  ;;  %v2293_v31 = vld [vmem:[#allocation3 + $0xb7] sm:$0xff]  ;;  %vm1217_vm10 = vcmp.ne.s32.totalorder %v899_v15, 0  ;;  %vm1253_vm14 = vcmp.lt.s32.totalorder %v899_v15, 0  ;;  %v1325_v42 = vadd.s32 18, %v899_v15 }
 0x179   :  { %2258 = vst [vmem:[#allocation3 + $0xc0] sm:$0xff] %v2222_v6  ;;  %2513 = vmatmul.f32.gmra.mxu3 %v2293_v31  ;;  %vm1432_vm1 = vcmp.lt.s32.totalorder %v1360_v17, 17  ;;  %vm1289_vm0 = vmand %vm1253_vm14, %vm1217_vm10  ;;  %v925_v16 = vadd.s32 %v924_v3, %v915_v57  ;;  %vm945_vm9 = vc.u32 %v937_v19, %v941_v55  ;;  %v947_v22 = vadd.s32 %v941_v55, %v937_v19 }
 0x17a   :  { %v1931_v30 = vadd.f32 %v1930_v33, %v1806_v7  ;;  %v942_v36 = vshrl.u32 %v5728_v32, 16  ;;  %v946_v27 = vsel %vm945_vm9, 1, %v6753_v52  ;;  %v964_v1 = vshrl.u32 %v5722_v54, 16 }
 0x17b   :  { %v2055_v2 = vpop.f32.mrf.mxu2  ;;  %v1361_v5 = vsel %vm1289_vm0, %v1325_v42, %v899_v15  ;;  %v926_v53 = vshrl.u32 %v925_v16, 4  ;;  %v948_v12 = vadd.s32 %v946_v27, %v940_v60  ;;  %v966_v48 = vmul.u32 14564, %v963_v14  ;;  %v1808_v31 = vpop.f32.mrf.mxu0  ;;  %v2348_v16 = vld [vmem:[#allocation3 + $0x31] sm:$0xff] }
 0x17c   :  { %v2056_v25 = vadd.f32 %v2055_v2, %v1931_v30  ;;  %v5754_v6 = vpop.f32.mrf.mxu3  ;;  %vm949_vm10 = vc.u32 %v947_v22, %v943_v34  ;;  %v5756_v57 = vmul.u32 58254, %v963_v14  ;;  %v5758_v19 = vmul.u32 14564, %v964_v1  ;;  %v1933_v33 = vpop.f32.mrf.mxu1  ;;  %v2312_v34 = vld [vmem:[#allocation3 + $0x30] sm:$0xff] }
 0x17d   :  { %vm6966_vm14 = vcmp.ge.s32.totalorder %v1360_v17, 1  ;;  %v6967_v32 = vmov 0  ;;  %v927_v7 = vmul.u32 18, %v926_v53  ;;  %v944_v15 = vshrl.u32 %v5742_v4, 16 }
 0x17e   :  { %vm5762_vm4 = vmand %vm6966_vm14, %vm1432_vm1  ;;  %v950_v55 = vsel %vm949_vm10, 1, %v6753_v52  ;;  %v2115_v3 = vmax.f32 %v2056_v25, 0.0  ;;  %v1809_v60 = vadd.f32 %v5649_v59, %v1808_v31  ;;  %v970_v42 = vshll.u32 %v5756_v57, 16  ;;  %2587 = vmatmul.f32.gmra.mxu0 %v2312_v34  ;;  %v3101_v25 = vld [vmem:[#allocation10 + $0x158] sm:$0xff] }
 0x17f   :  { %v6968_v32 = vsel %vm5762_vm4, 4294967295, %v6967_v32  ;;  %v952_v14 = vadd.s32 %v950_v55, %v948_v12  ;;  %vm1433_vm0 = vcmp.lt.s32.totalorder %v1361_v5, 17  ;;  %v928_v17 = vsub.s32 %v5663_v58, %v927_v7  ;;  %2712 = vmatmul.f32.gmra.mxu1 %v2348_v16  ;;  %3364 = vmatpush.msra.mxu0 %v3101_v25  ;;  %v3061_v7 = vld [vmem:[#allocation10 + $0x18] sm:$0xff] }
 0x180   :  { %6969 = vst [vmem:[#allocation25_spill] sm:$0xff] %v6968_v32  ;;  %v969_v22 = vmul.u32 58254, %v964_v1  ;;  %v2223_v30 = vsel %vm5762_vm4, %v2115_v3, 0.0  ;;  %v2294_v4 = vld [vmem:[#allocation3 + $0xbf] sm:$0xff]  ;;  %v972_v2 = vshll.u32 %v5758_v19, 16  ;;  %vm974_vm1 = vc.u32 %v966_v48, %v970_v42  ;;  %3122 = vmatpush.msrb.mxu2 %v3061_v7  ;;  %v3077_v32 = vld [vmem:[#allocation10 + $0x98] sm:$0xff] }
 0x181   :  { %v953_v27 = vadd.s32 %v952_v14, %v942_v36  ;;  %2259 = vst [vmem:[#allocation3 + $0xc8] sm:$0xff] %v2223_v30  ;;  %2516 = vmatmul.f32.gmra.mxu3 %v2294_v4  ;;  %vm1218_vm10 = vcmp.ne.s32.totalorder %v928_v17, 0  ;;  %vm1254_vm14 = vcmp.lt.s32.totalorder %v928_v17, 0  ;;  %v1326_v53 = vadd.s32 18, %v928_v17 }
 0x182   :  { %v975_v12 = vsel %vm974_vm1, 1, %v6753_v52  ;;  %v1934_v31 = vadd.f32 %v1933_v33, %v1809_v60  ;;  %vm1290_vm9 = vmand %vm1254_vm14, %vm1218_vm10  ;;  %v976_v1 = vadd.s32 %v970_v42, %v966_v48  ;;  %v5776_v55 = vadd.s32 232, %v4593_v35  ;;  %3247 = vmatpush.msrb.mxu3 %v3077_v32 }
 0x183   :  { %v954_v58 = vadd.s32 %v953_v27, %v944_v15  ;;  %v2058_v36 = vpop.f32.mrf.mxu2  ;;  %v971_v3 = vshrl.u32 %v5756_v57, 16  ;;  %v977_v34 = vadd.s32 %v975_v12, %v969_v22  ;;  %v1811_v30 = vpop.f32.mrf.mxu0  ;;  %v1362_v4 = vsel %vm1290_vm9, %v1326_v53, %v928_v17  ;;  %v2313_v17 = vld [vmem:[#allocation3 + $0x38] sm:$0xff] }
 0x184   :  { %v2059_v14 = vadd.f32 %v2058_v36, %v1934_v31  ;;  %v5779_v16 = vpop.f32.mrf.mxu3  ;;  %v973_v33 = vshrl.u32 %v5758_v19, 16  ;;  %vm6970_vm1 = vcmp.ge.s32.totalorder %v1361_v5, 1  ;;  %v6971_v48 = vmov 0  ;;  %v1936_v60 = vpop.f32.mrf.mxu1  ;;  %v2349_v12 = vld [vmem:[#allocation3 + $0x39] sm:$0xff] }
 0x185   :  { %v955_v52 = vshrl.u32 %v954_v58, 4  ;;  %vm5784_vm10 = vmand %vm6970_vm1, %vm1433_vm0  ;;  %v1812_v15 = vadd.f32 %v5649_v59, %v1811_v30  ;;  %vm978_vm14 = vc.u32 %v976_v1, %v972_v2  ;;  %v992_v57 = vand.u32 65535, %v5776_v55 }
 0x186   :  { %v6972_v48 = vsel %vm5784_vm10, 4294967295, %v6971_v48  ;;  %v5791_v42 = vadd.s32 240, %v4593_v35  ;;  %v2116_v22 = vmax.f32 %v2059_v14, 0.0  ;;  %v6974_v53 = vmov 0   ;;  %2590 = vmatmul.f32.gmra.mxu0 %v2313_v17 }
 0x187   :  { %6973 = vst [vmem:[#allocation26_spill] sm:$0xff] %v6972_v48  ;;  %v956_v27 = vmul.u32 18, %v955_v52  ;;  %v979_v19 = vsel %vm978_vm14, 1, %v6974_v53  ;;  %v993_v5 = vshrl.u32 %v5776_v55, 16  ;;  %v995_v31 = vmul.u32 14564, %v992_v57  ;;  %2715 = vmatmul.f32.gmra.mxu1 %v2349_v12  ;;  %v2350_v48 = vld [vmem:[#allocation3 + $0x41] sm:$0xff] }
 0x188   :  { %v981_v25 = vadd.s32 %v979_v19, %v977_v34  ;;  %v996_v58 = vmul.u32 58254, %v992_v57  ;;  %v2224_v2 = vsel %vm5784_vm10, %v2116_v22, 0.0  ;;  %v2295_v1 = vld [vmem:[#allocation3 + $0xc7] sm:$0xff]  ;;  %v1937_v52 = vadd.f32 %v1936_v60, %v1812_v15 }
 0x189   :  { %v957_v7 = vsub.s32 %v5715_v29, %v956_v27  ;;  %v5798_v36 = vmul.u32 14564, %v993_v5  ;;  %2260 = vst [vmem:[#allocation3 + $0xd0] sm:$0xff] %v2224_v2  ;;  %2519 = vmatmul.f32.gmra.mxu3 %v2295_v1  ;;  %v998_v30 = vmul.u32 58254, %v993_v5  ;;  %v1021_v27 = vand.u32 65535, %v5791_v42 }
 0x18a   :  { %v982_v14 = vadd.s32 %v981_v25, %v971_v3  ;;  %v999_v17 = vshll.u32 %v996_v58, 16  ;;  %v1022_v5 = vshrl.u32 %v5791_v42, 16  ;;  %vm6975_vm10 = vcmp.lt.s32.totalorder %v1362_v4, 17 }
 0x18b   :  { %vm1219_vm1 = vcmp.ne.s32.totalorder %v957_v7, 0  ;;  %vm1255_vm14 = vcmp.lt.s32.totalorder %v957_v7, 0  ;;  %v1327_v34 = vadd.s32 18, %v957_v7  ;;  %v1001_v57 = vshll.u32 %v5798_v36, 16  ;;  %v2061_v22 = vpop.f32.mrf.mxu2  ;;  %v1814_v3 = vpop.f32.mrf.mxu0 }
 0x18c   :  { %vm1291_vm9 = vmand %vm1255_vm14, %vm1219_vm1  ;;  %v983_v19 = vadd.s32 %v982_v14, %v973_v33  ;;  %vm1003_vm0 = vc.u32 %v995_v31, %v999_v17  ;;  %v1005_v29 = vadd.s32 %v999_v17, %v995_v31  ;;  %v2062_v12 = vadd.f32 %v2061_v22, %v1937_v52  ;;  %v5802_v15 = vpop.f32.mrf.mxu3  ;;  %v1939_v33 = vpop.f32.mrf.mxu1  ;;  %v2314_v14 = vld [vmem:[#allocation3 + $0x40] sm:$0xff] }
 0x18d   :  { %v1004_v60 = vsel %vm1003_vm0, 1, %v6974_v53  ;;  %vm6976_vm4 = vcmp.ge.s32.totalorder %v1362_v4, 1  ;;  %v6977_v25 = vmov 0  ;;  %v1815_v32 = vadd.f32 %v5649_v59, %v1814_v3 }
 0x18e   :  { %vm5808_vm12 = vmand %vm6976_vm4, %vm6975_vm10  ;;  %v1363_v31 = vsel %vm1291_vm9, %v1327_v34, %v957_v7  ;;  %v1000_v2 = vshrl.u32 %v996_v58, 16  ;;  %v5814_v1 = vadd.s32 248, %v4593_v35  ;;  %v2117_v52 = vmax.f32 %v2062_v12, 0.0  ;;  %2593 = vmatmul.f32.gmra.mxu0 %v2314_v14 }
 0x18f   :  { %v6978_v25 = vsel %vm5808_vm12, 4294967295, %v6977_v25  ;;  %v984_v17 = vshrl.u32 %v983_v19, 4  ;;  %v1006_v22 = vadd.s32 %v1004_v60, %v998_v30  ;;  %vm1007_vm0 = vc.u32 %v1005_v29, %v1001_v57  ;;  %2718 = vmatmul.f32.gmra.mxu1 %v2350_v48  ;;  %v3100_v57 = vld [vmem:[#allocation10 + $0x150] sm:$0xff] }
 0x190   :  { %6979 = vst [vmem:[#allocation27_spill] sm:$0xff] %v6978_v25  ;;  %v1002_v4 = vshrl.u32 %v5798_v36, 16  ;;  %v1008_v51 = vsel %vm1007_vm0, 1, %v6974_v53  ;;  %v1024_v44 = vmul.u32 14564, %v1021_v27  ;;  %v5818_v45 = vmul.u32 58254, %v1021_v27  ;;  %v2296_v7 = vld [vmem:[#allocation3 + $0xcf] sm:$0xff]  ;;  %3365 = vmatpush.msra.mxu0 %v3100_v57 }
 0x191   :  { %v2225_v58 = vsel %vm5808_vm12, %v2117_v52, 0.0  ;;  %v985_v34 = vmul.u32 18, %v984_v17  ;;  %v1010_v12 = vadd.s32 %v1008_v51, %v1006_v22  ;;  %v5822_v3 = vmul.u32 14564, %v1022_v5  ;;  %2522 = vmatmul.f32.gmra.mxu3 %v2296_v7  ;;  %v2315_v7 = vld [vmem:[#allocation3 + $0x48] sm:$0xff] }
 0x192   :  { %2261 = vst [vmem:[#allocation3 + $0xd8] sm:$0xff] %v2225_v58  ;;  %v1940_v30 = vadd.f32 %v1939_v33, %v1815_v32  ;;  %vm1399_vm4 = vcmp.ge.s32.totalorder %v1363_v31, 1  ;;  %vm1435_vm10 = vcmp.lt.s32.totalorder %v1363_v31, 17  ;;  %v1028_v36 = vshll.u32 %v5818_v45, 16  ;;  %3366 = vmatpush.msra.mxu0 %v3099_v28 }
 0x193   :  { %v986_v19 = vsub.s32 %v5722_v54, %v985_v34  ;;  %v1011_v29 = vadd.s32 %v1010_v12, %v1000_v2  ;;  %v1027_v27 = vmul.u32 58254, %v1022_v5  ;;  %v1030_v60 = vshll.u32 %v5822_v3, 16  ;;  %v2064_v48 = vpop.f32.mrf.mxu2  ;;  %vm5829_vm1 = vmand %vm1399_vm4, %vm1435_vm10  ;;  %v1817_v54 = vpop.f32.mrf.mxu0 }
 0x194   :  { %vm1032_vm9 = vc.u32 %v1024_v44, %v1028_v36  ;;  %v1034_v51 = vadd.s32 %v1028_v36, %v1024_v44  ;;  %v1050_v52 = vand.u32 65535, %v5814_v1  ;;  %v1051_v32 = vshrl.u32 %v5814_v1, 16  ;;  %v5833_v14 = vpop.f32.mrf.mxu3  ;;  %v1942_v17 = vpop.f32.mrf.mxu1 }
 0x195   :  { %v6980_v33 = vmov 0  ;;  %v2065_v31 = vadd.f32 %v2064_v48, %v1940_v30  ;;  %vm1220_vm14 = vcmp.ne.s32.totalorder %v986_v19, 0  ;;  %vm1256_vm0 = vcmp.lt.s32.totalorder %v986_v19, 0  ;;  %v2351_v30 = vld [vmem:[#allocation3 + $0x49] sm:$0xff] }
 0x196   :  { %v6981_v33 = vsel %vm5829_vm1, 4294967295, %v6980_v33  ;;  %v1328_v5 = vadd.s32 18, %v986_v19  ;;  %v1818_v2 = vadd.f32 %v5649_v59, %v1817_v54  ;;  %vm1292_vm12 = vmand %vm1256_vm0, %vm1220_vm14  ;;  %v1012_v44 = vadd.s32 %v1011_v29, %v1002_v4  ;;  %2596 = vmatmul.f32.gmra.mxu0 %v2315_v7 }
 0x197   :  { %6982 = vst [vmem:[#allocation28_spill] sm:$0xff] %v6981_v33  ;;  %v1033_v22 = vsel %vm1032_vm9, 1, %v6974_v53  ;;  %v2118_v58 = vmax.f32 %v2065_v31, 0.0  ;;  %v1029_v34 = vshrl.u32 %v5818_v45, 16  ;;  %vm1036_vm4 = vc.u32 %v1034_v51, %v1030_v60  ;;  %2721 = vmatmul.f32.gmra.mxu1 %v2351_v30  ;;  %v3060_v60 = vld [vmem:[#allocation10 + $0x10] sm:$0xff] }
 0x198   :  { %v1035_v12 = vadd.s32 %v1033_v22, %v1027_v27  ;;  %v1364_v36 = vsel %vm1292_vm12, %v1328_v5, %v986_v19  ;;  %v1013_v57 = vshrl.u32 %v1012_v44, 4  ;;  %v1031_v48 = vshrl.u32 %v5822_v3, 16  ;;  %v3076_v51 = vld [vmem:[#allocation10 + $0x90] sm:$0xff]  ;;  %3123 = vmatpush.msrb.mxu2 %v3060_v60 }
 0x199   :  { %v1053_v25 = vmul.u32 14564, %v1050_v52  ;;  %v2226_v54 = vsel %vm5829_vm1, %v2118_v58, 0.0  ;;  %v2297_v4 = vld [vmem:[#allocation3 + $0xd7] sm:$0xff]  ;;  %v1037_v29 = vsel %vm1036_vm4, 1, %v6974_v53  ;;  %v5842_v31 = vmul.u32 58254, %v1050_v52  ;;  %3248 = vmatpush.msrb.mxu3 %v3076_v51 }
 0x19a   :  { %v5844_v61 = vmul.u32 14564, %v1051_v32  ;;  %2262 = vst [vmem:[#allocation3 + $0xe0] sm:$0xff] %v2226_v54  ;;  %v1943_v45 = vadd.f32 %v1942_v17, %v1818_v2  ;;  %2525 = vmatmul.f32.gmra.mxu3 %v2297_v4  ;;  %v1014_v27 = vmul.u32 18, %v1013_v57  ;;  %v1039_v19 = vadd.s32 %v1037_v29, %v1035_v12 }
 0x19b   :  { %v5847_v3 = vadd.s32 256, %v4593_v35  ;;  %vm1400_vm12 = vcmp.ge.s32.totalorder %v1364_v36, 1  ;;  %vm1436_vm10 = vcmp.lt.s32.totalorder %v1364_v36, 17  ;;  %v1056_v5 = vmul.u32 58254, %v1051_v32  ;;  %v2067_v52 = vpop.f32.mrf.mxu2  ;;  %v1820_v30 = vpop.f32.mrf.mxu0  ;;  %v2352_v36 = vld [vmem:[#allocation3 + $0x51] sm:$0xff] }
 0x19c   :  { %v1057_v44 = vshll.u32 %v5842_v31, 16  ;;  %v1015_v22 = vsub.s32 %v5776_v55, %v1014_v27  ;;  %v1040_v58 = vadd.s32 %v1039_v19, %v1029_v34  ;;  %v1058_v2 = vshrl.u32 %v5842_v31, 16  ;;  %v5853_v12 = vpop.f32.mrf.mxu3  ;;  %vm5858_vm14 = vmand %vm1400_vm12, %vm1436_vm10  ;;  %v1945_v34 = vpop.f32.mrf.mxu1  ;;  %v2316_v31 = vld [vmem:[#allocation3 + $0x50] sm:$0xff] }
 0x19d   :  { %v1059_v17 = vshll.u32 %v5844_v61, 16  ;;  %v2068_v7 = vadd.f32 %v2067_v52, %v1943_v45  ;;  %v1079_v32 = vand.u32 65535, %v5847_v3  ;;  %v6983_v54 = vmov 0 }
 0x19e   :  { %vm1061_vm9 = vc.u32 %v1053_v25, %v1057_v44  ;;  %v1063_v57 = vadd.s32 %v1057_v44, %v1053_v25  ;;  %v6984_v54 = vsel %vm5858_vm14, 4294967295, %v6983_v54  ;;  %v1821_v55 = vadd.f32 %v5649_v59, %v1820_v30  ;;  %2599 = vmatmul.f32.gmra.mxu0 %v2316_v31 }
 0x19f   :  { %6985 = vst [vmem:[#allocation29_spill] sm:$0xff] %v6984_v54  ;;  %vm1221_vm0 = vcmp.ne.s32.totalorder %v1015_v22, 0  ;;  %vm1257_vm4 = vcmp.lt.s32.totalorder %v1015_v22, 0  ;;  %v1080_v4 = vshrl.u32 %v5847_v3, 16  ;;  %v2119_v29 = vmax.f32 %v2068_v7, 0.0  ;;  %2724 = vmatmul.f32.gmra.mxu1 %v2352_v36 }
 0x1a0   :  { %vm1293_vm1 = vmand %vm1257_vm4, %vm1221_vm0  ;;  %v1329_v45 = vadd.s32 18, %v1015_v22  ;;  %v1041_v25 = vadd.s32 %v1040_v58, %v1031_v48  ;;  %v1062_v27 = vsel %vm1061_vm9, 1, %v6974_v53  ;;  %v1060_v19 = vshrl.u32 %v5844_v61, 16 }
 0x1a1   :  { %v1064_v60 = vadd.s32 %v1062_v27, %v1056_v5  ;;  %vm1065_vm12 = vc.u32 %v1063_v57, %v1059_v17  ;;  %v5867_v51 = vadd.s32 264, %v4593_v35  ;;  %v2227_v44 = vsel %vm5858_vm14, %v2119_v29, 0.0  ;;  %v2298_v52 = vld [vmem:[#allocation3 + $0xdf] sm:$0xff] }
 0x1a2   :  { %v1365_v7 = vsel %vm1293_vm1, %v1329_v45, %v1015_v22  ;;  %v1042_v30 = vshrl.u32 %v1041_v25, 4  ;;  %v1066_v48 = vsel %vm1065_vm12, 1, %v6974_v53  ;;  %2263 = vst [vmem:[#allocation3 + $0xe8] sm:$0xff] %v2227_v44  ;;  %v1946_v58 = vadd.f32 %v1945_v34, %v1821_v55  ;;  %2528 = vmatmul.f32.gmra.mxu3 %v2298_v52 }
 0x1a3   :  { %v1068_v31 = vadd.s32 %v1066_v48, %v1064_v60  ;;  %v1082_v33 = vmul.u32 14564, %v1079_v32  ;;  %v5872_v61 = vmul.u32 58254, %v1079_v32  ;;  %vm1401_vm10 = vcmp.ge.s32.totalorder %v1365_v7, 1  ;;  %v2070_v57 = vpop.f32.mrf.mxu2  ;;  %v1823_v36 = vpop.f32.mrf.mxu0  ;;  %v2353_v48 = vld [vmem:[#allocation3 + $0x59] sm:$0xff] }
 0x1a4   :  { %vm1437_vm9 = vcmp.lt.s32.totalorder %v1365_v7, 17  ;;  %v1043_v5 = vmul.u32 18, %v1042_v30  ;;  %v5874_v17 = vmul.u32 14564, %v1080_v4  ;;  %v1085_v27 = vmul.u32 58254, %v1080_v4  ;;  %v5877_v25 = vpop.f32.mrf.mxu3  ;;  %v2317_v30 = vld [vmem:[#allocation3 + $0x58] sm:$0xff] }
 0x1a5   :  { %v1069_v29 = vadd.s32 %v1068_v31, %v1058_v2  ;;  %v1086_v22 = vshll.u32 %v5872_v61, 16  ;;  %v2071_v45 = vadd.f32 %v2070_v57, %v1946_v58  ;;  %v1108_v34 = vand.u32 65535, %v5867_v51  ;;  %vm5882_vm1 = vmand %vm1401_vm10, %vm1437_vm9  ;;  %v1948_v2 = vpop.f32.mrf.mxu1 }
 0x1a6   :  { %v1044_v55 = vsub.s32 %v5791_v42, %v1043_v5  ;;  %v1109_v32 = vshrl.u32 %v5867_v51, 16  ;;  %v6986_v60 = vmov 0  ;;  %v1824_v44 = vadd.f32 %v5649_v59, %v1823_v36  ;;  %2602 = vmatmul.f32.gmra.mxu0 %v2317_v30 }
 0x1a7   :  { %v6987_v60 = vsel %vm5882_vm1, 4294967295, %v6986_v60  ;;  %v1070_v4 = vadd.s32 %v1069_v29, %v1060_v19  ;;  %v1088_v52 = vshll.u32 %v5874_v17, 16  ;;  %vm1090_vm0 = vc.u32 %v1082_v33, %v1086_v22  ;;  %2727 = vmatmul.f32.gmra.mxu1 %v2353_v48 }
 0x1a8   :  { %6988 = vst [vmem:[#allocation30_spill] sm:$0xff] %v6987_v60  ;;  %v2120_v7 = vmax.f32 %v2071_v45, 0.0  ;;  %vm1222_vm4 = vcmp.ne.s32.totalorder %v1044_v55, 0  ;;  %vm1258_vm12 = vcmp.lt.s32.totalorder %v1044_v55, 0  ;;  %v1330_v42 = vadd.s32 18, %v1044_v55 }
 0x1a9   :  { %vm1294_vm14 = vmand %vm1258_vm12, %vm1222_vm4  ;;  %v1071_v58 = vshrl.u32 %v1070_v4, 4  ;;  %v1091_v31 = vsel %vm1090_vm0, 1, %v6974_v53  ;;  %v1092_v5 = vadd.s32 %v1086_v22, %v1082_v33  ;;  %v2299_v19 = vld [vmem:[#allocation3 + $0xe7] sm:$0xff]  ;;  %v1087_v36 = vshrl.u32 %v5872_v61, 16  ;;  %v3059_v4 = vld [vmem:[#allocation10 + $0x8] sm:$0xff] }
 0x1aa   :  { %v2228_v57 = vsel %vm5882_vm1, %v2120_v7, 0.0  ;;  %v1366_v29 = vsel %vm1294_vm14, %v1330_v42, %v1044_v55  ;;  %v1093_v45 = vadd.s32 %v1091_v31, %v1085_v27  ;;  %v1949_v54 = vadd.f32 %v1948_v2, %v1824_v44  ;;  %2531 = vmatmul.f32.gmra.mxu3 %v2299_v19  ;;  %3124 = vmatpush.msrb.mxu2 %v3059_v4  ;;  %v3075_v55 = vld [vmem:[#allocation10 + $0x88] sm:$0xff] }
 0x1ab   :  { %2264 = vst [vmem:[#allocation3 + $0xf0] sm:$0xff] %v2228_v57  ;;  %vm1402_vm10 = vcmp.ge.s32.totalorder %v1366_v29, 1  ;;  %v1072_v30 = vmul.u32 18, %v1071_v58  ;;  %vm1094_vm9 = vc.u32 %v1092_v5, %v1088_v52  ;;  %vm1438_vm4 = vcmp.lt.s32.totalorder %v1366_v29, 17  ;;  %v2073_v61 = vpop.f32.mrf.mxu2  ;;  %3249 = vmatpush.msrb.mxu3 %v3075_v55  ;;  %v1826_v58 = vpop.f32.mrf.mxu0  ;;  %v2354_v29 = vld [vmem:[#allocation3 + $0x61] sm:$0xff] }
 0x1ac   :  { %v1095_v33 = vsel %vm1094_vm9, 1, %v6974_v53  ;;  %v5893_v22 = vmul.u32 58254, %v1108_v34  ;;  %v5895_v7 = vmul.u32 14564, %v1109_v32  ;;  %v1111_v2 = vmul.u32 14564, %v1108_v34  ;;  %v5901_v48 = vpop.f32.mrf.mxu3  ;;  %vm5907_vm14 = vmand %vm1402_vm10, %vm1438_vm4 }
 0x1ad   :  { %v1073_v27 = vsub.s32 %v5814_v1, %v1072_v30  ;;  %v1097_v44 = vadd.s32 %v1095_v33, %v1093_v45  ;;  %v5899_v52 = vadd.s32 272, %v4593_v35  ;;  %v2074_v42 = vadd.f32 %v2073_v61, %v1949_v54  ;;  %v1951_v34 = vpop.f32.mrf.mxu1  ;;  %v2318_v45 = vld [vmem:[#allocation3 + $0x60] sm:$0xff] }
 0x1ae   :  { %v1089_v31 = vshrl.u32 %v5874_v17, 16  ;;  %v1114_v5 = vmul.u32 58254, %v1109_v32  ;;  %v1115_v28 = vshll.u32 %v5893_v22, 16  ;;  %v6989_v57 = vmov 0  ;;  %2605 = vmatmul.f32.gmra.mxu0 %v2318_v45 }
 0x1af   :  { %v6990_v57 = vsel %vm5907_vm14, 4294967295, %v6989_v57  ;;  %v1827_v1 = vadd.f32 %v5649_v59, %v1826_v58  ;;  %vm1223_vm0 = vcmp.ne.s32.totalorder %v1073_v27, 0  ;;  %vm1259_vm12 = vcmp.lt.s32.totalorder %v1073_v27, 0  ;;  %2730 = vmatmul.f32.gmra.mxu1 %v2354_v29 }
 0x1b0   :  { %6991 = vst [vmem:[#allocation31_spill] sm:$0xff] %v6990_v57  ;;  %v1117_v54 = vshll.u32 %v5895_v7, 16  ;;  %v2121_v19 = vmax.f32 %v2074_v42, 0.0  ;;  %vm1295_vm9 = vmand %vm1259_vm12, %vm1223_vm0  ;;  %v1331_v17 = vadd.s32 18, %v1073_v27  ;;  %v1098_v32 = vadd.s32 %v1097_v44, %v1087_v36  ;;  %v2356_v57 = vld [vmem:[#allocation3 + $0x71] sm:$0xff] }
 0x1b1   :  { %v5914_v30 = vadd.s32 280, %v4593_v35  ;;  %v1116_v4 = vshrl.u32 %v5893_v22, 16  ;;  %vm1119_vm10 = vc.u32 %v1111_v2, %v1115_v28  ;;  %v1121_v33 = vadd.s32 %v1115_v28, %v1111_v2 }
 0x1b2   :  { %v1137_v55 = vand.u32 65535, %v5899_v52  ;;  %v2229_v61 = vsel %vm5907_vm14, %v2121_v19, 0.0  ;;  %v2300_v42 = vld [vmem:[#allocation3 + $0xef] sm:$0xff]  ;;  %v1367_v58 = vsel %vm1295_vm9, %v1331_v17, %v1073_v27  ;;  %v1099_v60 = vadd.s32 %v1098_v32, %v1089_v31 }
 0x1b3   :  { %v1120_v36 = vsel %vm1119_vm10, 1, %v6974_v53  ;;  %2265 = vst [vmem:[#allocation3 + $0xf8] sm:$0xff] %v2229_v61  ;;  %v1952_v35 = vadd.f32 %v1951_v34, %v1827_v1  ;;  %2534 = vmatmul.f32.gmra.mxu3 %v2300_v42  ;;  %vm1403_vm4 = vcmp.ge.s32.totalorder %v1367_v58, 1  ;;  %vm1123_vm0 = vc.u32 %v1121_v33, %v1117_v54  ;;  %v2076_v45 = vpop.f32.mrf.mxu2  ;;  %v1829_v1 = vpop.f32.mrf.mxu0 }
 0x1b4   :  { %v1122_v44 = vadd.s32 %v1120_v36, %v1114_v5  ;;  %vm1439_vm12 = vcmp.lt.s32.totalorder %v1367_v58, 17  ;;  %v1100_v22 = vshrl.u32 %v1099_v60, 4  ;;  %v1124_v2 = vsel %vm1123_vm0, 1, %v6974_v53  ;;  %v5926_v32 = vpop.f32.mrf.mxu3  ;;  %v2319_v36 = vld [vmem:[#allocation3 + $0x68] sm:$0xff] }
 0x1b5   :  { %v1138_v28 = vshrl.u32 %v5899_v52, 16  ;;  %v1118_v19 = vshrl.u32 %v5895_v7, 16  ;;  %v1140_v27 = vmul.u32 14564, %v1137_v55  ;;  %v5924_v31 = vmul.u32 58254, %v1137_v55  ;;  %vm5931_vm9 = vmand %vm1403_vm4, %vm1439_vm12  ;;  %v1954_v33 = vpop.f32.mrf.mxu1  ;;  %v2355_v58 = vld [vmem:[#allocation3 + $0x69] sm:$0xff] }
 0x1b6   :  { %v1126_v29 = vadd.s32 %v1124_v2, %v1122_v44  ;;  %v2077_v17 = vadd.f32 %v2076_v45, %v1952_v35  ;;  %v1101_v34 = vmul.u32 18, %v1100_v22  ;;  %v6992_v60 = vmov 0  ;;  %2608 = vmatmul.f32.gmra.mxu0 %v2319_v36 }
 0x1b7   :  { %v5928_v5 = vmul.u32 14564, %v1138_v28  ;;  %v6993_v60 = vsel %vm5931_vm9, 4294967295, %v6992_v60  ;;  %v1830_v54 = vadd.f32 %v5649_v59, %v1829_v1  ;;  %v1144_v61 = vshll.u32 %v5924_v31, 16  ;;  %2733 = vmatmul.f32.gmra.mxu1 %v2355_v58 }
 0x1b8   :  { %6994 = vst [vmem:[#allocation32_spill] sm:$0xff] %v6993_v60  ;;  %v1127_v7 = vadd.s32 %v1126_v29, %v1116_v4  ;;  %v1166_v55 = vand.u32 65535, %v5914_v30  ;;  %v2122_v42 = vmax.f32 %v2077_v17, 0.0  ;;  %v1102_v35 = vsub.s32 %v5847_v3, %v1101_v34 }
 0x1b9   :  { %v1143_v44 = vmul.u32 58254, %v1138_v28  ;;  %v1167_v22 = vshrl.u32 %v5914_v30, 16  ;;  %v1145_v45 = vshrl.u32 %v5924_v31, 16  ;;  %v1146_v59 = vshll.u32 %v5928_v5, 16 }
 0x1ba   :  { %v1128_v2 = vadd.s32 %v1127_v7, %v1118_v19  ;;  %vm1148_vm10 = vc.u32 %v1140_v27, %v1144_v61  ;;  %v2230_v4 = vsel %vm5931_vm9, %v2122_v42, 0.0  ;;  %v2301_v29 = vld [vmem:[#allocation3 + $0xf7] sm:$0xff]  ;;  %vm1224_vm4 = vcmp.ne.s32.totalorder %v1102_v35, 0 }
 0x1bb   :  { %vm1260_vm0 = vcmp.lt.s32.totalorder %v1102_v35, 0  ;;  %v1332_v17 = vadd.s32 18, %v1102_v35  ;;  %2266 = vst [vmem:[#allocation3 + $0x100] sm:$0xff] %v2230_v4  ;;  %v1955_v3 = vadd.f32 %v1954_v33, %v1830_v54  ;;  %2537 = vmatmul.f32.gmra.mxu3 %v2301_v29  ;;  %v1149_v19 = vsel %vm1148_vm10, 1, %v6974_v53  ;;  %v2079_v42 = vpop.f32.mrf.mxu2  ;;  %v1832_v33 = vpop.f32.mrf.mxu0 }
 0x1bc   :  { %vm1296_vm12 = vmand %vm1260_vm0, %vm1224_vm4  ;;  %v1129_v28 = vshrl.u32 %v1128_v2, 4  ;;  %v1150_v1 = vadd.s32 %v1144_v61, %v1140_v27  ;;  %v1151_v34 = vadd.s32 %v1149_v19, %v1143_v44  ;;  %v5945_v7 = vmul.u32 58254, %v1166_v55  ;;  %v5951_v54 = vpop.f32.mrf.mxu3  ;;  %v3098_v61 = vld [vmem:[#allocation10 + $0x140] sm:$0xff] }
 0x1bd   :  { %v1368_v31 = vsel %vm1296_vm12, %v1332_v17, %v1102_v35  ;;  %v5947_v36 = vmul.u32 14564, %v1167_v22  ;;  %v5949_v60 = vadd.f32 %v2079_v42, %v1955_v3  ;;  %v1169_v4 = vmul.u32 14564, %v1166_v55  ;;  %v3058_v35 = vld [vmem:[#allocation10] sm:$0xff]  ;;  %v1957_v17 = vpop.f32.mrf.mxu1  ;;  %3367 = vmatpush.msra.mxu0 %v3098_v61 }
 0x1be   :  { %vm1404_vm9 = vcmp.ge.s32.totalorder %v1368_v31, 1  ;;  %vm1440_vm14 = vcmp.lt.s32.totalorder %v1368_v31, 17  ;;  %v1130_v58 = vmul.u32 18, %v1129_v28  ;;  %vm1152_vm1 = vc.u32 %v1150_v1, %v1146_v59  ;;  %v5962_v59 = vld [vmem:[%s6717_s2] ss:$0 sm:$0xff]  ;;  %3125 = vmatpush.msrb.mxu2 %v3058_v35 }
 0x1bf   :  { %v1153_v2 = vsel %vm1152_vm1, 1, %v6974_v53  ;;  %v1173_v27 = vshll.u32 %v5945_v7, 16  ;;  %vm5955_vm10 = vmand %vm1404_vm9, %vm1440_vm14  ;;  %v6995_v44 = vmov 0  ;;  %v1833_v29 = vadd.f32 %v5962_v59, %v1832_v33  ;;  %v3074_v55 = vld [vmem:[#allocation10 + $0x80] sm:$0xff]  ;;  %2736 = vmatmul.f32.gmra.mxu1 %v2356_v57 }
 0x1c0   :  { %v6996_v44 = vsel %vm5955_vm10, 4294967295, %v6995_v44  ;;  %v1131_v3 = vsub.s32 %v5867_v51, %v1130_v58  ;;  %v1155_v28 = vadd.s32 %v1153_v2, %v1151_v34  ;;  %v6805_v19 = vmax.f32 %v5949_v60, 0.0  ;;  %v2320_v1 = vld [vmem:[#allocation3 + $0x70] sm:$0xff]  ;;  %3250 = vmatpush.msrb.mxu3 %v3074_v55 }
 0x1c1   :  { %v1147_v31 = vshrl.u32 %v5928_v5, 16  ;;  %v1172_v42 = vmul.u32 58254, %v1167_v22  ;;  %2611 = vmatmul.f32.gmra.mxu0 %v2320_v1  ;;  %v1175_v33 = vshll.u32 %v5947_v36, 16  ;;  %vm1177_vm4 = vc.u32 %v1169_v4, %v1173_v27 }
 0x1c2   :  { %vm1225_vm1 = vcmp.ne.s32.totalorder %v1131_v3, 0  ;;  %vm1261_vm14 = vcmp.lt.s32.totalorder %v1131_v3, 0  ;;  %v1333_v62 = vadd.s32 18, %v1131_v3  ;;  %v2231_v51 = vsel %vm5955_vm10, %v6805_v19, 0.0  ;;  %v2302_v34 = vld [vmem:[#allocation3 + $0xff] sm:$0xff] }
 0x1c3   :  { %vm1297_vm9 = vmand %vm1261_vm14, %vm1225_vm1  ;;  %v1156_v58 = vadd.s32 %v1155_v28, %v1145_v45  ;;  %v1179_v5 = vadd.s32 %v1173_v27, %v1169_v4  ;;  %2267 = vst [vmem:[#allocation3 + $0x108] sm:$0xff] %v2231_v51  ;;  %v1958_v22 = vadd.f32 %v1957_v17, %v1833_v29  ;;  %2540 = vmatmul.f32.gmra.mxu3 %v2302_v34  ;;  %v1178_v61 = vsel %vm1177_vm4, 1, %v6974_v53  ;;  %v2082_v1 = vpop.f32.mrf.mxu2  ;;  %v1835_v45 = vpop.f32.mrf.mxu0 }
 0x1c4   :  { %v1369_v2 = vsel %vm1297_vm9, %v1333_v62, %v1131_v3  ;;  %v1180_v55 = vadd.s32 %v1178_v61, %v1172_v42  ;;  %v1174_v23 = vshrl.u32 %v5945_v7, 16  ;;  %v5977_v19 = vpop.f32.mrf.mxu3  ;;  %v6997_v62 = vmov 0 }
 0x1c5   :  { %vm1405_vm0 = vcmp.ge.s32.totalorder %v1369_v2, 1  ;;  %vm1441_vm12 = vcmp.lt.s32.totalorder %v1369_v2, 17  ;;  %v1157_v35 = vadd.s32 %v1156_v58, %v1147_v31  ;;  %vm1181_vm6 = vc.u32 %v1179_v5, %v1175_v33  ;;  %v1960_v29 = vpop.f32.mrf.mxu1  ;;  %v2321_v31 = vld [vmem:[#allocation3 + $0x78] sm:$0xff] }
 0x1c6   :  { %v5975_v57 = vadd.f32 %v2082_v1, %v1958_v22  ;;  %v1182_v27 = vsel %vm1181_vm6, 1, %v6974_v53  ;;  %vm5980_vm1 = vmand %vm1405_vm0, %vm1441_vm12  ;;  %v1176_v17 = vshrl.u32 %v5947_v36, 16  ;;  %v1836_v7 = vadd.f32 %v5962_v59, %v1835_v45  ;;  %v2357_v33 = vld [vmem:[#allocation3 + $0x79] sm:$0xff]  ;;  %v3097_v45 = vld [vmem:[#allocation10 + $0x138] sm:$0xff] }
 0x1c7   :  { %v1158_v4 = vshrl.u32 %v1157_v35, 4  ;;  %v6998_v62 = vsel %vm5980_vm1, 4294967295, %v6997_v62  ;;  %v1184_v3 = vadd.s32 %v1182_v27, %v1180_v55  ;;  %2739 = vmatmul.f32.gmra.mxu1 %v2357_v33  ;;  %v3748_v27 = vld [vmem:[#allocation12 + $0x178] sm:$0xff]  ;;  %3368 = vmatpush.msra.mxu0 %v3097_v45 }
 0x1c8   :  { %v2124_v28 = vmax.f32 %v5975_v57, 0.0  ;;  %v1961_v5 = vadd.f32 %v1960_v29, %v1836_v7  ;;  %v6999_v29 = vmov 0  ;;  %v2322_v7 = vld [vmem:[#allocation3 + $0x80] sm:$0xff]  ;;  %4003 = vmatpush.msra.mxu3 %v3748_v27  ;;  %v2323_v27 = vld [vmem:[#allocation3 + $0x88] sm:$0xff] }
 0x1c9   :  { %v1159_v42 = vmul.u32 18, %v1158_v4  ;;  %2614 = vmatmul.f32.gmra.mxu0 %v2321_v31  ;;  %v1185_v51 = vadd.s32 %v1184_v3, %v1174_v23  ;;  %v3732_v4 = vld [vmem:[#allocation12 + $0xf8] sm:$0xff] }
 0x1ca   :  { %v2232_v53 = vsel %vm5980_vm1, %v2124_v28, 0.0  ;;  %v2303_v34 = vld [vmem:[#allocation3 + $0x107] sm:$0xff]  ;;  %3878 = vmatpush.msra.mxu2 %v3732_v4  ;;  %v7001_v4 = vmov 0 }
 0x1cb   :  { %v1160_v58 = vsub.s32 %v5899_v52, %v1159_v42  ;;  %2268 = vst [vmem:[#allocation3 + $0x110] sm:$0xff] %v2232_v53  ;;  %2543 = vmatmul.f32.gmra.mxu3 %v2303_v34  ;;  %v1186_v36 = vadd.s32 %v1185_v51, %v1176_v17  ;;  %v2085_v2 = vpop.f32.mrf.mxu2  ;;  %v1838_v1 = vpop.f32.mrf.mxu0  ;;  %v6005_v42 = vld [vmem:[%s6719_s4] ss:$0 sm:$0xff]  ;;  %v2358_v33 = vld [vmem:[#allocation3 + $0x81] sm:$0xff] }
 0x1cc   :  { %v5992_v35 = vadd.f32 %v2085_v2, %v1961_v5  ;;  %v5994_v55 = vpop.f32.mrf.mxu3  ;;  %v1839_v3 = vadd.f32 %v5962_v59, %v1838_v1  ;;  %v3716_v1 = vld [vmem:[#allocation12 + $0x78] sm:$0xff] }
 0x1cd   :  { %vm1226_vm6 = vcmp.ne.s32.totalorder %v1160_v58, 0  ;;  %vm1262_vm14 = vcmp.lt.s32.totalorder %v1160_v58, 0  ;;  %v1334_v22 = vadd.s32 18, %v1160_v58  ;;  %v1187_v61 = vshrl.u32 %v1186_v36, 4  ;;  %v1963_v52 = vpop.f32.mrf.mxu1  ;;  %3753 = vmatpush.msra.mxu1 %v3716_v1 }
 0x1ce   :  { %vm1298_vm9 = vmand %vm1262_vm14, %vm1226_vm6  ;;  %v2125_v17 = vmax.f32 %v5992_v35, 0.0  ;;  %v1964_v59 = vadd.f32 %v1963_v52, %v1839_v3  ;;  %v2449_v36 = vadd.f32 %v6005_v42, %v5557_v38  ;;  %v2359_v3 = vld [vmem:[#allocation3 + $0x89] sm:$0xff] }
 0x1cf   :  { %v1370_v23 = vsel %vm1298_vm9, %v1334_v22, %v1160_v58  ;;  %v1188_v31 = vmul.u32 18, %v1187_v61  ;;  %2742 = vmatmul.f32.gmra.mxu1 %v2358_v33 }
 0x1d0   :  { %vm1406_vm4 = vcmp.ge.s32.totalorder %v1370_v23, 1  ;;  %vm1442_vm0 = vcmp.lt.s32.totalorder %v1370_v23, 17 }
 0x1d1   :  { %vm5996_vm12 = vmand %vm1406_vm4, %vm1442_vm0  ;;  %2617 = vmatmul.f32.gmra.mxu0 %v2322_v7  ;;  %v1189_v34 = vsub.s32 %v5914_v30, %v1188_v31 }
 0x1d2   :  { %v7000_v29 = vsel %vm5996_vm12, 4294967295, %v6999_v29  ;;  %v2233_v51 = vsel %vm5996_vm12, %v2125_v17, 0.0  ;;  %v2304_v53 = vld [vmem:[#allocation3 + $0x10f] sm:$0xff] }
 0x1d3   :  { %2269 = vst [vmem:[#allocation3 + $0x118] sm:$0xff] %v2233_v51  ;;  %2546 = vmatmul.f32.gmra.mxu3 %v2304_v53  ;;  %vm1227_vm6 = vcmp.ne.s32.totalorder %v1189_v34, 0  ;;  %vm1263_vm14 = vcmp.lt.s32.totalorder %v1189_v34, 0  ;;  %v1335_v58 = vadd.s32 18, %v1189_v34  ;;  %v2088_v5 = vpop.f32.mrf.mxu2  ;;  %v2573_v23 = vpop.f32.mrf.mxu0  ;;  %v2452_v51 = vadd.f32 %v6005_v42, %v5606_v18 }
 0x1d4   :  { %vm1299_vm9 = vmand %vm1263_vm14, %vm1227_vm6  ;;  %v6014_v2 = vadd.f32 %v2088_v5, %v1964_v59  ;;  %v6016_v61 = vpop.f32.mrf.mxu3  ;;  %v2574_v30 = vadd.f32 %v2573_v23, %v2449_v36  ;;  %v3731_v36 = vld [vmem:[#allocation12 + $0xf0] sm:$0xff]  ;;  %v2324_v23 = vld [vmem:[#allocation3 + $0x90] sm:$0xff]  ;;  %vm7003_vm6 = vnez %v6892_v10  ;;  %vm7004_vm14 = vnez %v6894_v56 }
 0x1d5   :  { %v1371_v22 = vsel %vm1299_vm9, %v1335_v58, %v1189_v34  ;;  %v2698_v45 = vpop.f32.mrf.mxu1  ;;  %v3096_v58 = vld [vmem:[#allocation10 + $0x130] sm:$0xff]  ;;  %3879 = vmatpush.msra.mxu2 %v3731_v36  ;;  %v2325_v36 = vld [vmem:[#allocation3 + $0x98] sm:$0xff]  ;;  %vm7005_vm9 = vnez %v6901_v0 }
 0x1d6   :  { %vm1407_vm4 = vcmp.ge.s32.totalorder %v1371_v22, 1  ;;  %vm1443_vm0 = vcmp.lt.s32.totalorder %v1371_v22, 17  ;;  %v2126_v38 = vmax.f32 %v6014_v2, 0.0  ;;  %v2699_v52 = vadd.f32 %v2698_v45, %v2574_v30  ;;  %3369 = vmatpush.msra.mxu0 %v3096_v58  ;;  %v2360_v30 = vld [vmem:[#allocation3 + $0x91] sm:$0xff] }
 0x1d7   :  { %vm6018_vm12 = vmand %vm1407_vm4, %vm1443_vm0  ;;  %2745 = vmatmul.f32.gmra.mxu1 %v2359_v3  ;;  %vm7006_vm4 = vnez %v6903_v46  ;;  %vm7007_vm0 = vnez %v6913_v41 }
 0x1d8   :  { %v7002_v4 = vsel %vm6018_vm12, 4294967295, %v7001_v4  ;;  %v2234_v7 = vsel %vm6018_vm12, %v2126_v38, 0.0  ;;  %v2806_v33 = vmax.f32 %v2699_v52, 0.0 }
 0x1d9   :  { %2620 = vmatmul.f32.gmra.mxu0 %v2323_v27  ;;  %2270 = vst [vmem:[#allocation3 + $0x120] sm:$0xff] %v2234_v7  ;;  %v2455_v27 = vadd.f32 %v6005_v42, %v5634_v9 }
 0x1da   :  { %v2305_v31 = vld [vmem:[#allocation3 + $0x117] sm:$0xff]  ;;  %v2842_v53 = vsel %vm4738_vm8, %v2806_v33, 0.0 }
 0x1db   :  { %2549 = vmatmul.f32.gmra.mxu3 %v2305_v31  ;;  %2878 = vst [vmem:[#allocation2 + $0x8] sm:$0xff] %v2842_v53  ;;  %v2576_v59 = vpop.f32.mrf.mxu0  ;;  %v3715_v53 = vld [vmem:[#allocation12 + $0x70] sm:$0xff] }
 0x1dc   :  { %v6031_v34 = vpop.f32.mrf.mxu3  ;;  %v2577_v5 = vadd.f32 %v2576_v59, %v2452_v51  ;;  %v3747_v51 = vld [vmem:[#allocation12 + $0x170] sm:$0xff]  ;;  %3754 = vmatpush.msra.mxu1 %v3715_v53 }
 0x1dd   :  { %v2701_v22 = vpop.f32.mrf.mxu1  ;;  %4004 = vmatpush.msra.mxu3 %v3747_v51  ;;  %v2326_v51 = vld [vmem:[#allocation3 + $0xa0] sm:$0xff] }
 0x1de   :  { %v2702_v1 = vadd.f32 %v2701_v22, %v2577_v5  ;;  %v2361_v22 = vld [vmem:[#allocation3 + $0x99] sm:$0xff] }
 0x1df   :  { %2748 = vmatmul.f32.gmra.mxu1 %v2360_v30 }
 0x1e0   :  { %v2306_v45 = vld [vmem:[#allocation3 + $0x11f] sm:$0xff]  ;;  %v2807_v18 = vmax.f32 %v2702_v1, 0.0 }
 0x1e1   :  { %2623 = vmatmul.f32.gmra.mxu0 %v2324_v23  ;;  %v2458_v23 = vadd.f32 %v6005_v42, %v5674_v11  ;;  %v2461_v11 = vadd.f32 %v6005_v42, %v5701_v37  ;;  %v2363_v37 = vld [vmem:[#allocation3 + $0xa9] sm:$0xff] }
 0x1e2   :  { %v2843_v52 = vsel %vm4778_vm15, %v2807_v18, 0.0  ;;  %v2950_v3 = vld [vmem:[#allocation2 + $0x7] sm:$0xff] }
 0x1e3   :  { %2552 = vmatmul.f32.gmra.mxu3 %v2306_v45  ;;  %2879 = vst [vmem:[#allocation2 + $0x10] sm:$0xff] %v2843_v52  ;;  %v2579_v31 = vpop.f32.mrf.mxu0  ;;  %3126 = vmatmul.f32.vlgmr.msrb.gmra.mxu2 %v2950_v3 }
 0x1e4   :  { %v6037_v7 = vpop.f32.mrf.mxu3  ;;  %v2580_v59 = vadd.f32 %v2579_v31, %v2455_v27  ;;  %v3095_v31 = vld [vmem:[#allocation10 + $0x128] sm:$0xff] }
 0x1e5   :  { %v2704_v58 = vpop.f32.mrf.mxu1  ;;  %3370 = vmatpush.msra.mxu0 %v3095_v31 }
 0x1e6   :  { %v2705_v5 = vadd.f32 %v2704_v58, %v2580_v59 }
 0x1e7   :  { %2751 = vmatmul.f32.gmra.mxu1 %v2361_v22 }
 0x1e8   :  { %v2808_v9 = vmax.f32 %v2705_v5, 0.0 }
 0x1e9   :  { %2626 = vmatmul.f32.gmra.mxu0 %v2325_v36 }
 0x1ea   :  { %v2844_v1 = vsel %vm4837_vm7, %v2808_v9, 0.0  ;;  %v2951_v30 = vld [vmem:[#allocation2 + $0xf] sm:$0xff] }
 0x1eb   :  { %4240 = vmatmul.msk.f32.vlgmr.msrb.gmra.mxu3 %vm4738_vm8, %v2806_v33  ;;  %2880 = vst [vmem:[#allocation2 + $0x18] sm:$0xff] %v2844_v1  ;;  %v2582_v27 = vpop.f32.mrf.mxu0  ;;  %3129 = vmatmul.f32.gmra.mxu2 %v2951_v30  ;;  %v2362_v33 = vld [vmem:[#allocation3 + $0xa1] sm:$0xff]  ;;  %v3746_v1 = vld [vmem:[#allocation12 + $0x168] sm:$0xff] }
 0x1ec   :  { %v6045_v45 = vpop.f32.mrf.mxu3  ;;  %v2583_v52 = vadd.f32 %v2582_v27, %v2458_v23  ;;  %v3730_v23 = vld [vmem:[#allocation12 + $0xe8] sm:$0xff]  ;;  %4005 = vmatpush.msra.mxu3 %v3746_v1 }
 0x1ed   :  { %v2707_v3 = vpop.f32.mrf.mxu1  ;;  %v3714_v30 = vld [vmem:[#allocation12 + $0x68] sm:$0xff]  ;;  %3880 = vmatpush.msra.mxu2 %v3730_v23  ;;  %v2328_v23 = vld [vmem:[#allocation3 + $0xb0] sm:$0xff] }
 0x1ee   :  { %v2708_v53 = vadd.f32 %v2707_v3, %v2583_v52  ;;  %3755 = vmatpush.msra.mxu1 %v3714_v30  ;;  %v2364_v30 = vld [vmem:[#allocation3 + $0xb1] sm:$0xff] }
 0x1ef   :  { %2754 = vmatmul.f32.gmra.mxu1 %v2362_v33 }
 0x1f0   :  { %v2809_v59 = vmax.f32 %v2708_v53, 0.0 }
 0x1f1   :  { %2629 = vmatmul.f32.gmra.mxu0 %v2326_v51  ;;  %v2464_v51 = vadd.f32 %v6005_v42, %v5730_v50  ;;  %v2467_v50 = vadd.f32 %v6005_v42, %v5754_v6 }
 0x1f2   :  { %v2845_v58 = vsel %vm4887_vm2, %v2809_v59, 0.0  ;;  %v2952_v36 = vld [vmem:[#allocation2 + $0x17] sm:$0xff] }
 0x1f3   :  { %4241 = vmatmul.msk.f32.gmra.mxu3 %vm4778_vm15, %v2807_v18  ;;  %2881 = vst [vmem:[#allocation2 + $0x20] sm:$0xff] %v2845_v58  ;;  %v2585_v22 = vpop.f32.mrf.mxu0  ;;  %3132 = vmatmul.f32.gmra.mxu2 %v2952_v36  ;;  %v2327_v18 = vld [vmem:[#allocation3 + $0xa8] sm:$0xff] }
 0x1f4   :  { %v6053_v5 = vpop.f32.mrf.mxu3  ;;  %v2586_v27 = vadd.f32 %v2585_v22, %v2461_v11 }
 0x1f5   :  { %v2710_v52 = vpop.f32.mrf.mxu1 }
 0x1f6   :  { %v2711_v3 = vadd.f32 %v2710_v52, %v2586_v27 }
 0x1f7   :  { %2757 = vmatmul.f32.gmra.mxu1 %v2363_v37  ;;  %v3094_v37 = vld [vmem:[#allocation10 + $0x120] sm:$0xff] }
 0x1f8   :  { %v2810_v31 = vmax.f32 %v2711_v3, 0.0  ;;  %3371 = vmatpush.msra.mxu0 %v3094_v37 }
 0x1f9   :  { %2632 = vmatmul.f32.gmra.mxu0 %v2327_v18 }
 0x1fa   :  { %v2846_v53 = vsel %vm4932_vm11, %v2810_v31, 0.0  ;;  %v2953_v33 = vld [vmem:[#allocation2 + $0x1f] sm:$0xff] }
 0x1fb   :  { %4242 = vmatmul.msk.f32.gmra.mxu3 %vm4837_vm7, %v2808_v9  ;;  %2882 = vst [vmem:[#allocation2 + $0x28] sm:$0xff] %v2846_v53  ;;  %v2588_v58 = vpop.f32.mrf.mxu0  ;;  %3135 = vmatmul.f32.gmra.mxu2 %v2953_v33  ;;  %v3745_v53 = vld [vmem:[#allocation12 + $0x160] sm:$0xff] }
 0x1fc   :  { %v6061_v11 = vpop.f32.mrf.mxu3  ;;  %v2589_v36 = vadd.f32 %v2588_v58, %v2464_v51  ;;  %v3729_v51 = vld [vmem:[#allocation12 + $0xe0] sm:$0xff]  ;;  %4006 = vmatpush.msra.mxu3 %v3745_v53 }
 0x1fd   :  { %v2713_v22 = vpop.f32.mrf.mxu1  ;;  %3881 = vmatpush.msra.mxu2 %v3729_v51  ;;  %v2330_v51 = vld [vmem:[#allocation3 + $0xc0] sm:$0xff] }
 0x1fe   :  { %v2714_v1 = vadd.f32 %v2713_v22, %v2589_v36  ;;  %v2329_v36 = vld [vmem:[#allocation3 + $0xb8] sm:$0xff] }
 0x1ff   :  { %2760 = vmatmul.f32.gmra.mxu1 %v2364_v30  ;;  %v2365_v22 = vld [vmem:[#allocation3 + $0xb9] sm:$0xff] }
 0x200   :  { %v2811_v9 = vmax.f32 %v2714_v1, 0.0  ;;  %v2470_v1 = vadd.f32 %v6005_v42, %v5779_v16  ;;  %v2473_v16 = vadd.f32 %v6005_v42, %v5802_v15  ;;  %v2367_v15 = vld [vmem:[#allocation3 + $0xc9] sm:$0xff] }
 0x201   :  { %2635 = vmatmul.f32.gmra.mxu0 %v2328_v23 }
 0x202   :  { %v2847_v27 = vsel %vm4983_vm5, %v2811_v9, 0.0  ;;  %v2954_v52 = vld [vmem:[#allocation2 + $0x27] sm:$0xff] }
 0x203   :  { %4243 = vmatmul.msk.f32.gmra.mxu3 %vm4887_vm2, %v2809_v59  ;;  %2883 = vst [vmem:[#allocation2 + $0x30] sm:$0xff] %v2847_v27  ;;  %v2591_v3 = vpop.f32.mrf.mxu0  ;;  %3138 = vmatmul.f32.gmra.mxu2 %v2954_v52  ;;  %v3713_v59 = vld [vmem:[#allocation12 + $0x60] sm:$0xff] }
 0x204   :  { %v6069_v18 = vpop.f32.mrf.mxu3  ;;  %v2592_v33 = vadd.f32 %v2591_v3, %v2467_v50  ;;  %3756 = vmatpush.msra.mxu1 %v3713_v59 }
 0x205   :  { %v2716_v58 = vpop.f32.mrf.mxu1 }
 0x206   :  { %v2717_v6 = vadd.f32 %v2716_v58, %v2592_v33  ;;  %v2366_v33 = vld [vmem:[#allocation3 + $0xc1] sm:$0xff] }
 0x207   :  { %2763 = vmatmul.f32.gmra.mxu1 %v2365_v22  ;;  %v3093_v22 = vld [vmem:[#allocation10 + $0x118] sm:$0xff] }
 0x208   :  { %v2812_v23 = vmax.f32 %v2717_v6, 0.0  ;;  %3372 = vmatpush.msra.mxu0 %v3093_v22 }
 0x209   :  { %2638 = vmatmul.f32.gmra.mxu0 %v2329_v36 }
 0x20a   :  { %v2848_v30 = vsel %vm5033_vm3, %v2812_v23, 0.0  ;;  %v2955_v50 = vld [vmem:[#allocation2 + $0x2f] sm:$0xff] }
 0x20b   :  { %4244 = vmatmul.msk.f32.gmra.mxu3 %vm4932_vm11, %v2810_v31  ;;  %2884 = vst [vmem:[#allocation2 + $0x38] sm:$0xff] %v2848_v30  ;;  %v2594_v52 = vpop.f32.mrf.mxu0  ;;  %3141 = vmatmul.f32.gmra.mxu2 %v2955_v50  ;;  %v3744_v30 = vld [vmem:[#allocation12 + $0x158] sm:$0xff] }
 0x20c   :  { %v6077_v27 = vpop.f32.mrf.mxu3  ;;  %v2595_v3 = vadd.f32 %v2594_v52, %v2470_v1  ;;  %v3728_v1 = vld [vmem:[#allocation12 + $0xd8] sm:$0xff]  ;;  %4007 = vmatpush.msra.mxu3 %v3744_v30 }
 0x20d   :  { %v2719_v37 = vpop.f32.mrf.mxu1  ;;  %3882 = vmatpush.msra.mxu2 %v3728_v1  ;;  %v2332_v1 = vld [vmem:[#allocation3 + $0xd0] sm:$0xff] }
 0x20e   :  { %v2720_v53 = vadd.f32 %v2719_v37, %v2595_v3 }
 0x20f   :  { %2766 = vmatmul.f32.gmra.mxu1 %v2366_v33 }
 0x210   :  { %v2813_v31 = vmax.f32 %v2720_v53, 0.0 }
 0x211   :  { %2641 = vmatmul.f32.gmra.mxu0 %v2330_v51  ;;  %v2476_v51 = vadd.f32 %v6005_v42, %v5833_v14  ;;  %v2479_v14 = vadd.f32 %v6005_v42, %v5853_v12 }
 0x212   :  { %v2849_v58 = vsel %vm5076_vm13, %v2813_v31, 0.0  ;;  %v2956_v59 = vld [vmem:[#allocation2 + $0x37] sm:$0xff] }
 0x213   :  { %4245 = vmatmul.msk.f32.gmra.mxu3 %vm4983_vm5, %v2811_v9  ;;  %2885 = vst [vmem:[#allocation2 + $0x40] sm:$0xff] %v2849_v58  ;;  %v2597_v6 = vpop.f32.mrf.mxu0  ;;  %3144 = vmatmul.f32.gmra.mxu2 %v2956_v59  ;;  %v2331_v9 = vld [vmem:[#allocation3 + $0xc8] sm:$0xff] }
 0x214   :  { %v6085_v36 = vpop.f32.mrf.mxu3  ;;  %v2598_v50 = vadd.f32 %v2597_v6, %v2473_v16  ;;  %v3712_v59 = vld [vmem:[#allocation12 + $0x58] sm:$0xff] }
 0x215   :  { %v2722_v52 = vpop.f32.mrf.mxu1  ;;  %3757 = vmatpush.msra.mxu1 %v3712_v59  ;;  %v2333_v59 = vld [vmem:[#allocation3 + $0xd8] sm:$0xff] }
 0x216   :  { %v2723_v3 = vadd.f32 %v2722_v52, %v2598_v50 }
 0x217   :  { %2769 = vmatmul.f32.gmra.mxu1 %v2367_v15 }
 0x218   :  { %v2814_v37 = vmax.f32 %v2723_v3, 0.0 }
 0x219   :  { %2644 = vmatmul.f32.gmra.mxu0 %v2331_v9 }
 0x21a   :  { %v2850_v53 = vsel %vm7003_vm6, %v2814_v37, 0.0  ;;  %v2957_v33 = vld [vmem:[#allocation2 + $0x3f] sm:$0xff] }
 0x21b   :  { %4246 = vmatmul.msk.f32.gmra.mxu3 %vm5033_vm3, %v2812_v23  ;;  %2886 = vst [vmem:[#allocation2 + $0x48] sm:$0xff] %v2850_v53  ;;  %v2600_v58 = vpop.f32.mrf.mxu0  ;;  %3147 = vmatmul.f32.gmra.mxu2 %v2957_v33  ;;  %v2368_v23 = vld [vmem:[#allocation3 + $0xd1] sm:$0xff]  ;;  %v3727_v53 = vld [vmem:[#allocation12 + $0xd0] sm:$0xff] }
 0x21c   :  { %v2601_v6 = vadd.f32 %v2600_v58, %v2476_v51  ;;  %v3092_v51 = vld [vmem:[#allocation10 + $0x110] sm:$0xff]  ;;  %3883 = vmatpush.msra.mxu2 %v3727_v53 }
 0x21d   :  { %v6093_v16 = vpop.f32.mrf.mxu3  ;;  %v2725_v22 = vpop.f32.mrf.mxu1  ;;  %3373 = vmatpush.msra.mxu0 %v3092_v51  ;;  %v2334_v53 = vld [vmem:[#allocation3 + $0xe0] sm:$0xff] }
 0x21e   :  { %v2726_v30 = vadd.f32 %v2725_v22, %v2601_v6  ;;  %v2369_v6 = vld [vmem:[#allocation3 + $0xd9] sm:$0xff]  ;;  %v2482_v22 = vadd.f32 %v6005_v42, %v5877_v25 }
 0x21f   :  { %2772 = vmatmul.f32.gmra.mxu1 %v2368_v23 }
 0x220   :  { %v2815_v50 = vmax.f32 %v2726_v30, 0.0 }
 0x221   :  { %2647 = vmatmul.f32.gmra.mxu0 %v2332_v1 }
 0x222   :  { %v2851_v52 = vsel %vm7004_vm14, %v2815_v50, 0.0  ;;  %v2958_v9 = vld [vmem:[#allocation2 + $0x47] sm:$0xff] }
 0x223   :  { %4247 = vmatmul.msk.f32.gmra.mxu3 %vm5076_vm13, %v2813_v31  ;;  %2887 = vst [vmem:[#allocation2 + $0x50] sm:$0xff] %v2851_v52  ;;  %v2603_v15 = vpop.f32.mrf.mxu0  ;;  %3150 = vmatmul.f32.gmra.mxu2 %v2958_v9  ;;  %v3743_v52 = vld [vmem:[#allocation12 + $0x150] sm:$0xff] }
 0x224   :  { %v2604_v33 = vadd.f32 %v2603_v15, %v2479_v14  ;;  %v3711_v9 = vld [vmem:[#allocation12 + $0x50] sm:$0xff]  ;;  %4008 = vmatpush.msra.mxu3 %v3743_v52  ;;  %v2335_v52 = vld [vmem:[#allocation3 + $0xe8] sm:$0xff] }
 0x225   :  { %v6101_v3 = vpop.f32.mrf.mxu3  ;;  %v2728_v58 = vpop.f32.mrf.mxu1  ;;  %3758 = vmatpush.msra.mxu1 %v3711_v9 }
 0x226   :  { %v2729_v31 = vadd.f32 %v2728_v58, %v2604_v33  ;;  %v2370_v33 = vld [vmem:[#allocation3 + $0xe1] sm:$0xff]  ;;  %v2485_v58 = vadd.f32 %v6005_v42, %v5901_v48  ;;  %v2488_v48 = vadd.f32 %v6005_v42, %v5926_v32  ;;  %v2372_v32 = vld [vmem:[#allocation3 + $0xf1] sm:$0xff] }
 0x227   :  { %2775 = vmatmul.f32.gmra.mxu1 %v2369_v6 }
 0x228   :  { %v2816_v12 = vmax.f32 %v2729_v31, 0.0 }
 0x229   :  { %2650 = vmatmul.f32.gmra.mxu0 %v2333_v59 }
 0x22a   :  { %v2852_v1 = vsel %vm7005_vm9, %v2816_v12, 0.0  ;;  %v2959_v30 = vld [vmem:[#allocation2 + $0x4f] sm:$0xff] }
 0x22b   :  { %4248 = vmatmul.msk.f32.gmra.mxu3 %vm7003_vm6, %v2814_v37  ;;  %2888 = vst [vmem:[#allocation2 + $0x58] sm:$0xff] %v2852_v1  ;;  %v2606_v14 = vpop.f32.mrf.mxu0  ;;  %3153 = vmatmul.f32.gmra.mxu2 %v2959_v30 }
 0x22c   :  { %v2607_v15 = vadd.f32 %v2606_v14, %v2482_v22  ;;  %v3091_v14 = vld [vmem:[#allocation10 + $0x108] sm:$0xff] }
 0x22d   :  { %v6109_v23 = vpop.f32.mrf.mxu3  ;;  %v2731_v51 = vpop.f32.mrf.mxu1  ;;  %3374 = vmatpush.msra.mxu0 %v3091_v14 }
 0x22e   :  { %v2732_v37 = vadd.f32 %v2731_v51, %v2607_v15 }
 0x22f   :  { %2778 = vmatmul.f32.gmra.mxu1 %v2370_v33 }
 0x230   :  { %v2817_v25 = vmax.f32 %v2732_v37, 0.0 }
 0x231   :  { %2653 = vmatmul.f32.gmra.mxu0 %v2334_v53 }
 0x232   :  { %v2853_v59 = vsel %vm7006_vm4, %v2817_v25, 0.0  ;;  %v2960_v31 = vld [vmem:[#allocation2 + $0x57] sm:$0xff] }
 0x233   :  { %4249 = vmatmul.msk.f32.gmra.mxu3 %vm7004_vm14, %v2815_v50  ;;  %2889 = vst [vmem:[#allocation2 + $0x60] sm:$0xff] %v2853_v59  ;;  %v2609_v22 = vpop.f32.mrf.mxu0  ;;  %3156 = vmatmul.f32.gmra.mxu2 %v2960_v31  ;;  %v2371_v50 = vld [vmem:[#allocation3 + $0xe9] sm:$0xff]  ;;  %v3742_v59 = vld [vmem:[#allocation12 + $0x148] sm:$0xff] }
 0x234   :  { %v2610_v1 = vadd.f32 %v2609_v22, %v2485_v58  ;;  %v3726_v58 = vld [vmem:[#allocation12 + $0xc8] sm:$0xff]  ;;  %4009 = vmatpush.msra.mxu3 %v3742_v59 }
 0x235   :  { %v2734_v30 = vpop.f32.mrf.mxu1  ;;  %v3710_v31 = vld [vmem:[#allocation12 + $0x48] sm:$0xff]  ;;  %3884 = vmatpush.msra.mxu2 %v3726_v58 }
 0x236   :  { %v6117_v6 = vpop.f32.mrf.mxu3  ;;  %v2735_v9 = vadd.f32 %v2734_v30, %v2610_v1  ;;  %3759 = vmatpush.msra.mxu1 %v3710_v31  ;;  %v2337_v58 = vld [vmem:[#allocation3 + $0xf8] sm:$0xff] }
 0x237   :  { %2781 = vmatmul.f32.gmra.mxu1 %v2371_v50  ;;  %v2373_v31 = vld [vmem:[#allocation3 + $0xf9] sm:$0xff] }
 0x238   :  { %v2818_v15 = vmax.f32 %v2735_v9, 0.0 }
 0x239   :  { %2656 = vmatmul.f32.gmra.mxu0 %v2335_v52  ;;  %v2491_v52 = vadd.f32 %v6005_v42, %v5951_v54  ;;  %v2494_v54 = vadd.f32 %v6005_v42, %v5977_v19 }
 0x23a   :  { %v2854_v51 = vsel %vm7007_vm0, %v2818_v15, 0.0  ;;  %v2961_v53 = vld [vmem:[#allocation2 + $0x5f] sm:$0xff] }
 0x23b   :  { %4250 = vmatmul.msk.f32.gmra.mxu3 %vm7005_vm9, %v2816_v12  ;;  %2890 = vst [vmem:[#allocation2 + $0x68] sm:$0xff] %v2854_v51  ;;  %3159 = vmatmul.f32.gmra.mxu2 %v2961_v53  ;;  %v2336_v12 = vld [vmem:[#allocation3 + $0xf0] sm:$0xff]  ;;  %vm7008_vm9 = vnez %v6918_v20 }
 0x23d   :  { %v2737_v1 = vpop.f32.mrf.mxu1 }
 0x23e   :  { %v6125_v37 = vpop.f32.mrf.mxu3  ;;  %v2612_v33 = vpop.f32.mrf.mxu0 }
 0x23f   :  { %v2613_v22 = vadd.f32 %v2612_v33, %v2488_v48  ;;  %2784 = vmatmul.f32.gmra.mxu1 %v2372_v32  ;;  %v3090_v32 = vld [vmem:[#allocation10 + $0x100] sm:$0xff] }
 0x240   :  { %3375 = vmatpush.msra.mxu0 %v3090_v32 }
 0x241   :  { %v2738_v30 = vadd.f32 %v2737_v1, %v2613_v22  ;;  %2659 = vmatmul.f32.gmra.mxu0 %v2336_v12 }
 0x242   :  { %v2962_v50 = vld [vmem:[#allocation2 + $0x67] sm:$0xff] }
 0x243   :  { %v2819_v14 = vmax.f32 %v2738_v30, 0.0  ;;  %4251 = vmatmul.msk.f32.gmra.mxu3 %vm7006_vm4, %v2817_v25  ;;  %3162 = vmatmul.f32.gmra.mxu2 %v2962_v50  ;;  %vm7009_vm4 = vnez %v6921_v13 }
 0x245   :  { %v2855_v9 = vsel %vm7008_vm9, %v2819_v14, 0.0  ;;  %v2740_v33 = vpop.f32.mrf.mxu1 }
 0x246   :  { %2891 = vst [vmem:[#allocation2 + $0x70] sm:$0xff] %v2855_v9  ;;  %v6133_v48 = vpop.f32.mrf.mxu3  ;;  %v2615_v51 = vpop.f32.mrf.mxu0  ;;  %v3741_v9 = vld [vmem:[#allocation12 + $0x140] sm:$0xff] }
 0x247   :  { %v2616_v53 = vadd.f32 %v2615_v51, %v2491_v52  ;;  %2787 = vmatmul.f32.gmra.mxu1 %v2373_v31  ;;  %v3725_v52 = vld [vmem:[#allocation12 + $0xc0] sm:$0xff]  ;;  %4010 = vmatpush.msra.mxu3 %v3741_v9  ;;  %v7011_v9 = vmax.f32 %v5949_v60, 0.0 }
 0x248   :  { %3885 = vmatpush.msra.mxu2 %v3725_v52 }
 0x249   :  { %v2741_v59 = vadd.f32 %v2740_v33, %v2616_v53  ;;  %2662 = vmatmul.f32.gmra.mxu0 %v2337_v58  ;;  %v2338_v53 = vld [vmem:[#allocation3 + $0x100] sm:$0xff] }
 0x24a   :  { %v2374_v33 = vld [vmem:[#allocation3 + $0x101] sm:$0xff] }
 0x24b   :  { %v2820_v25 = vmax.f32 %v2741_v59, 0.0  ;;  %4252 = vmatmul.msk.f32.gmra.mxu3 %vm7007_vm0, %v2818_v15  ;;  %v3709_v15 = vld [vmem:[#allocation12 + $0x40] sm:$0xff]  ;;  %v2497_v59 = vadd.f32 %v6005_v42, %v5994_v55  ;;  %vm7010_vm0 = vnez %v6926_v63 }
 0x24c   :  { %3760 = vmatpush.msra.mxu1 %v3709_v15 }
 0x24d   :  { %v2856_v22 = vsel %vm7009_vm4, %v2820_v25, 0.0  ;;  %v2963_v1 = vld [vmem:[#allocation2 + $0x6f] sm:$0xff]  ;;  %v2743_v51 = vpop.f32.mrf.mxu1 }
 0x24e   :  { %2892 = vst [vmem:[#allocation2 + $0x78] sm:$0xff] %v2856_v22  ;;  %v6141_v12 = vpop.f32.mrf.mxu3  ;;  %v2618_v30 = vpop.f32.mrf.mxu0  ;;  %3165 = vmatmul.f32.gmra.mxu2 %v2963_v1 }
 0x24f   :  { %v2619_v50 = vadd.f32 %v2618_v30, %v2494_v54  ;;  %2790 = vmatmul.f32.gmra.mxu1 %v2374_v33  ;;  %v3740_v33 = vld [vmem:[#allocation12 + $0x138] sm:$0xff] }
 0x250   :  { %4011 = vmatpush.msra.mxu3 %v3740_v33  ;;  %v7016_v33 = vld [vmem:[#allocation19_spill] sm:$0xff] }
 0x251   :  { %v2744_v19 = vadd.f32 %v2743_v51, %v2619_v50  ;;  %2665 = vmatmul.f32.gmra.mxu0 %v2338_v53  ;;  %v2500_v50 = vadd.f32 %v6005_v42, %v6016_v61  ;;  %v2376_v61 = vld [vmem:[#allocation3 + $0x111] sm:$0xff]  ;;  %vm7017_vm14 = vnez %v7016_v33 }
 0x253   :  { %v2821_v58 = vmax.f32 %v2744_v19, 0.0  ;;  %4253 = vmatmul.msk.f32.gmra.mxu3 %vm7008_vm9, %v2819_v14  ;;  %v2375_v14 = vld [vmem:[#allocation3 + $0x109] sm:$0xff]  ;;  %vm7012_vm9 = vnez %v6930_v40 }
 0x254   :  { %v3724_v19 = vld [vmem:[#allocation12 + $0xb8] sm:$0xff] }
 0x255   :  { %v2857_v31 = vsel %vm7010_vm0, %v2821_v58, 0.0  ;;  %v2964_v54 = vld [vmem:[#allocation2 + $0x77] sm:$0xff]  ;;  %v2746_v32 = vpop.f32.mrf.mxu1  ;;  %3886 = vmatpush.msra.mxu2 %v3724_v19  ;;  %v2506_v19 = vadd.f32 %v6005_v42, %v6037_v7 }
 0x256   :  { %2893 = vst [vmem:[#allocation2 + $0x80] sm:$0xff] %v2857_v31  ;;  %v6149_v22 = vpop.f32.mrf.mxu3  ;;  %v2621_v1 = vpop.f32.mrf.mxu0  ;;  %3168 = vmatmul.f32.gmra.mxu2 %v2964_v54  ;;  %v2378_v7 = vld [vmem:[#allocation3 + $0x121] sm:$0xff] }
 0x257   :  { %v2622_v30 = vadd.f32 %v2621_v1, %v2497_v59  ;;  %2793 = vmatmul.f32.gmra.mxu1 %v2375_v14  ;;  %v2503_v1 = vadd.f32 %v6005_v42, %v6031_v34  ;;  %v3708_v14 = vld [vmem:[#allocation12 + $0x38] sm:$0xff]  ;;  %v2377_v34 = vld [vmem:[#allocation3 + $0x119] sm:$0xff] }
 0x258   :  { %3761 = vmatpush.msra.mxu1 %v3708_v14 }
 0x259   :  { %v2747_v52 = vadd.f32 %v2746_v32, %v2622_v30  ;;  %4254 = vmatmul.msk.f32.gmra.mxu0 %vm5955_vm10, %v7011_v9  ;;  %v7013_v30 = vld [vmem:[#allocation18_spill] sm:$0xff] }
 0x25b   :  { %v2822_v55 = vmax.f32 %v2747_v52, 0.0  ;;  %4255 = vmatmul.msk.f32.gmra.mxu3 %vm7009_vm4, %v2820_v25  ;;  %vm7014_vm4 = vnez %v7013_v30 }
 0x25d   :  { %v2858_v51 = vsel %vm7012_vm9, %v2822_v55, 0.0  ;;  %v2965_v15 = vld [vmem:[#allocation2 + $0x7f] sm:$0xff]  ;;  %v2749_v31 = vpop.f32.mrf.mxu1 }
 0x25e   :  { %2894 = vst [vmem:[#allocation2 + $0x88] sm:$0xff] %v2858_v51  ;;  %v6161_v53 = vpop.f32.mrf.mxu3  ;;  %v2624_v60 = vpop.f32.mrf.mxu0  ;;  %3171 = vmatmul.f32.gmra.mxu2 %v2965_v15 }
 0x25f   :  { %v2625_v59 = vadd.f32 %v2624_v60, %v2500_v50  ;;  %2796 = vmatmul.f32.gmra.mxu1 %v2376_v61  ;;  %v3723_v61 = vld [vmem:[#allocation12 + $0xb0] sm:$0xff] }
 0x260   :  { %3887 = vmatpush.msra.mxu2 %v3723_v61 }
 0x261   :  { %v2750_v54 = vadd.f32 %v2749_v31, %v2625_v59  ;;  %4256 = vmatmul.msk.f32.gmra.mxu0 %vm5980_vm1, %v2124_v28 }
 0x263   :  { %v2823_v25 = vmax.f32 %v2750_v54, 0.0  ;;  %4257 = vmatmul.msk.f32.gmra.mxu3 %vm7010_vm0, %v2821_v58  ;;  %vm7015_vm0 = vnez %v7000_v29  ;;  %v6182_v58 = vld [vmem:[%s6721_s6] ss:$0 sm:$0xff] }
 0x265   :  { %v2859_v32 = vsel %vm7014_vm4, %v2823_v25, 0.0  ;;  %v2966_v52 = vld [vmem:[#allocation2 + $0x87] sm:$0xff]  ;;  %v2752_v50 = vpop.f32.mrf.mxu1 }
 0x266   :  { %2895 = vst [vmem:[#allocation2 + $0x90] sm:$0xff] %v2859_v32  ;;  %v6173_v9 = vpop.f32.mrf.mxu3  ;;  %v2627_v57 = vpop.f32.mrf.mxu0  ;;  %3174 = vmatmul.f32.gmra.mxu2 %v2966_v52 }
 0x267   :  { %v2628_v28 = vadd.f32 %v2627_v57, %v2503_v1  ;;  %v3127_v15 = vpop.f32.mrf.mxu2  ;;  %2799 = vmatmul.f32.gmra.mxu1 %v2377_v34 }
 0x269   :  { %v2753_v51 = vadd.f32 %v2752_v50, %v2628_v28  ;;  %4258 = vmatmul.msk.f32.gmra.mxu0 %vm7015_vm0, %v2125_v17  ;;  %v3128_v17 = vadd.f32 %v6182_v58, %v3127_v15  ;;  %v2509_v28 = vadd.f32 %v6005_v42, %v6045_v45  ;;  %v7018_v50 = vld [vmem:[#allocation20_spill] sm:$0xff] }
 0x26b   :  { %v2824_v60 = vmax.f32 %v2753_v51, 0.0  ;;  %4259 = vmatmul.msk.f32.gmra.mxu3 %vm7012_vm9, %v2822_v55  ;;  %vm7019_vm9 = vnez %v7018_v50 }
 0x26d   :  { %v2860_v35 = vsel %vm7017_vm14, %v2824_v60, 0.0  ;;  %v2967_v59 = vld [vmem:[#allocation2 + $0x8f] sm:$0xff]  ;;  %v2755_v52 = vpop.f32.mrf.mxu1 }
 0x26e   :  { %2896 = vst [vmem:[#allocation2 + $0x98] sm:$0xff] %v2860_v35  ;;  %v3252_v31 = vpop.f32.mrf.mxu3  ;;  %v2630_v54 = vpop.f32.mrf.mxu0  ;;  %3177 = vmatmul.f32.gmra.mxu2 %v2967_v59  ;;  %v3707_v35 = vld [vmem:[#allocation12 + $0x30] sm:$0xff] }
 0x26f   :  { %v6191_v1 = vadd.f32 %v3252_v31, %v3128_v17  ;;  %v2631_v32 = vadd.f32 %v2630_v54, %v2506_v19  ;;  %v3130_v57 = vpop.f32.mrf.mxu2  ;;  %2802 = vmatmul.f32.gmra.mxu1 %v2378_v7 }
 0x270   :  { %v3131_v34 = vadd.f32 %v6182_v58, %v3130_v57  ;;  %3762 = vmatpush.msra.mxu1 %v3707_v35 }
 0x271   :  { %v2756_v55 = vadd.f32 %v2755_v52, %v2631_v32  ;;  %4260 = vmatmul.msk.f32.gmra.mxu0 %vm6018_vm12, %v2126_v38  ;;  %v3739_v38 = vld [vmem:[#allocation12 + $0x130] sm:$0xff]  ;;  %v2512_v32 = vadd.f32 %v6005_v42, %v6053_v5  ;;  %v7020_v52 = vld [vmem:[#allocation21_spill] sm:$0xff]  ;;  %v2515_v5 = vadd.f32 %v6005_v42, %v6061_v11 }
 0x272   :  { %4012 = vmatpush.msra.mxu3 %v3739_v38  ;;  %v3024_v11 = vld [vmem:[#allocation2 + $0x19] sm:$0xff] }
 0x273   :  { %v2825_v14 = vmax.f32 %v2756_v55, 0.0  ;;  %4261 = vmatmul.msk.f32.gmra.mxu3 %vm7014_vm4, %v2823_v25  ;;  %v3022_v25 = vld [vmem:[#allocation2 + $0x9] sm:$0xff]  ;;  %vm7021_vm4 = vnez %v7020_v52 }
 0x275   :  { %v2861_v51 = vsel %vm7019_vm9, %v2825_v14, 0.0  ;;  %v2968_v15 = vld [vmem:[#allocation2 + $0x97] sm:$0xff]  ;;  %v2758_v31 = vpop.f32.mrf.mxu1 }
 0x276   :  { %2897 = vst [vmem:[#allocation2 + $0xa0] sm:$0xff] %v2861_v51  ;;  %v3255_v2 = vpop.f32.mrf.mxu3  ;;  %v2633_v19 = vpop.f32.mrf.mxu0  ;;  %3180 = vmatmul.f32.gmra.mxu2 %v2968_v15 }
 0x277   :  { %v6204_v17 = vadd.f32 %v3255_v2, %v3131_v34  ;;  %v2634_v59 = vadd.f32 %v2633_v19, %v2509_v28  ;;  %v3133_v54 = vpop.f32.mrf.mxu2  ;;  %v3023_v19 = vld [vmem:[#allocation2 + $0x11] sm:$0xff] }
 0x278   :  { %v3134_v7 = vadd.f32 %v6182_v58, %v3133_v54 }
 0x279   :  { %v2759_v45 = vadd.f32 %v2758_v31, %v2634_v59  ;;  %3376 = vmatmul.f32.vlgmr.msra.gmra.mxu0 %v3022_v25  ;;  %v7022_v59 = vld [vmem:[#allocation22_spill] sm:$0xff] }
 0x27b   :  { %v2826_v61 = vmax.f32 %v2759_v45, 0.0  ;;  %4262 = vmatmul.msk.f32.gmra.mxu3 %vm7017_vm14, %v2824_v60  ;;  %vm7023_vm14 = vnez %v7022_v59 }
 0x27d   :  { %v2862_v55 = vsel %vm7021_vm4, %v2826_v61, 0.0  ;;  %v2969_v57 = vld [vmem:[#allocation2 + $0x9f] sm:$0xff]  ;;  %v2761_v2 = vpop.f32.mrf.mxu1 }
 0x27e   :  { %2898 = vst [vmem:[#allocation2 + $0xa8] sm:$0xff] %v2862_v55  ;;  %v3258_v28 = vpop.f32.mrf.mxu3  ;;  %v2636_v51 = vpop.f32.mrf.mxu0  ;;  %3183 = vmatmul.f32.gmra.mxu2 %v2969_v57  ;;  %v3722_v55 = vld [vmem:[#allocation12 + $0xa8] sm:$0xff] }
 0x27f   :  { %v6213_v34 = vadd.f32 %v3258_v28, %v3134_v7  ;;  %v2637_v15 = vadd.f32 %v2636_v51, %v2512_v32  ;;  %v3136_v60 = vpop.f32.mrf.mxu2  ;;  %v3738_v7 = vld [vmem:[#allocation12 + $0x128] sm:$0xff]  ;;  %3888 = vmatpush.msra.mxu2 %v3722_v55 }
 0x280   :  { %v3137_v25 = vadd.f32 %v6182_v58, %v3136_v60  ;;  %v3706_v57 = vld [vmem:[#allocation12 + $0x28] sm:$0xff]  ;;  %4013 = vmatpush.msra.mxu3 %v3738_v7 }
 0x281   :  { %v2762_v38 = vadd.f32 %v2761_v2, %v2637_v15  ;;  %3379 = vmatmul.f32.gmra.mxu0 %v3023_v19  ;;  %3763 = vmatpush.msra.mxu1 %v3706_v57  ;;  %v7024_v60 = vld [vmem:[#allocation23_spill] sm:$0xff] }
 0x282   :  { %v3025_v57 = vld [vmem:[#allocation2 + $0x21] sm:$0xff] }
 0x283   :  { %v2827_v35 = vmax.f32 %v2762_v38, 0.0  ;;  %4263 = vmatmul.msk.f32.gmra.mxu3 %vm7019_vm9, %v2825_v14  ;;  %v2518_v38 = vadd.f32 %v6005_v42, %v6069_v18  ;;  %vm7025_vm9 = vnez %v7024_v60  ;;  %v2521_v18 = vadd.f32 %v6005_v42, %v6077_v27  ;;  %v3026_v27 = vld [vmem:[#allocation2 + $0x29] sm:$0xff] }
 0x285   :  { %v2863_v31 = vsel %vm7023_vm14, %v2827_v35, 0.0  ;;  %v2970_v45 = vld [vmem:[#allocation2 + $0xa7] sm:$0xff]  ;;  %v2764_v14 = vpop.f32.mrf.mxu1 }
 0x286   :  { %2899 = vst [vmem:[#allocation2 + $0xb0] sm:$0xff] %v2863_v31  ;;  %v3261_v54 = vpop.f32.mrf.mxu3  ;;  %v2639_v32 = vpop.f32.mrf.mxu0  ;;  %3186 = vmatmul.f32.gmra.mxu2 %v2970_v45 }
 0x287   :  { %v6222_v28 = vadd.f32 %v3261_v54, %v3137_v25  ;;  %v2640_v51 = vadd.f32 %v2639_v32, %v2515_v5  ;;  %v3139_v2 = vpop.f32.mrf.mxu2 }
 0x288   :  { %v3140_v5 = vadd.f32 %v6182_v58, %v3139_v2 }
 0x289   :  { %v2765_v15 = vadd.f32 %v2764_v14, %v2640_v51  ;;  %3382 = vmatmul.f32.gmra.mxu0 %v3024_v11  ;;  %v7026_v11 = vld [vmem:[#allocation24_spill] sm:$0xff] }
 0x28b   :  { %v2828_v19 = vmax.f32 %v2765_v15, 0.0  ;;  %4264 = vmatmul.msk.f32.gmra.mxu3 %vm7021_vm4, %v2826_v61  ;;  %vm7027_vm4 = vnez %v7026_v11 }
 0x28d   :  { %v2864_v31 = vsel %vm7025_vm9, %v2828_v19, 0.0  ;;  %v2971_v25 = vld [vmem:[#allocation2 + $0xaf] sm:$0xff]  ;;  %v2767_v7 = vpop.f32.mrf.mxu1 }
 0x28e   :  { %2900 = vst [vmem:[#allocation2 + $0xb8] sm:$0xff] %v2864_v31  ;;  %v3264_v45 = vpop.f32.mrf.mxu3  ;;  %v2642_v54 = vpop.f32.mrf.mxu0  ;;  %3189 = vmatmul.f32.gmra.mxu2 %v2971_v25  ;;  %v3721_v25 = vld [vmem:[#allocation12 + $0xa0] sm:$0xff] }
 0x28f   :  { %v6231_v32 = vadd.f32 %v3264_v45, %v3140_v5  ;;  %v2643_v55 = vadd.f32 %v2642_v54, %v2518_v38  ;;  %v3142_v61 = vpop.f32.mrf.mxu2  ;;  %v3737_v45 = vld [vmem:[#allocation12 + $0x120] sm:$0xff]  ;;  %3889 = vmatpush.msra.mxu2 %v3721_v25 }
 0x290   :  { %v3143_v2 = vadd.f32 %v6182_v58, %v3142_v61  ;;  %v3705_v54 = vld [vmem:[#allocation12 + $0x20] sm:$0xff]  ;;  %4014 = vmatpush.msra.mxu3 %v3737_v45 }
 0x291   :  { %v2768_v51 = vadd.f32 %v2767_v7, %v2643_v55  ;;  %3385 = vmatmul.f32.gmra.mxu0 %v3025_v57  ;;  %3764 = vmatpush.msra.mxu1 %v3705_v54 }
 0x293   :  { %v2829_v14 = vmax.f32 %v2768_v51, 0.0  ;;  %4265 = vmatmul.msk.f32.gmra.mxu3 %vm7023_vm14, %v2827_v35 }
 0x295   :  { %v2865_v15 = vsel %vm7027_vm4, %v2829_v14, 0.0  ;;  %v2972_v31 = vld [vmem:[#allocation2 + $0xb7] sm:$0xff]  ;;  %v2770_v35 = vpop.f32.mrf.mxu1 }
 0x296   :  { %2901 = vst [vmem:[#allocation2 + $0xc0] sm:$0xff] %v2865_v15  ;;  %v3267_v38 = vpop.f32.mrf.mxu3  ;;  %v2645_v5 = vpop.f32.mrf.mxu0  ;;  %3192 = vmatmul.f32.gmra.mxu2 %v2972_v31  ;;  %v2524_v15 = vadd.f32 %v6005_v42, %v6085_v36  ;;  %v7028_v31 = vld [vmem:[#allocation25_spill] sm:$0xff]  ;;  %v6256_v42 = vld [vmem:[%s6719_s4] ss:$0 sm:$0xff] }
 0x297   :  { %v6240_v55 = vadd.f32 %v3267_v38, %v3143_v2  ;;  %v2646_v7 = vadd.f32 %v2645_v5, %v2521_v18  ;;  %v3145_v51 = vpop.f32.mrf.mxu2  ;;  %vm7029_vm14 = vnez %v7028_v31  ;;  %v2527_v36 = vadd.f32 %v6256_v42, %v6093_v16 }
 0x298   :  { %v3146_v18 = vadd.f32 %v6182_v58, %v3145_v51  ;;  %v7030_v51 = vld [vmem:[#allocation26_spill] sm:$0xff] }
 0x299   :  { %v2771_v57 = vadd.f32 %v2770_v35, %v2646_v7  ;;  %3388 = vmatmul.f32.gmra.mxu0 %v3026_v27  ;;  %v3027_v35 = vld [vmem:[#allocation2 + $0x31] sm:$0xff] }
 0x29b   :  { %v2830_v61 = vmax.f32 %v2771_v57, 0.0  ;;  %4266 = vmatmul.msk.f32.gmra.mxu3 %vm7025_vm9, %v2828_v19  ;;  %vm7031_vm9 = vnez %v7030_v51 }
 0x29d   :  { %v2866_v2 = vsel %vm7029_vm14, %v2830_v61, 0.0  ;;  %v2973_v38 = vld [vmem:[#allocation2 + $0xbf] sm:$0xff]  ;;  %v2773_v7 = vpop.f32.mrf.mxu1 }
 0x29e   :  { %2902 = vst [vmem:[#allocation2 + $0xc8] sm:$0xff] %v2866_v2  ;;  %v3270_v5 = vpop.f32.mrf.mxu3  ;;  %v2648_v25 = vpop.f32.mrf.mxu0  ;;  %3195 = vmatmul.f32.gmra.mxu2 %v2973_v38 }
 0x29f   :  { %v6249_v45 = vadd.f32 %v3270_v5, %v3146_v18  ;;  %v2649_v54 = vadd.f32 %v2648_v25, %v2524_v15  ;;  %v3148_v19 = vpop.f32.mrf.mxu2  ;;  %v3720_v25 = vld [vmem:[#allocation12 + $0x98] sm:$0xff] }
 0x2a0   :  { %v3149_v2 = vadd.f32 %v6182_v58, %v3148_v19  ;;  %3890 = vmatpush.msra.mxu2 %v3720_v25  ;;  %v2530_v19 = vadd.f32 %v6256_v42, %v6101_v3  ;;  %v3704_v25 = vld [vmem:[#allocation12 + $0x18] sm:$0xff] }
 0x2a1   :  { %v2774_v27 = vadd.f32 %v2773_v7, %v2649_v54  ;;  %3391 = vmatmul.f32.gmra.mxu0 %v3027_v35  ;;  %3765 = vmatpush.msra.mxu1 %v3704_v25  ;;  %v3719_v25 = vld [vmem:[#allocation12 + $0x90] sm:$0xff] }
 0x2a2   :  { %3891 = vmatpush.msra.mxu2 %v3719_v25  ;;  %v3735_v25 = vld [vmem:[#allocation12 + $0x110] sm:$0xff] }
 0x2a3   :  { %v2831_v57 = vmax.f32 %v2774_v27, 0.0  ;;  %4267 = vmatmul.msk.f32.gmra.mxu3 %vm7027_vm4, %v2829_v14  ;;  %v3736_v14 = vld [vmem:[#allocation12 + $0x118] sm:$0xff] }
 0x2a4   :  { %4015 = vmatpush.msra.mxu3 %v3736_v14  ;;  %v3028_v27 = vld [vmem:[#allocation2 + $0x39] sm:$0xff] }
 0x2a5   :  { %v2867_v15 = vsel %vm7031_vm9, %v2831_v57, 0.0  ;;  %v2974_v18 = vld [vmem:[#allocation2 + $0xc7] sm:$0xff]  ;;  %v2776_v35 = vpop.f32.mrf.mxu1 }
 0x2a6   :  { %2903 = vst [vmem:[#allocation2 + $0xd0] sm:$0xff] %v2867_v15  ;;  %v3273_v38 = vpop.f32.mrf.mxu3  ;;  %v2651_v5 = vpop.f32.mrf.mxu0  ;;  %3198 = vmatmul.f32.gmra.mxu2 %v2974_v18  ;;  %v7032_v15 = vld [vmem:[#allocation27_spill] sm:$0xff]  ;;  %4016 = vmatpush.msra.mxu3 %v3735_v25 }
 0x2a7   :  { %v6263_v54 = vadd.f32 %v3273_v38, %v3149_v2  ;;  %v2652_v7 = vadd.f32 %v2651_v5, %v2527_v36  ;;  %v3151_v11 = vpop.f32.mrf.mxu2  ;;  %vm7033_vm4 = vnez %v7032_v15 }
 0x2a8   :  { %v3152_v2 = vadd.f32 %v6182_v58, %v3151_v11  ;;  %v2533_v11 = vadd.f32 %v6256_v42, %v6109_v23 }
 0x2a9   :  { %v2777_v16 = vadd.f32 %v2776_v35, %v2652_v7  ;;  %3394 = vmatmul.f32.gmra.mxu0 %v3028_v27 }
 0x2ab   :  { %v2832_v60 = vmax.f32 %v2777_v16, 0.0  ;;  %4268 = vmatmul.msk.f32.gmra.mxu3 %vm7029_vm14, %v2830_v61  ;;  %v3029_v61 = vld [vmem:[#allocation2 + $0x41] sm:$0xff] }
 0x2ad   :  { %v2868_v18 = vsel %vm7033_vm4, %v2832_v60, 0.0  ;;  %v2975_v36 = vld [vmem:[#allocation2 + $0xcf] sm:$0xff]  ;;  %v2779_v35 = vpop.f32.mrf.mxu1 }
 0x2ae   :  { %2904 = vst [vmem:[#allocation2 + $0xd8] sm:$0xff] %v2868_v18  ;;  %v3276_v38 = vpop.f32.mrf.mxu3  ;;  %v2654_v5 = vpop.f32.mrf.mxu0  ;;  %3201 = vmatmul.f32.gmra.mxu2 %v2975_v36  ;;  %v7034_v18 = vld [vmem:[#allocation28_spill] sm:$0xff] }
 0x2af   :  { %v6272_v14 = vadd.f32 %v3276_v38, %v3152_v2  ;;  %v2655_v7 = vadd.f32 %v2654_v5, %v2530_v19  ;;  %v3154_v16 = vpop.f32.mrf.mxu2  ;;  %vm7035_vm14 = vnez %v7034_v18 }
 0x2b0   :  { %v3155_v2 = vadd.f32 %v6182_v58, %v3154_v16  ;;  %v2536_v16 = vadd.f32 %v6256_v42, %v6117_v6 }
 0x2b1   :  { %v2780_v27 = vadd.f32 %v2779_v35, %v2655_v7  ;;  %3397 = vmatmul.f32.gmra.mxu0 %v3029_v61 }
 0x2b3   :  { %v2833_v3 = vmax.f32 %v2780_v27, 0.0  ;;  %4269 = vmatmul.msk.f32.gmra.mxu3 %vm7031_vm9, %v2831_v57  ;;  %v3030_v57 = vld [vmem:[#allocation2 + $0x49] sm:$0xff] }
 0x2b5   :  { %v2869_v36 = vsel %vm7035_vm14, %v2833_v3, 0.0  ;;  %v2976_v38 = vld [vmem:[#allocation2 + $0xd7] sm:$0xff]  ;;  %v2782_v61 = vpop.f32.mrf.mxu1 }
 0x2b6   :  { %2905 = vst [vmem:[#allocation2 + $0xe0] sm:$0xff] %v2869_v36  ;;  %v3279_v19 = vpop.f32.mrf.mxu3  ;;  %v2657_v5 = vpop.f32.mrf.mxu0  ;;  %3204 = vmatmul.f32.gmra.mxu2 %v2976_v38  ;;  %v7036_v36 = vld [vmem:[#allocation29_spill] sm:$0xff] }
 0x2b7   :  { %v6281_v7 = vadd.f32 %v3279_v19, %v3155_v2  ;;  %v2658_v35 = vadd.f32 %v2657_v5, %v2533_v11  ;;  %v3157_v51 = vpop.f32.mrf.mxu2  ;;  %vm7037_vm9 = vnez %v7036_v36 }
 0x2b8   :  { %v3158_v2 = vadd.f32 %v6182_v58, %v3157_v51  ;;  %v2539_v51 = vadd.f32 %v6256_v42, %v6125_v37  ;;  %v2542_v37 = vadd.f32 %v6256_v42, %v6133_v48  ;;  %v3033_v48 = vld [vmem:[#allocation2 + $0x61] sm:$0xff] }
 0x2b9   :  { %v2783_v27 = vadd.f32 %v2782_v61, %v2658_v35  ;;  %3400 = vmatmul.f32.gmra.mxu0 %v3030_v57  ;;  %v3703_v35 = vld [vmem:[#allocation12 + $0x10] sm:$0xff] }
 0x2ba   :  { %3766 = vmatpush.msra.mxu1 %v3703_v35 }
 0x2bb   :  { %v2834_v23 = vmax.f32 %v2783_v27, 0.0  ;;  %4270 = vmatmul.msk.f32.gmra.mxu3 %vm7033_vm4, %v2832_v60  ;;  %v3031_v60 = vld [vmem:[#allocation2 + $0x51] sm:$0xff] }
 0x2bd   :  { %v2870_v38 = vsel %vm7037_vm9, %v2834_v23, 0.0  ;;  %v2977_v19 = vld [vmem:[#allocation2 + $0xdf] sm:$0xff]  ;;  %v2785_v27 = vpop.f32.mrf.mxu1 }
 0x2be   :  { %2906 = vst [vmem:[#allocation2 + $0xe8] sm:$0xff] %v2870_v38  ;;  %v3282_v11 = vpop.f32.mrf.mxu3  ;;  %v2660_v5 = vpop.f32.mrf.mxu0  ;;  %3207 = vmatmul.f32.gmra.mxu2 %v2977_v19  ;;  %v7038_v38 = vld [vmem:[#allocation30_spill] sm:$0xff] }
 0x2bf   :  { %v6290_v61 = vadd.f32 %v3282_v11, %v3158_v2  ;;  %v2661_v57 = vadd.f32 %v2660_v5, %v2536_v16  ;;  %v3160_v15 = vpop.f32.mrf.mxu2  ;;  %vm7039_vm4 = vnez %v7038_v38  ;;  %v3733_v38 = vld [vmem:[#allocation12 + $0x100] sm:$0xff] }
 0x2c0   :  { %v3161_v2 = vadd.f32 %v6182_v58, %v3160_v15  ;;  %v7040_v15 = vld [vmem:[#allocation31_spill] sm:$0xff] }
 0x2c1   :  { %v2786_v6 = vadd.f32 %v2785_v27, %v2661_v57  ;;  %3403 = vmatmul.f32.gmra.mxu0 %v3031_v60  ;;  %v3032_v27 = vld [vmem:[#allocation2 + $0x59] sm:$0xff] }
 0x2c3   :  { %v2835_v31 = vmax.f32 %v2786_v6, 0.0  ;;  %4271 = vmatmul.msk.f32.gmra.mxu3 %vm7035_vm14, %v2833_v3  ;;  %vm7041_vm14 = vnez %v7040_v15 }
 0x2c5   :  { %v2871_v19 = vsel %vm7039_vm4, %v2835_v31, 0.0  ;;  %v2978_v16 = vld [vmem:[#allocation2 + $0xe7] sm:$0xff]  ;;  %v2788_v57 = vpop.f32.mrf.mxu1 }
 0x2c6   :  { %2907 = vst [vmem:[#allocation2 + $0xf0] sm:$0xff] %v2871_v19  ;;  %v3285_v11 = vpop.f32.mrf.mxu3  ;;  %v2663_v5 = vpop.f32.mrf.mxu0  ;;  %3210 = vmatmul.f32.gmra.mxu2 %v2978_v16 }
 0x2c7   :  { %v6299_v25 = vadd.f32 %v3285_v11, %v3161_v2  ;;  %v2664_v35 = vadd.f32 %v2663_v5, %v2539_v51  ;;  %v3163_v3 = vpop.f32.mrf.mxu2  ;;  %v3718_v5 = vld [vmem:[#allocation12 + $0x88] sm:$0xff] }
 0x2c8   :  { %v3164_v16 = vadd.f32 %v6182_v58, %v3163_v3  ;;  %3892 = vmatpush.msra.mxu2 %v3718_v5 }
 0x2c9   :  { %v2789_v60 = vadd.f32 %v2788_v57, %v2664_v35  ;;  %3406 = vmatmul.f32.gmra.mxu0 %v3032_v27  ;;  %v3734_v35 = vld [vmem:[#allocation12 + $0x108] sm:$0xff] }
 0x2ca   :  { %v3702_v57 = vld [vmem:[#allocation12 + $0x8] sm:$0xff]  ;;  %4017 = vmatpush.msra.mxu3 %v3734_v35 }
 0x2cb   :  { %v2836_v6 = vmax.f32 %v2789_v60, 0.0  ;;  %4272 = vmatmul.msk.f32.gmra.mxu3 %vm7037_vm9, %v2834_v23  ;;  %3767 = vmatpush.msra.mxu1 %v3702_v57 }
 0x2cc   :  { %4018 = vmatpush.msra.mxu3 %v3733_v38  ;;  %v2551_v38 = vadd.f32 %v6256_v42, %v6161_v53  ;;  %v2554_v53 = vadd.f32 %v6256_v42, %v6173_v9 }
 0x2cd   :  { %v2872_v19 = vsel %vm7041_vm14, %v2836_v6, 0.0  ;;  %v2979_v2 = vld [vmem:[#allocation2 + $0xef] sm:$0xff]  ;;  %v2791_v23 = vpop.f32.mrf.mxu1 }
 0x2ce   :  { %2908 = vst [vmem:[#allocation2 + $0xf8] sm:$0xff] %v2872_v19  ;;  %v3288_v51 = vpop.f32.mrf.mxu3  ;;  %v2666_v11 = vpop.f32.mrf.mxu0  ;;  %3213 = vmatmul.f32.gmra.mxu2 %v2979_v2  ;;  %v2545_v19 = vadd.f32 %v6256_v42, %v6141_v12  ;;  %v7042_v2 = vld [vmem:[#allocation32_spill] sm:$0xff]  ;;  %v3717_v12 = vld [vmem:[#allocation12 + $0x80] sm:$0xff] }
 0x2cf   :  { %v6308_v27 = vadd.f32 %v3288_v51, %v3164_v16  ;;  %v2667_v60 = vadd.f32 %v2666_v11, %v2542_v37  ;;  %vm7043_vm9 = vnez %v7042_v2  ;;  %3893 = vmatpush.msra.mxu2 %v3717_v12 }
 0x2d1   :  { %v2792_v36 = vadd.f32 %v2791_v23, %v2667_v60  ;;  %v3166_v18 = vpop.f32.mrf.mxu2  ;;  %3409 = vmatmul.f32.gmra.mxu0 %v3033_v48  ;;  %v3034_v60 = vld [vmem:[#allocation2 + $0x69] sm:$0xff] }
 0x2d2   :  { %v3167_v37 = vadd.f32 %v6182_v58, %v3166_v18  ;;  %v3701_v18 = vld [vmem:[#allocation12] sm:$0xff] }
 0x2d3   :  { %v2837_v3 = vmax.f32 %v2792_v36, 0.0  ;;  %4273 = vmatmul.msk.f32.gmra.mxu3 %vm7039_vm4, %v2835_v31  ;;  %3768 = vmatpush.msra.mxu1 %v3701_v18 }
 0x2d5   :  { %v2873_v16 = vsel %vm7043_vm9, %v2837_v3, 0.0  ;;  %v2980_v51 = vld [vmem:[#allocation2 + $0xf7] sm:$0xff]  ;;  %v2794_v36 = vpop.f32.mrf.mxu1 }
 0x2d6   :  { %2909 = vst [vmem:[#allocation2 + $0x100] sm:$0xff] %v2873_v16  ;;  %v3291_v11 = vpop.f32.mrf.mxu3  ;;  %v2669_v5 = vpop.f32.mrf.mxu0  ;;  %3216 = vmatmul.f32.gmra.mxu2 %v2980_v51  ;;  %v2548_v16 = vadd.f32 %v6256_v42, %v6149_v22 }
 0x2d7   :  { %v6317_v35 = vadd.f32 %v3291_v11, %v3167_v37  ;;  %v2670_v57 = vadd.f32 %v2669_v5, %v2545_v19 }
 0x2d9   :  { %v2795_v23 = vadd.f32 %v2794_v36, %v2670_v57  ;;  %v3169_v31 = vpop.f32.mrf.mxu2  ;;  %3412 = vmatmul.f32.gmra.mxu0 %v3034_v60  ;;  %v3035_v60 = vld [vmem:[#allocation2 + $0x71] sm:$0xff] }
 0x2da   :  { %v3170_v19 = vadd.f32 %v6182_v58, %v3169_v31 }
 0x2db   :  { %v2838_v48 = vmax.f32 %v2795_v23, 0.0  ;;  %4274 = vmatmul.msk.f32.gmra.mxu3 %vm7041_vm14, %v2836_v6  ;;  %vm7049_vm14 = vnez %v6921_v13 }
 0x2dd   :  { %v2874_v37 = vsel %vm5955_vm10, %v2838_v48, 0.0  ;;  %v2981_v51 = vld [vmem:[#allocation2 + $0xff] sm:$0xff]  ;;  %v2797_v36 = vpop.f32.mrf.mxu1 }
 0x2de   :  { %2910 = vst [vmem:[#allocation2 + $0x108] sm:$0xff] %v2874_v37  ;;  %v3294_v11 = vpop.f32.mrf.mxu3  ;;  %v2672_v5 = vpop.f32.mrf.mxu0  ;;  %3219 = vmatmul.f32.gmra.mxu2 %v2981_v51 }
 0x2df   :  { %v6326_v6 = vadd.f32 %v3294_v11, %v3170_v19  ;;  %v2673_v57 = vadd.f32 %v2672_v5, %v2548_v16  ;;  %v3036_v5 = vld [vmem:[#allocation2 + $0x79] sm:$0xff] }
 0x2e1   :  { %v2798_v23 = vadd.f32 %v2797_v36, %v2673_v57  ;;  %v3172_v22 = vpop.f32.mrf.mxu2  ;;  %3415 = vmatmul.f32.gmra.mxu0 %v3035_v60 }
 0x2e2   :  { %v3173_v12 = vadd.f32 %v6182_v58, %v3172_v22 }
 0x2e3   :  { %v2839_v15 = vmax.f32 %v2798_v23, 0.0  ;;  %4275 = vmatmul.msk.f32.gmra.mxu3 %vm7043_vm9, %v2837_v3  ;;  %vm7048_vm9 = vnez %v6918_v20 }
 0x2e5   :  { %v2875_v31 = vsel %vm5980_vm1, %v2839_v15, 0.0  ;;  %v2982_v18 = vld [vmem:[#allocation2 + $0x107] sm:$0xff]  ;;  %v2800_v11 = vpop.f32.mrf.mxu1 }
 0x2e6   :  { %2911 = vst [vmem:[#allocation2 + $0x110] sm:$0xff] %v2875_v31  ;;  %v3297_v16 = vpop.f32.mrf.mxu3  ;;  %v2675_v37 = vpop.f32.mrf.mxu0  ;;  %3222 = vmatmul.f32.gmra.mxu2 %v2982_v18 }
 0x2e7   :  { %v6335_v19 = vadd.f32 %v3297_v16, %v3173_v12  ;;  %v2676_v51 = vadd.f32 %v2675_v37, %v2551_v38  ;;  %v3037_v37 = vld [vmem:[#allocation2 + $0x81] sm:$0xff] }
 0x2e9   :  { %v2801_v57 = vadd.f32 %v2800_v11, %v2676_v51  ;;  %v3175_v3 = vpop.f32.mrf.mxu2  ;;  %3418 = vmatmul.f32.gmra.mxu0 %v3036_v5 }
 0x2ea   :  { %v3176_v23 = vadd.f32 %v6182_v58, %v3175_v3 }
 0x2eb   :  { %v2840_v36 = vmax.f32 %v2801_v57, 0.0  ;;  %4276 = vmatmul.msk.f32.gmra.mxu3 %vm5955_vm10, %v2838_v48  ;;  %vm7047_vm10 = vnez %v6913_v41 }
 0x2ed   :  { %v2876_v60 = vsel %vm7015_vm0, %v2840_v36, 0.0  ;;  %v2983_v22 = vld [vmem:[#allocation2 + $0x10f] sm:$0xff]  ;;  %v2803_v16 = vpop.f32.mrf.mxu1 }
 0x2ee   :  { %2912 = vst [vmem:[#allocation2 + $0x118] sm:$0xff] %v2876_v60  ;;  %v3300_v38 = vpop.f32.mrf.mxu3  ;;  %v2678_v31 = vpop.f32.mrf.mxu0  ;;  %3225 = vmatmul.f32.gmra.mxu2 %v2983_v22  ;;  %v3038_v22 = vld [vmem:[#allocation2 + $0x89] sm:$0xff] }
 0x2ef   :  { %v6344_v12 = vadd.f32 %v3300_v38, %v3176_v23  ;;  %v2679_v18 = vadd.f32 %v2678_v31, %v2554_v53  ;;  %v2914_v23 = vld [vmem:[#allocation3 + $0x8] sm:$0xff] }
 0x2f1   :  { %v2804_v51 = vadd.f32 %v2803_v16, %v2679_v18  ;;  %v3178_v48 = vpop.f32.mrf.mxu2  ;;  %3421 = vmatmul.f32.gmra.mxu0 %v3037_v37 }
 0x2f2   :  { %v3179_v42 = vadd.f32 %v6182_v58, %v3178_v48 }
 0x2f3   :  { %v2841_v11 = vmax.f32 %v2804_v51, 0.0  ;;  %4277 = vmatmul.msk.f32.gmra.mxu3 %vm5980_vm1, %v2839_v15  ;;  %vm7046_vm1 = vnez %v6903_v46 }
 0x2f5   :  { %v2877_v9 = vsel %vm6018_vm12, %v2841_v11, 0.0  ;;  %v2984_v5 = vld [vmem:[#allocation2 + $0x117] sm:$0xff] }
 0x2f6   :  { %2913 = vst [vmem:[#allocation2 + $0x120] sm:$0xff] %v2877_v9  ;;  %v3303_v57 = vpop.f32.mrf.mxu3  ;;  %3228 = vmatmul.f32.gmra.mxu2 %v2984_v5  ;;  %v3377_v3 = vpop.f32.mrf.mxu0  ;;  %v2915_v9 = vld [vmem:[#allocation3 + $0x10] sm:$0xff] }
 0x2f7   :  { %v6351_v53 = vadd.f32 %v3303_v57, %v3179_v42  ;;  %v3378_v60 = vadd.f32 %v3377_v3, %v6191_v1  ;;  %v3039_v42 = vld [vmem:[#allocation2 + $0x91] sm:$0xff] }
 0x2f9   :  { %v3485_v38 = vadd.f32 %v3378_v60, %v2914_v23  ;;  %v3181_v31 = vpop.f32.mrf.mxu2  ;;  %3424 = vmatmul.f32.gmra.mxu0 %v3038_v22 }
 0x2fa   :  { %v3182_v18 = vadd.f32 %v6182_v58, %v3181_v31 }
 0x2fb   :  { %v3521_v15 = vsel %vm4738_vm8, %v3485_v38, 0.0  ;;  %4278 = vmatmul.msk.f32.gmra.mxu3 %vm7015_vm0, %v2840_v36  ;;  %vm7045_vm0 = vnez %v6901_v0 }
 0x2fc   :  { %3557 = vst [vmem:[#allocation3 + $0x8] sm:$0xff] %v3521_v15  ;;  %v2916_v15 = vld [vmem:[#allocation3 + $0x18] sm:$0xff] }
 0x2fd   :  { %v2985_v16 = vld [vmem:[#allocation2 + $0x11f] sm:$0xff] }
 0x2fe   :  { %v3306_v37 = vpop.f32.mrf.mxu3  ;;  %3231 = vmatmul.f32.gmra.mxu2 %v2985_v16  ;;  %v3380_v51 = vpop.f32.mrf.mxu0 }
 0x2ff   :  { %v6359_v48 = vadd.f32 %v3306_v37, %v3182_v18  ;;  %v3381_v1 = vadd.f32 %v3380_v51, %v6204_v17  ;;  %v3040_v18 = vld [vmem:[#allocation2 + $0x99] sm:$0xff] }
 0x301   :  { %v3486_v5 = vadd.f32 %v3381_v1, %v2915_v9  ;;  %v3184_v57 = vpop.f32.mrf.mxu2  ;;  %3427 = vmatmul.f32.gmra.mxu0 %v3039_v42 }
 0x302   :  { %v3185_v60 = vadd.f32 %v6182_v58, %v3184_v57 }
 0x303   :  { %v3522_v3 = vsel %vm4778_vm15, %v3486_v5, 0.0  ;;  %4279 = vmatmul.msk.f32.gmra.mxu3 %vm6018_vm12, %v2841_v11  ;;  %v3593_v36 = vld [vmem:[#allocation3 + $0x7] sm:$0xff]  ;;  %vm7044_vm12 = vnez %v6894_v56 }
 0x304   :  { %3558 = vst [vmem:[#allocation3 + $0x10] sm:$0xff] %v3522_v3  ;;  %3769 = vmatmul.f32.vlgmr.msra.gmra.mxu1 %v3593_v36  ;;  %v2917_v3 = vld [vmem:[#allocation3 + $0x20] sm:$0xff]  ;;  %v3041_v36 = vld [vmem:[#allocation2 + $0xa1] sm:$0xff] }
 0x306   :  { %v3309_v23 = vpop.f32.mrf.mxu3  ;;  %v3383_v22 = vpop.f32.mrf.mxu0  ;;  %4280 = vmatmul.msk.f32.vlgmr.msra.gmra.mxu2 %vm4738_vm8, %v3485_v38 }
 0x307   :  { %v6369_v17 = vadd.f32 %v3309_v23, %v3185_v60  ;;  %v3384_v31 = vadd.f32 %v3383_v22, %v6213_v34 }
 0x309   :  { %v3487_v16 = vadd.f32 %v3384_v31, %v2916_v15  ;;  %v3187_v37 = vpop.f32.mrf.mxu2  ;;  %3430 = vmatmul.f32.gmra.mxu0 %v3040_v18 }
 0x30a   :  { %v3188_v9 = vadd.f32 %v6182_v58, %v3187_v37 }
 0x30b   :  { %v3523_v11 = vsel %vm4837_vm7, %v3487_v16, 0.0  ;;  %v3594_v51 = vld [vmem:[#allocation3 + $0xf] sm:$0xff] }
 0x30c   :  { %v3665_v1 = vld [vmem:[#allocation3 + $0x9] sm:$0xff]  ;;  %3559 = vst [vmem:[#allocation3 + $0x18] sm:$0xff] %v3523_v11  ;;  %3772 = vmatmul.f32.gmra.mxu1 %v3594_v51 }
 0x30d   :  { %4019 = vmatmul.f32.vlgmr.msra.gmra.mxu3 %v3665_v1  ;;  %v2918_v51 = vld [vmem:[#allocation3 + $0x28] sm:$0xff]  ;;  %v3042_v1 = vld [vmem:[#allocation2 + $0xa9] sm:$0xff] }
 0x30e   :  { %v3312_v38 = vpop.f32.mrf.mxu3  ;;  %v3386_v42 = vpop.f32.mrf.mxu0  ;;  %4281 = vmatmul.msk.f32.gmra.mxu2 %vm4778_vm15, %v3486_v5 }
 0x30f   :  { %v6377_v34 = vadd.f32 %v3312_v38, %v3188_v9  ;;  %v3387_v57 = vadd.f32 %v3386_v42, %v6222_v28 }
 0x311   :  { %v3488_v60 = vadd.f32 %v3387_v57, %v2917_v3  ;;  %v3190_v23 = vpop.f32.mrf.mxu2  ;;  %3433 = vmatmul.f32.gmra.mxu0 %v3041_v36 }
 0x312   :  { %v3191_v18 = vadd.f32 %v6182_v58, %v3190_v23 }
 0x313   :  { %v3524_v22 = vsel %vm4887_vm2, %v3488_v60, 0.0  ;;  %v3595_v31 = vld [vmem:[#allocation3 + $0x17] sm:$0xff] }
 0x314   :  { %v3666_v15 = vld [vmem:[#allocation3 + $0x11] sm:$0xff]  ;;  %3560 = vst [vmem:[#allocation3 + $0x20] sm:$0xff] %v3524_v22  ;;  %3775 = vmatmul.f32.gmra.mxu1 %v3595_v31 }
 0x315   :  { %4022 = vmatmul.f32.gmra.mxu3 %v3666_v15  ;;  %v2919_v31 = vld [vmem:[#allocation3 + $0x30] sm:$0xff]  ;;  %v3043_v15 = vld [vmem:[#allocation2 + $0xb1] sm:$0xff] }
 0x316   :  { %v3315_v5 = vpop.f32.mrf.mxu3  ;;  %v3389_v37 = vpop.f32.mrf.mxu0  ;;  %4282 = vmatmul.msk.f32.gmra.mxu2 %vm4837_vm7, %v3487_v16 }
 0x317   :  { %v6385_v28 = vadd.f32 %v3315_v5, %v3191_v18  ;;  %v3390_v11 = vadd.f32 %v3389_v37, %v6231_v32 }
 0x319   :  { %v3489_v9 = vadd.f32 %v3390_v11, %v2918_v51  ;;  %v3193_v38 = vpop.f32.mrf.mxu2  ;;  %3436 = vmatmul.f32.gmra.mxu0 %v3042_v1 }
 0x31a   :  { %v3194_v36 = vadd.f32 %v6182_v58, %v3193_v38 }
 0x31b   :  { %v3525_v42 = vsel %vm4932_vm11, %v3489_v9, 0.0  ;;  %v3596_v57 = vld [vmem:[#allocation3 + $0x1f] sm:$0xff] }
 0x31c   :  { %v3667_v3 = vld [vmem:[#allocation3 + $0x19] sm:$0xff]  ;;  %3561 = vst [vmem:[#allocation3 + $0x28] sm:$0xff] %v3525_v42  ;;  %3778 = vmatmul.f32.gmra.mxu1 %v3596_v57 }
 0x31d   :  { %4025 = vmatmul.f32.gmra.mxu3 %v3667_v3  ;;  %v2920_v57 = vld [vmem:[#allocation3 + $0x38] sm:$0xff]  ;;  %v3044_v3 = vld [vmem:[#allocation2 + $0xb9] sm:$0xff] }
 0x31e   :  { %v3318_v16 = vpop.f32.mrf.mxu3  ;;  %v3392_v23 = vpop.f32.mrf.mxu0  ;;  %4283 = vmatmul.msk.f32.gmra.mxu2 %vm4887_vm2, %v3488_v60 }
 0x31f   :  { %v6393_v32 = vadd.f32 %v3318_v16, %v3194_v36  ;;  %v3393_v22 = vadd.f32 %v3392_v23, %v6240_v55 }
 0x321   :  { %v3490_v18 = vadd.f32 %v3393_v22, %v2919_v31  ;;  %v3196_v5 = vpop.f32.mrf.mxu2  ;;  %3439 = vmatmul.f32.gmra.mxu0 %v3043_v15 }
 0x322   :  { %v3197_v1 = vadd.f32 %v6182_v58, %v3196_v5 }
 0x323   :  { %v3526_v37 = vsel %vm4983_vm5, %v3490_v18, 0.0  ;;  %v3597_v11 = vld [vmem:[#allocation3 + $0x27] sm:$0xff] }
 0x324   :  { %v3668_v51 = vld [vmem:[#allocation3 + $0x21] sm:$0xff]  ;;  %3562 = vst [vmem:[#allocation3 + $0x30] sm:$0xff] %v3526_v37  ;;  %3781 = vmatmul.f32.gmra.mxu1 %v3597_v11 }
 0x325   :  { %4028 = vmatmul.f32.gmra.mxu3 %v3668_v51  ;;  %v2921_v11 = vld [vmem:[#allocation3 + $0x40] sm:$0xff]  ;;  %v3045_v51 = vld [vmem:[#allocation2 + $0xc1] sm:$0xff] }
 0x326   :  { %v3321_v60 = vpop.f32.mrf.mxu3  ;;  %v3395_v38 = vpop.f32.mrf.mxu0  ;;  %4284 = vmatmul.msk.f32.gmra.mxu2 %vm4932_vm11, %v3489_v9 }
 0x327   :  { %v6401_v55 = vadd.f32 %v3321_v60, %v3197_v1  ;;  %v3396_v42 = vadd.f32 %v3395_v38, %v6249_v45 }
 0x329   :  { %v3491_v36 = vadd.f32 %v3396_v42, %v2920_v57  ;;  %v3199_v16 = vpop.f32.mrf.mxu2  ;;  %3442 = vmatmul.f32.gmra.mxu0 %v3044_v3 }
 0x32a   :  { %v3200_v15 = vadd.f32 %v6182_v58, %v3199_v16 }
 0x32b   :  { %v3527_v23 = vsel %vm5033_vm3, %v3491_v36, 0.0  ;;  %v3598_v22 = vld [vmem:[#allocation3 + $0x2f] sm:$0xff] }
 0x32c   :  { %v3669_v31 = vld [vmem:[#allocation3 + $0x29] sm:$0xff]  ;;  %3563 = vst [vmem:[#allocation3 + $0x38] sm:$0xff] %v3527_v23  ;;  %3784 = vmatmul.f32.gmra.mxu1 %v3598_v22 }
 0x32d   :  { %4031 = vmatmul.f32.gmra.mxu3 %v3669_v31  ;;  %v2922_v22 = vld [vmem:[#allocation3 + $0x48] sm:$0xff]  ;;  %v3046_v31 = vld [vmem:[#allocation2 + $0xc9] sm:$0xff] }
 0x32e   :  { %v3324_v9 = vpop.f32.mrf.mxu3  ;;  %v3398_v5 = vpop.f32.mrf.mxu0  ;;  %4285 = vmatmul.msk.f32.gmra.mxu2 %vm4983_vm5, %v3490_v18 }
 0x32f   :  { %v6409_v45 = vadd.f32 %v3324_v9, %v3200_v15  ;;  %v3399_v37 = vadd.f32 %v3398_v5, %v6263_v54 }
 0x331   :  { %v3492_v1 = vadd.f32 %v3399_v37, %v2921_v11  ;;  %v3202_v60 = vpop.f32.mrf.mxu2  ;;  %3445 = vmatmul.f32.gmra.mxu0 %v3045_v51 }
 0x332   :  { %v3203_v3 = vadd.f32 %v6182_v58, %v3202_v60 }
 0x333   :  { %v3528_v38 = vsel %vm5076_vm13, %v3492_v1, 0.0  ;;  %v3599_v42 = vld [vmem:[#allocation3 + $0x37] sm:$0xff] }
 0x334   :  { %v3670_v57 = vld [vmem:[#allocation3 + $0x31] sm:$0xff]  ;;  %3564 = vst [vmem:[#allocation3 + $0x40] sm:$0xff] %v3528_v38  ;;  %3787 = vmatmul.f32.gmra.mxu1 %v3599_v42 }
 0x335   :  { %4034 = vmatmul.f32.gmra.mxu3 %v3670_v57  ;;  %v2923_v42 = vld [vmem:[#allocation3 + $0x50] sm:$0xff]  ;;  %v3047_v57 = vld [vmem:[#allocation2 + $0xd1] sm:$0xff] }
 0x336   :  { %v3327_v18 = vpop.f32.mrf.mxu3  ;;  %v3401_v16 = vpop.f32.mrf.mxu0  ;;  %4286 = vmatmul.msk.f32.gmra.mxu2 %vm5033_vm3, %v3491_v36 }
 0x337   :  { %v6417_v54 = vadd.f32 %v3327_v18, %v3203_v3  ;;  %v3402_v23 = vadd.f32 %v3401_v16, %v6272_v14 }
 0x339   :  { %v3493_v15 = vadd.f32 %v3402_v23, %v2922_v22  ;;  %v3205_v9 = vpop.f32.mrf.mxu2  ;;  %3448 = vmatmul.f32.gmra.mxu0 %v3046_v31 }
 0x33a   :  { %v3206_v51 = vadd.f32 %v6182_v58, %v3205_v9 }
 0x33b   :  { %v3529_v5 = vsel %vm7003_vm6, %v3493_v15, 0.0  ;;  %v3600_v37 = vld [vmem:[#allocation3 + $0x3f] sm:$0xff] }
 0x33c   :  { %v3671_v11 = vld [vmem:[#allocation3 + $0x39] sm:$0xff]  ;;  %3565 = vst [vmem:[#allocation3 + $0x48] sm:$0xff] %v3529_v5  ;;  %3790 = vmatmul.f32.gmra.mxu1 %v3600_v37 }
 0x33d   :  { %4037 = vmatmul.f32.gmra.mxu3 %v3671_v11  ;;  %v2924_v37 = vld [vmem:[#allocation3 + $0x58] sm:$0xff]  ;;  %v3048_v11 = vld [vmem:[#allocation2 + $0xd9] sm:$0xff] }
 0x33e   :  { %v3330_v36 = vpop.f32.mrf.mxu3  ;;  %v3404_v60 = vpop.f32.mrf.mxu0  ;;  %4287 = vmatmul.msk.f32.gmra.mxu2 %vm5076_vm13, %v3492_v1 }
 0x33f   :  { %v6425_v14 = vadd.f32 %v3330_v36, %v3206_v51  ;;  %v3405_v38 = vadd.f32 %v3404_v60, %v6281_v7 }
 0x341   :  { %v3494_v3 = vadd.f32 %v3405_v38, %v2923_v42  ;;  %v3208_v18 = vpop.f32.mrf.mxu2  ;;  %3451 = vmatmul.f32.gmra.mxu0 %v3047_v57 }
 0x342   :  { %v3209_v31 = vadd.f32 %v6182_v58, %v3208_v18  ;;  %v6441_v58 = vld [vmem:[%s6721_s6] ss:$0 sm:$0xff] }
 0x343   :  { %v3530_v16 = vsel %vm7044_vm12, %v3494_v3, 0.0  ;;  %v3601_v23 = vld [vmem:[#allocation3 + $0x47] sm:$0xff] }
 0x344   :  { %v3672_v22 = vld [vmem:[#allocation3 + $0x41] sm:$0xff]  ;;  %3566 = vst [vmem:[#allocation3 + $0x50] sm:$0xff] %v3530_v16  ;;  %3793 = vmatmul.f32.gmra.mxu1 %v3601_v23 }
 0x345   :  { %4040 = vmatmul.f32.gmra.mxu3 %v3672_v22  ;;  %v2925_v23 = vld [vmem:[#allocation3 + $0x60] sm:$0xff]  ;;  %v3049_v22 = vld [vmem:[#allocation2 + $0xe1] sm:$0xff] }
 0x346   :  { %v3333_v1 = vpop.f32.mrf.mxu3  ;;  %v3407_v9 = vpop.f32.mrf.mxu0  ;;  %4288 = vmatmul.msk.f32.gmra.mxu2 %vm7003_vm6, %v3493_v15 }
 0x347   :  { %v6433_v7 = vadd.f32 %v3333_v1, %v3209_v31  ;;  %v3408_v5 = vadd.f32 %v3407_v9, %v6290_v61 }
 0x349   :  { %v3495_v51 = vadd.f32 %v3408_v5, %v2924_v37  ;;  %v3211_v36 = vpop.f32.mrf.mxu2  ;;  %3454 = vmatmul.f32.gmra.mxu0 %v3048_v11 }
 0x34a   :  { %v3212_v61 = vadd.f32 %v6441_v58, %v3211_v36 }
 0x34b   :  { %v3531_v60 = vsel %vm7045_vm0, %v3495_v51, 0.0  ;;  %v3602_v38 = vld [vmem:[#allocation3 + $0x4f] sm:$0xff] }
 0x34c   :  { %v3673_v42 = vld [vmem:[#allocation3 + $0x49] sm:$0xff]  ;;  %3567 = vst [vmem:[#allocation3 + $0x58] sm:$0xff] %v3531_v60  ;;  %3796 = vmatmul.f32.gmra.mxu1 %v3602_v38 }
 0x34d   :  { %4043 = vmatmul.f32.gmra.mxu3 %v3673_v42  ;;  %v2926_v38 = vld [vmem:[#allocation3 + $0x68] sm:$0xff]  ;;  %v3050_v42 = vld [vmem:[#allocation2 + $0xe9] sm:$0xff] }
 0x34e   :  { %v3336_v15 = vpop.f32.mrf.mxu3  ;;  %v3410_v57 = vpop.f32.mrf.mxu0  ;;  %4289 = vmatmul.msk.f32.gmra.mxu2 %vm7044_vm12, %v3494_v3 }
 0x34f   :  { %v6446_v18 = vadd.f32 %v3336_v15, %v3212_v61  ;;  %v3411_v16 = vadd.f32 %v3410_v57, %v6299_v25 }
 0x351   :  { %v3496_v31 = vadd.f32 %v3411_v16, %v2925_v23  ;;  %v3214_v1 = vpop.f32.mrf.mxu2  ;;  %3457 = vmatmul.f32.gmra.mxu0 %v3049_v22 }
 0x352   :  { %v3215_v11 = vadd.f32 %v6441_v58, %v3214_v1 }
 0x353   :  { %v3532_v9 = vsel %vm7046_vm1, %v3496_v31, 0.0  ;;  %v3603_v5 = vld [vmem:[#allocation3 + $0x57] sm:$0xff] }
 0x354   :  { %v3674_v37 = vld [vmem:[#allocation3 + $0x51] sm:$0xff]  ;;  %3568 = vst [vmem:[#allocation3 + $0x60] sm:$0xff] %v3532_v9  ;;  %3799 = vmatmul.f32.gmra.mxu1 %v3603_v5 }
 0x355   :  { %4046 = vmatmul.f32.gmra.mxu3 %v3674_v37  ;;  %v2927_v5 = vld [vmem:[#allocation3 + $0x70] sm:$0xff]  ;;  %v3051_v37 = vld [vmem:[#allocation2 + $0xf1] sm:$0xff] }
 0x356   :  { %v3339_v3 = vpop.f32.mrf.mxu3  ;;  %v3413_v36 = vpop.f32.mrf.mxu0  ;;  %4290 = vmatmul.msk.f32.gmra.mxu2 %vm7045_vm0, %v3495_v51 }
 0x357   :  { %v6454_v25 = vadd.f32 %v3339_v3, %v3215_v11  ;;  %v3414_v60 = vadd.f32 %v3413_v36, %v6308_v27 }
 0x359   :  { %v3497_v61 = vadd.f32 %v3414_v60, %v2926_v38  ;;  %v3217_v15 = vpop.f32.mrf.mxu2  ;;  %3460 = vmatmul.f32.gmra.mxu0 %v3050_v42 }
 0x35a   :  { %v3218_v22 = vadd.f32 %v6441_v58, %v3217_v15 }
 0x35b   :  { %v3533_v57 = vsel %vm7047_vm10, %v3497_v61, 0.0  ;;  %v3604_v16 = vld [vmem:[#allocation3 + $0x5f] sm:$0xff] }
 0x35c   :  { %v3675_v23 = vld [vmem:[#allocation3 + $0x59] sm:$0xff]  ;;  %3569 = vst [vmem:[#allocation3 + $0x68] sm:$0xff] %v3533_v57  ;;  %3802 = vmatmul.f32.gmra.mxu1 %v3604_v16 }
 0x35d   :  { %4049 = vmatmul.f32.gmra.mxu3 %v3675_v23  ;;  %v2928_v16 = vld [vmem:[#allocation3 + $0x78] sm:$0xff]  ;;  %v3052_v23 = vld [vmem:[#allocation2 + $0xf9] sm:$0xff] }
 0x35e   :  { %v3342_v51 = vpop.f32.mrf.mxu3  ;;  %v3416_v1 = vpop.f32.mrf.mxu0  ;;  %4291 = vmatmul.msk.f32.gmra.mxu2 %vm7046_vm1, %v3496_v31 }
 0x35f   :  { %v6462_v27 = vadd.f32 %v3342_v51, %v3218_v22  ;;  %v3417_v9 = vadd.f32 %v3416_v1, %v6317_v35 }
 0x361   :  { %v3498_v11 = vadd.f32 %v3417_v9, %v2927_v5  ;;  %v3220_v3 = vpop.f32.mrf.mxu2  ;;  %3463 = vmatmul.f32.gmra.mxu0 %v3051_v37 }
 0x362   :  { %v3221_v42 = vadd.f32 %v6441_v58, %v3220_v3 }
 0x363   :  { %v3534_v36 = vsel %vm7048_vm9, %v3498_v11, 0.0  ;;  %v3605_v60 = vld [vmem:[#allocation3 + $0x67] sm:$0xff] }
 0x364   :  { %v3676_v38 = vld [vmem:[#allocation3 + $0x61] sm:$0xff]  ;;  %3570 = vst [vmem:[#allocation3 + $0x70] sm:$0xff] %v3534_v36  ;;  %3805 = vmatmul.f32.gmra.mxu1 %v3605_v60 }
 0x365   :  { %4052 = vmatmul.f32.gmra.mxu3 %v3676_v38  ;;  %v2929_v60 = vld [vmem:[#allocation3 + $0x80] sm:$0xff]  ;;  %v3053_v38 = vld [vmem:[#allocation2 + $0x101] sm:$0xff] }
 0x366   :  { %v3345_v31 = vpop.f32.mrf.mxu3  ;;  %v3419_v15 = vpop.f32.mrf.mxu0  ;;  %4292 = vmatmul.msk.f32.gmra.mxu2 %vm7047_vm10, %v3497_v61  ;;  %vm7050_vm10 = vnez %v6926_v63 }
 0x367   :  { %v6470_v35 = vadd.f32 %v3345_v31, %v3221_v42  ;;  %v3420_v57 = vadd.f32 %v3419_v15, %v6326_v6 }
 0x369   :  { %v3499_v22 = vadd.f32 %v3420_v57, %v2928_v16  ;;  %v3223_v51 = vpop.f32.mrf.mxu2  ;;  %3466 = vmatmul.f32.gmra.mxu0 %v3052_v23 }
 0x36a   :  { %v3224_v37 = vadd.f32 %v6441_v58, %v3223_v51 }
 0x36b   :  { %v3535_v1 = vsel %vm7049_vm14, %v3499_v22, 0.0  ;;  %v3606_v9 = vld [vmem:[#allocation3 + $0x6f] sm:$0xff] }
 0x36c   :  { %v3677_v5 = vld [vmem:[#allocation3 + $0x69] sm:$0xff]  ;;  %3571 = vst [vmem:[#allocation3 + $0x78] sm:$0xff] %v3535_v1  ;;  %3808 = vmatmul.f32.gmra.mxu1 %v3606_v9 }
 0x36d   :  { %4055 = vmatmul.f32.gmra.mxu3 %v3677_v5  ;;  %v2930_v9 = vld [vmem:[#allocation3 + $0x88] sm:$0xff]  ;;  %v3054_v5 = vld [vmem:[#allocation2 + $0x109] sm:$0xff] }
 0x36e   :  { %v3348_v61 = vpop.f32.mrf.mxu3  ;;  %v3422_v3 = vpop.f32.mrf.mxu0  ;;  %4293 = vmatmul.msk.f32.gmra.mxu2 %vm7048_vm9, %v3498_v11  ;;  %vm7051_vm9 = vnez %v6930_v40 }
 0x36f   :  { %v6478_v6 = vadd.f32 %v3348_v61, %v3224_v37  ;;  %v3423_v36 = vadd.f32 %v3422_v3, %v6335_v19 }
 0x371   :  { %v3500_v42 = vadd.f32 %v3423_v36, %v2929_v60  ;;  %v3226_v31 = vpop.f32.mrf.mxu2  ;;  %3469 = vmatmul.f32.gmra.mxu0 %v3053_v38 }
 0x372   :  { %v3227_v23 = vadd.f32 %v6441_v58, %v3226_v31 }
 0x373   :  { %v3536_v15 = vsel %vm7050_vm10, %v3500_v42, 0.0  ;;  %v3607_v57 = vld [vmem:[#allocation3 + $0x77] sm:$0xff] }
 0x374   :  { %v3678_v16 = vld [vmem:[#allocation3 + $0x71] sm:$0xff]  ;;  %3572 = vst [vmem:[#allocation3 + $0x80] sm:$0xff] %v3536_v15  ;;  %3811 = vmatmul.f32.gmra.mxu1 %v3607_v57 }
 0x375   :  { %4058 = vmatmul.f32.gmra.mxu3 %v3678_v16  ;;  %v2931_v57 = vld [vmem:[#allocation3 + $0x90] sm:$0xff]  ;;  %v3055_v16 = vld [vmem:[#allocation2 + $0x111] sm:$0xff] }
 0x376   :  { %v3351_v11 = vpop.f32.mrf.mxu3  ;;  %v3425_v51 = vpop.f32.mrf.mxu0  ;;  %4294 = vmatmul.msk.f32.gmra.mxu2 %vm7049_vm14, %v3499_v22  ;;  %vm7052_vm14 = vnez %v7013_v30 }
 0x377   :  { %v6486_v19 = vadd.f32 %v3351_v11, %v3227_v23  ;;  %v3426_v1 = vadd.f32 %v3425_v51, %v6344_v12 }
 0x379   :  { %v3501_v37 = vadd.f32 %v3426_v1, %v2930_v9  ;;  %v3229_v61 = vpop.f32.mrf.mxu2  ;;  %3472 = vmatmul.f32.gmra.mxu0 %v3054_v5 }
 0x37a   :  { %v3230_v38 = vadd.f32 %v6441_v58, %v3229_v61 }
 0x37b   :  { %v3537_v3 = vsel %vm7051_vm9, %v3501_v37, 0.0  ;;  %v3608_v36 = vld [vmem:[#allocation3 + $0x7f] sm:$0xff] }
 0x37c   :  { %v3679_v60 = vld [vmem:[#allocation3 + $0x79] sm:$0xff]  ;;  %3573 = vst [vmem:[#allocation3 + $0x88] sm:$0xff] %v3537_v3  ;;  %3814 = vmatmul.f32.gmra.mxu1 %v3608_v36 }
 0x37d   :  { %4061 = vmatmul.f32.gmra.mxu3 %v3679_v60  ;;  %v6508_v60 = vld [vmem:[%s6723_s8] ss:$0 sm:$0xff]  ;;  %s4477_s8 = smov [#allocation13]  }
 0x37e   :  { %v3354_v22 = vpop.f32.mrf.mxu3  ;;  %v3428_v31 = vpop.f32.mrf.mxu0  ;;  %4295 = vmatmul.msk.f32.gmra.mxu2 %vm7050_vm10, %v3500_v42  ;;  %vm7053_vm10 = vnez %v7016_v33  ;;  %s4204_s25 = sshll.u32 %s4477_s8, 4  ;;  %s4205_s25 = int_to_ptr.vmem [resolvable:$true] %s4204_s25 }
 0x37f   :  { %v6494_v12 = vadd.f32 %v3354_v22, %v3230_v38  ;;  %v3429_v15 = vadd.f32 %v3428_v31, %v6351_v53  ;;  %v2932_v38 = vld [vmem:[#allocation3 + $0x98] sm:$0xff]  ;;  %v3056_v22 = vld [vmem:[#allocation2 + $0x119] sm:$0xff] }
 0x381   :  { %v3502_v23 = vadd.f32 %v3429_v15, %v2931_v57  ;;  %v3232_v11 = vpop.f32.mrf.mxu2  ;;  %3475 = vmatmul.f32.gmra.mxu0 %v3055_v16  ;;  %v3770_v51 = vpop.f32.mrf.mxu1 }
 0x382   :  { %v3233_v42 = vadd.f32 %v6441_v58, %v3232_v11  ;;  %v3771_v11 = vadd.f32 %v6508_v60, %v3770_v51 }
 0x383   :  { %v3538_v1 = vsel %vm7052_vm14, %v3502_v23, 0.0  ;;  %v3609_v9 = vld [vmem:[#allocation3 + $0x87] sm:$0xff] }
 0x384   :  { %v3680_v5 = vld [vmem:[#allocation3 + $0x81] sm:$0xff]  ;;  %3574 = vst [vmem:[#allocation3 + $0x90] sm:$0xff] %v3538_v1  ;;  %3817 = vmatmul.f32.gmra.mxu1 %v3609_v9 }
 0x385   :  { %4064 = vmatmul.f32.gmra.mxu3 %v3680_v5 }
 0x386   :  { %v3357_v61 = vpop.f32.mrf.mxu3  ;;  %v3431_v3 = vpop.f32.mrf.mxu0  ;;  %4296 = vmatmul.msk.f32.gmra.mxu2 %vm7051_vm9, %v3501_v37  ;;  %vm7054_vm9 = vnez %v7018_v50 }
 0x387   :  { %v6502_v53 = vadd.f32 %v3357_v61, %v3233_v42  ;;  %v3432_v36 = vadd.f32 %v3431_v3, %v6359_v48  ;;  %v2933_v42 = vld [vmem:[#allocation3 + $0xa0] sm:$0xff]  ;;  %v3057_v3 = vld [vmem:[#allocation2 + $0x121] sm:$0xff] }
 0x389   :  { %v3503_v31 = vadd.f32 %v3432_v36, %v2932_v38  ;;  %3478 = vmatmul.f32.gmra.mxu0 %v3056_v22  ;;  %v3773_v15 = vpop.f32.mrf.mxu1  ;;  %v3895_v58 = vpop.f32.mrf.mxu2 }
 0x38a   :  { %v3896_v48 = vadd.f32 %v3895_v58, %v3771_v11 }
 0x38b   :  { %v3539_v57 = vsel %vm7053_vm10, %v3503_v31, 0.0  ;;  %v3610_v16 = vld [vmem:[#allocation3 + $0x8f] sm:$0xff] }
 0x38c   :  { %v3681_v37 = vld [vmem:[#allocation3 + $0x89] sm:$0xff]  ;;  %3575 = vst [vmem:[#allocation3 + $0x98] sm:$0xff] %v3539_v57  ;;  %3820 = vmatmul.f32.gmra.mxu1 %v3610_v16 }
 0x38d   :  { %4067 = vmatmul.f32.gmra.mxu3 %v3681_v37 }
 0x38e   :  { %v3434_v1 = vpop.f32.mrf.mxu0  ;;  %4297 = vmatmul.msk.f32.gmra.mxu2 %vm7052_vm14, %v3502_v23  ;;  %v3774_v23 = vadd.f32 %v6508_v60, %v3773_v15 }
 0x38f   :  { %v3435_v9 = vadd.f32 %v3434_v1, %v6369_v17 }
 0x390   :  { %v4020_v5 = vpop.f32.mrf.mxu3 }
 0x391   :  { %v4021_v61 = vadd.f32 %v4020_v5, %v3896_v48  ;;  %v3504_v36 = vadd.f32 %v3435_v9, %v2933_v42  ;;  %3481 = vmatmul.f32.gmra.mxu0 %v3057_v3  ;;  %v3776_v38 = vpop.f32.mrf.mxu1  ;;  %v3898_v22 = vpop.f32.mrf.mxu2  ;;  %v2934_v48 = vld [vmem:[#allocation3 + $0xa8] sm:$0xff] }
 0x392   :  { %v3899_v17 = vadd.f32 %v3898_v22, %v3774_v23 }
 0x393   :  { %v4128_v51 = vsel %vm4738_vm8, %v4021_v61, 0.0  ;;  %v3540_v58 = vsel %vm7054_vm9, %v3504_v36, 0.0  ;;  %v3611_v57 = vld [vmem:[#allocation3 + $0x97] sm:$0xff]  ;;  %vm7055_vm8 = vnez %v7020_v52 }
 0x394   :  { %4164 = vst [vmem:[#allocation13] sm:$0xff] %v4128_v51  ;;  %v3682_v16 = vld [vmem:[#allocation3 + $0x91] sm:$0xff]  ;;  %3823 = vmatmul.f32.gmra.mxu1 %v3611_v57  ;;  %v3777_v51 = vadd.f32 %v6508_v60, %v3776_v38 }
 0x395   :  { %3576 = vst [vmem:[#allocation3 + $0xa0] sm:$0xff] %v3540_v58  ;;  %4070 = vmatmul.f32.gmra.mxu3 %v3682_v16  ;;  %v2935_v57 = vld [vmem:[#allocation3 + $0xb0] sm:$0xff] }
 0x396   :  { %v3437_v37 = vpop.f32.mrf.mxu0  ;;  %4298 = vmatmul.msk.f32.gmra.mxu2 %vm7053_vm10, %v3503_v31 }
 0x397   :  { %v3438_v11 = vadd.f32 %v3437_v37, %v6377_v34 }
 0x398   :  { %v4023_v43 = vpop.f32.mrf.mxu3 }
 0x399   :  { %v4024_v1 = vadd.f32 %v4023_v43, %v3899_v17  ;;  %v3505_v9 = vadd.f32 %v3438_v11, %v2934_v48  ;;  %v3779_v5 = vpop.f32.mrf.mxu1  ;;  %v3901_v42 = vpop.f32.mrf.mxu2 }
 0x39a   :  { %v3902_v34 = vadd.f32 %v3901_v42, %v3777_v51 }
 0x39b   :  { %v4129_v61 = vsel %vm4778_vm15, %v4024_v1, 0.0  ;;  %v3541_v15 = vsel %vm7055_vm8, %v3505_v9, 0.0  ;;  %vm7056_vm15 = vnez %v7022_v59  ;;  %v3780_v1 = vadd.f32 %v6508_v60, %v3779_v5  ;;  %v7057_v5 = vld [vmem:[#allocation23_spill] sm:$0xff] }
 0x39c   :  { %4165 = vst [vmem:[#allocation13 + $0x8] sm:$0xff] %v4129_v61  ;;  %v3612_v3 = vld [vmem:[#allocation3 + $0x9f] sm:$0xff] }
 0x39d   :  { %v3683_v22 = vld [vmem:[#allocation3 + $0x99] sm:$0xff]  ;;  %3577 = vst [vmem:[#allocation3 + $0xa8] sm:$0xff] %v3541_v15  ;;  %3826 = vmatmul.f32.gmra.mxu1 %v3612_v3 }
 0x39e   :  { %4073 = vmatmul.f32.gmra.mxu3 %v3683_v22  ;;  %v3440_v31 = vpop.f32.mrf.mxu0  ;;  %4299 = vmatmul.msk.f32.gmra.mxu2 %vm7054_vm9, %v3504_v36  ;;  %v2936_v61 = vld [vmem:[#allocation3 + $0xb8] sm:$0xff] }
 0x39f   :  { %v3441_v58 = vadd.f32 %v3440_v31, %v6385_v28 }
 0x3a0   :  { %v4026_v39 = vpop.f32.mrf.mxu3 }
 0x3a1   :  { %v4027_v16 = vadd.f32 %v4026_v39, %v3902_v34  ;;  %v3506_v23 = vadd.f32 %v3441_v58, %v2935_v57  ;;  %v3782_v17 = vpop.f32.mrf.mxu1  ;;  %v3904_v37 = vpop.f32.mrf.mxu2 }
 0x3a2   :  { %v3905_v28 = vadd.f32 %v3904_v37, %v3780_v1  ;;  %v3783_v57 = vadd.f32 %v6508_v60, %v3782_v17  ;;  %v2937_v37 = vld [vmem:[#allocation3 + $0xc0] sm:$0xff] }
 0x3a3   :  { %v4130_v11 = vsel %vm4837_vm7, %v4027_v16, 0.0  ;;  %v3542_v38 = vsel %vm7056_vm15, %v3506_v23, 0.0  ;;  %vm7058_vm7 = vnez %v7057_v5  ;;  %v7059_v17 = vld [vmem:[#allocation24_spill] sm:$0xff] }
 0x3a4   :  { %4166 = vst [vmem:[#allocation13 + $0x10] sm:$0xff] %v4130_v11  ;;  %v3613_v43 = vld [vmem:[#allocation3 + $0xa7] sm:$0xff] }
 0x3a5   :  { %v3684_v48 = vld [vmem:[#allocation3 + $0xa1] sm:$0xff]  ;;  %3578 = vst [vmem:[#allocation3 + $0xb0] sm:$0xff] %v3542_v38  ;;  %3829 = vmatmul.f32.gmra.mxu1 %v3613_v43 }
 0x3a6   :  { %4076 = vmatmul.f32.gmra.mxu3 %v3684_v48  ;;  %v3443_v36 = vpop.f32.mrf.mxu0  ;;  %4300 = vmatmul.msk.f32.gmra.mxu2 %vm7055_vm8, %v3505_v9 }
 0x3a7   :  { %v3444_v42 = vadd.f32 %v3443_v36, %v6393_v32 }
 0x3a8   :  { %v4029_v21 = vpop.f32.mrf.mxu3 }
 0x3a9   :  { %v4030_v15 = vadd.f32 %v4029_v21, %v3905_v28  ;;  %v3507_v3 = vadd.f32 %v3444_v42, %v2936_v61  ;;  %v3785_v22 = vpop.f32.mrf.mxu1  ;;  %v3907_v51 = vpop.f32.mrf.mxu2 }
 0x3aa   :  { %v3908_v32 = vadd.f32 %v3907_v51, %v3783_v57  ;;  %v3786_v21 = vadd.f32 %v6508_v60, %v3785_v22  ;;  %v7061_v22 = vld [vmem:[#allocation25_spill] sm:$0xff] }
 0x3ab   :  { %v4131_v34 = vsel %vm4887_vm2, %v4030_v15, 0.0  ;;  %v3543_v31 = vsel %vm7058_vm7, %v3507_v3, 0.0  ;;  %vm7060_vm2 = vnez %v7059_v17  ;;  %v2938_v15 = vld [vmem:[#allocation3 + $0xc8] sm:$0xff] }
 0x3ac   :  { %4167 = vst [vmem:[#allocation13 + $0x18] sm:$0xff] %v4131_v34  ;;  %v3614_v58 = vld [vmem:[#allocation3 + $0xaf] sm:$0xff] }
 0x3ad   :  { %v3685_v39 = vld [vmem:[#allocation3 + $0xa9] sm:$0xff]  ;;  %3579 = vst [vmem:[#allocation3 + $0xb8] sm:$0xff] %v3543_v31  ;;  %3832 = vmatmul.f32.gmra.mxu1 %v3614_v58 }
 0x3ae   :  { %4079 = vmatmul.f32.gmra.mxu3 %v3685_v39  ;;  %v3446_v9 = vpop.f32.mrf.mxu0  ;;  %4301 = vmatmul.msk.f32.gmra.mxu2 %vm7056_vm15, %v3506_v23 }
 0x3af   :  { %v3447_v16 = vadd.f32 %v3446_v9, %v6401_v55 }
 0x3b0   :  { %v4032_v24 = vpop.f32.mrf.mxu3 }
 0x3b1   :  { %v4033_v11 = vadd.f32 %v4032_v24, %v3908_v32  ;;  %v3508_v38 = vadd.f32 %v3447_v16, %v2937_v37  ;;  %v3788_v43 = vpop.f32.mrf.mxu1  ;;  %v3910_v48 = vpop.f32.mrf.mxu2  ;;  %v2939_v37 = vld [vmem:[#allocation3 + $0xd0] sm:$0xff] }
 0x3b2   :  { %v3911_v55 = vadd.f32 %v3910_v48, %v3786_v21  ;;  %v3789_v16 = vadd.f32 %v6508_v60, %v3788_v43  ;;  %v7063_v43 = vld [vmem:[#allocation26_spill] sm:$0xff] }
 0x3b3   :  { %v4132_v1 = vsel %vm4932_vm11, %v4033_v11, 0.0  ;;  %v3544_v28 = vsel %vm7060_vm2, %v3508_v38, 0.0  ;;  %vm7062_vm11 = vnez %v7061_v22 }
 0x3b4   :  { %4168 = vst [vmem:[#allocation13 + $0x20] sm:$0xff] %v4132_v1  ;;  %v3615_v36 = vld [vmem:[#allocation3 + $0xb7] sm:$0xff] }
 0x3b5   :  { %v3686_v42 = vld [vmem:[#allocation3 + $0xb1] sm:$0xff]  ;;  %3580 = vst [vmem:[#allocation3 + $0xc0] sm:$0xff] %v3544_v28  ;;  %3835 = vmatmul.f32.gmra.mxu1 %v3615_v36 }
 0x3b6   :  { %4082 = vmatmul.f32.gmra.mxu3 %v3686_v42  ;;  %v3449_v23 = vpop.f32.mrf.mxu0  ;;  %4302 = vmatmul.msk.f32.gmra.mxu2 %vm7058_vm7, %v3507_v3 }
 0x3b7   :  { %v3450_v61 = vadd.f32 %v3449_v23, %v6409_v45 }
 0x3b8   :  { %v4035_v49 = vpop.f32.mrf.mxu3 }
 0x3b9   :  { %v4036_v51 = vadd.f32 %v4035_v49, %v3911_v55  ;;  %v3509_v34 = vadd.f32 %v3450_v61, %v2938_v15  ;;  %v3791_v31 = vpop.f32.mrf.mxu1  ;;  %v3913_v58 = vpop.f32.mrf.mxu2  ;;  %v2940_v49 = vld [vmem:[#allocation3 + $0xd8] sm:$0xff] }
 0x3ba   :  { %v3914_v45 = vadd.f32 %v3913_v58, %v3789_v16  ;;  %v3792_v23 = vadd.f32 %v6508_v60, %v3791_v31  ;;  %v7065_v31 = vld [vmem:[#allocation27_spill] sm:$0xff] }
 0x3bb   :  { %v4133_v39 = vsel %vm4983_vm5, %v4036_v51, 0.0  ;;  %v3545_v57 = vsel %vm7062_vm11, %v3509_v34, 0.0  ;;  %vm7064_vm5 = vnez %v7063_v43 }
 0x3bc   :  { %4169 = vst [vmem:[#allocation13 + $0x28] sm:$0xff] %v4133_v39  ;;  %v3616_v32 = vld [vmem:[#allocation3 + $0xbf] sm:$0xff] }
 0x3bd   :  { %v3687_v9 = vld [vmem:[#allocation3 + $0xb9] sm:$0xff]  ;;  %3581 = vst [vmem:[#allocation3 + $0xc8] sm:$0xff] %v3545_v57  ;;  %3838 = vmatmul.f32.gmra.mxu1 %v3616_v32 }
 0x3be   :  { %4085 = vmatmul.f32.gmra.mxu3 %v3687_v9  ;;  %v3452_v3 = vpop.f32.mrf.mxu0  ;;  %4303 = vmatmul.msk.f32.gmra.mxu2 %vm7060_vm2, %v3508_v38 }
 0x3bf   :  { %v3453_v24 = vadd.f32 %v3452_v3, %v6417_v54 }
 0x3c0   :  { %v4038_v47 = vpop.f32.mrf.mxu3 }
 0x3c1   :  { %v4039_v11 = vadd.f32 %v4038_v47, %v3914_v45  ;;  %v3510_v48 = vadd.f32 %v3453_v24, %v2939_v37  ;;  %v3794_v1 = vpop.f32.mrf.mxu1  ;;  %v3916_v28 = vpop.f32.mrf.mxu2  ;;  %v2941_v24 = vld [vmem:[#allocation3 + $0xe0] sm:$0xff] }
 0x3c2   :  { %v3917_v54 = vadd.f32 %v3916_v28, %v3792_v23  ;;  %v3795_v45 = vadd.f32 %v6508_v60, %v3794_v1  ;;  %v7067_v1 = vld [vmem:[#allocation28_spill] sm:$0xff] }
 0x3c3   :  { %v4134_v36 = vsel %vm5033_vm3, %v4039_v11, 0.0  ;;  %v3546_v42 = vsel %vm7064_vm5, %v3510_v48, 0.0  ;;  %vm7066_vm3 = vnez %v7065_v31 }
 0x3c4   :  { %4170 = vst [vmem:[#allocation13 + $0x30] sm:$0xff] %v4134_v36  ;;  %v3617_v21 = vld [vmem:[#allocation3 + $0xc7] sm:$0xff] }
 0x3c5   :  { %v3688_v55 = vld [vmem:[#allocation3 + $0xc1] sm:$0xff]  ;;  %3582 = vst [vmem:[#allocation3 + $0xd0] sm:$0xff] %v3546_v42  ;;  %3841 = vmatmul.f32.gmra.mxu1 %v3617_v21 }
 0x3c6   :  { %4088 = vmatmul.f32.gmra.mxu3 %v3688_v55  ;;  %v3455_v38 = vpop.f32.mrf.mxu0  ;;  %4304 = vmatmul.msk.f32.gmra.mxu2 %vm7062_vm11, %v3509_v34 }
 0x3c7   :  { %v3456_v61 = vadd.f32 %v3455_v38, %v6425_v14  ;;  %v2942_v38 = vld [vmem:[#allocation3 + $0xe8] sm:$0xff] }
 0x3c8   :  { %v4041_v26 = vpop.f32.mrf.mxu3 }
 0x3c9   :  { %v4042_v15 = vadd.f32 %v4041_v26, %v3917_v54  ;;  %v3511_v51 = vadd.f32 %v3456_v61, %v2940_v49  ;;  %v3797_v58 = vpop.f32.mrf.mxu1  ;;  %v3919_v39 = vpop.f32.mrf.mxu2 }
 0x3ca   :  { %v3920_v14 = vadd.f32 %v3919_v39, %v3795_v45  ;;  %v3798_v23 = vadd.f32 %v6508_v60, %v3797_v58  ;;  %v7069_v58 = vld [vmem:[#allocation29_spill] sm:$0xff] }
 0x3cb   :  { %v4135_v57 = vsel %vm5076_vm13, %v4042_v15, 0.0  ;;  %v3547_v32 = vsel %vm7066_vm3, %v3511_v51, 0.0  ;;  %vm7068_vm13 = vnez %v7067_v1 }
 0x3cc   :  { %4171 = vst [vmem:[#allocation13 + $0x38] sm:$0xff] %v4135_v57  ;;  %v3618_v9 = vld [vmem:[#allocation3 + $0xcf] sm:$0xff] }
 0x3cd   :  { %v3689_v16 = vld [vmem:[#allocation3 + $0xc9] sm:$0xff]  ;;  %3583 = vst [vmem:[#allocation3 + $0xd8] sm:$0xff] %v3547_v32  ;;  %3844 = vmatmul.f32.gmra.mxu1 %v3618_v9 }
 0x3ce   :  { %4091 = vmatmul.f32.gmra.mxu3 %v3689_v16  ;;  %v3458_v34 = vpop.f32.mrf.mxu0  ;;  %4305 = vmatmul.msk.f32.gmra.mxu2 %vm7064_vm5, %v3510_v48 }
 0x3cf   :  { %v3459_v3 = vadd.f32 %v3458_v34, %v6433_v7 }
 0x3d0   :  { %v4044_v8 = vpop.f32.mrf.mxu3 }
 0x3d1   :  { %v4045_v47 = vadd.f32 %v4044_v8, %v3920_v14  ;;  %v3512_v37 = vadd.f32 %v3459_v3, %v2941_v24  ;;  %v3800_v11 = vpop.f32.mrf.mxu1  ;;  %v3922_v28 = vpop.f32.mrf.mxu2  ;;  %v2943_v14 = vld [vmem:[#allocation3 + $0xf0] sm:$0xff] }
 0x3d2   :  { %v3923_v7 = vadd.f32 %v3922_v28, %v3798_v23  ;;  %v3801_v16 = vadd.f32 %v6508_v60, %v3800_v11  ;;  %v7071_v11 = vld [vmem:[#allocation30_spill] sm:$0xff]  ;;  %v2944_v23 = vld [vmem:[#allocation3 + $0xf8] sm:$0xff] }
 0x3d3   :  { %v4136_v36 = vsel %vm7003_vm6, %v4045_v47, 0.0  ;;  %v3548_v42 = vsel %vm7068_vm13, %v3512_v37, 0.0  ;;  %vm7070_vm6 = vnez %v7069_v58 }
 0x3d4   :  { %4172 = vst [vmem:[#allocation13 + $0x40] sm:$0xff] %v4136_v36  ;;  %v3619_v21 = vld [vmem:[#allocation3 + $0xd7] sm:$0xff] }
 0x3d5   :  { %v3690_v55 = vld [vmem:[#allocation3 + $0xd1] sm:$0xff]  ;;  %3584 = vst [vmem:[#allocation3 + $0xe0] sm:$0xff] %v3548_v42  ;;  %3847 = vmatmul.f32.gmra.mxu1 %v3619_v21 }
 0x3d6   :  { %4094 = vmatmul.f32.gmra.mxu3 %v3690_v55  ;;  %v3461_v48 = vpop.f32.mrf.mxu0  ;;  %4306 = vmatmul.msk.f32.gmra.mxu2 %vm7066_vm3, %v3511_v51 }
 0x3d7   :  { %v3462_v54 = vadd.f32 %v3461_v48, %v6446_v18 }
 0x3d8   :  { %v4047_v10 = vpop.f32.mrf.mxu3 }
 0x3d9   :  { %v4048_v61 = vadd.f32 %v4047_v10, %v3923_v7  ;;  %v3513_v26 = vadd.f32 %v3462_v54, %v2942_v38  ;;  %v3803_v49 = vpop.f32.mrf.mxu1  ;;  %v3925_v15 = vpop.f32.mrf.mxu2 }
 0x3da   :  { %v3926_v18 = vadd.f32 %v3925_v15, %v3801_v16  ;;  %v3804_v21 = vadd.f32 %v6508_v60, %v3803_v49 }
 0x3db   :  { %v4137_v39 = vsel %vm7044_vm12, %v4048_v61, 0.0  ;;  %v3549_v57 = vsel %vm7070_vm6, %v3513_v26, 0.0  ;;  %v7072_v61 = vld [vmem:[#allocation31_spill] sm:$0xff] }
 0x3dc   :  { %4173 = vst [vmem:[#allocation13 + $0x48] sm:$0xff] %v4137_v39  ;;  %v3620_v32 = vld [vmem:[#allocation3 + $0xdf] sm:$0xff]  ;;  %vm7073_vm12 = vnez %v7072_v61 }
 0x3dd   :  { %v3691_v9 = vld [vmem:[#allocation3 + $0xd9] sm:$0xff]  ;;  %3585 = vst [vmem:[#allocation3 + $0xe8] sm:$0xff] %v3549_v57  ;;  %3850 = vmatmul.f32.gmra.mxu1 %v3620_v32 }
 0x3de   :  { %4097 = vmatmul.f32.gmra.mxu3 %v3691_v9  ;;  %v3464_v51 = vpop.f32.mrf.mxu0  ;;  %4307 = vmatmul.msk.f32.gmra.mxu2 %vm7068_vm13, %v3512_v37  ;;  %v2945_v9 = vld [vmem:[#allocation3 + $0x100] sm:$0xff] }
 0x3df   :  { %v3465_v45 = vadd.f32 %v3464_v51, %v6454_v25 }
 0x3e0   :  { %v4050_v56 = vpop.f32.mrf.mxu3 }
 0x3e1   :  { %v4051_v34 = vadd.f32 %v4050_v56, %v3926_v18  ;;  %v3514_v3 = vadd.f32 %v3465_v45, %v2943_v14  ;;  %v3806_v8 = vpop.f32.mrf.mxu1  ;;  %v3928_v24 = vpop.f32.mrf.mxu2 }
 0x3e2   :  { %v3929_v25 = vadd.f32 %v3928_v24, %v3804_v21  ;;  %v3807_v57 = vadd.f32 %v6508_v60, %v3806_v8 }
 0x3e3   :  { %v4138_v47 = vsel %vm7045_vm0, %v4051_v34, 0.0  ;;  %v3550_v28 = vsel %vm7039_vm4, %v3514_v3, 0.0  ;;  %vm7075_vm0 = vnez %v7042_v2 }
 0x3e4   :  { %4174 = vst [vmem:[#allocation13 + $0x50] sm:$0xff] %v4138_v47  ;;  %v3621_v36 = vld [vmem:[#allocation3 + $0xe7] sm:$0xff] }
 0x3e5   :  { %v3692_v42 = vld [vmem:[#allocation3 + $0xe1] sm:$0xff]  ;;  %3586 = vst [vmem:[#allocation3 + $0xf0] sm:$0xff] %v3550_v28  ;;  %3853 = vmatmul.f32.gmra.mxu1 %v3621_v36 }
 0x3e6   :  { %4100 = vmatmul.f32.gmra.mxu3 %v3692_v42  ;;  %v3467_v37 = vpop.f32.mrf.mxu0  ;;  %4308 = vmatmul.msk.f32.gmra.mxu2 %vm7070_vm6, %v3513_v26  ;;  %v2946_v28 = vld [vmem:[#allocation3 + $0x108] sm:$0xff] }
 0x3e7   :  { %v3468_v55 = vadd.f32 %v3467_v37, %v6462_v27 }
 0x3e8   :  { %v4053_v0 = vpop.f32.mrf.mxu3 }
 0x3e9   :  { %v4054_v7 = vadd.f32 %v4053_v0, %v3929_v25  ;;  %v3515_v48 = vadd.f32 %v3468_v55, %v2944_v23  ;;  %v3809_v54 = vpop.f32.mrf.mxu1  ;;  %v3931_v10 = vpop.f32.mrf.mxu2 }
 0x3ea   :  { %v3932_v27 = vadd.f32 %v3931_v10, %v3807_v57  ;;  %v3810_v24 = vadd.f32 %v6508_v60, %v3809_v54  ;;  %v2947_v10 = vld [vmem:[#allocation3 + $0x110] sm:$0xff] }
 0x3eb   :  { %v4139_v38 = vsel %vm7046_vm1, %v4054_v7, 0.0  ;;  %v3551_v49 = vsel %vm7073_vm12, %v3515_v48, 0.0  ;;  %vm7074_vm1 = vnez %v6913_v41 }
 0x3ec   :  { %4175 = vst [vmem:[#allocation13 + $0x58] sm:$0xff] %v4139_v38  ;;  %v3622_v15 = vld [vmem:[#allocation3 + $0xef] sm:$0xff] }
 0x3ed   :  { %v3693_v39 = vld [vmem:[#allocation3 + $0xe9] sm:$0xff]  ;;  %3587 = vst [vmem:[#allocation3 + $0xf8] sm:$0xff] %v3551_v49  ;;  %3856 = vmatmul.f32.gmra.mxu1 %v3622_v15 }
 0x3ee   :  { %4103 = vmatmul.f32.gmra.mxu3 %v3693_v39  ;;  %v3470_v26 = vpop.f32.mrf.mxu0  ;;  %4309 = vmatmul.msk.f32.gmra.mxu2 %vm7039_vm4, %v3514_v3  ;;  %vm7077_vm4 = vnez %v6996_v44 }
 0x3ef   :  { %v3471_v32 = vadd.f32 %v3470_v26, %v6470_v35 }
 0x3f0   :  { %v4056_v46 = vpop.f32.mrf.mxu3 }
 0x3f1   :  { %v4057_v16 = vadd.f32 %v4056_v46, %v3932_v27  ;;  %v3516_v18 = vadd.f32 %v3471_v32, %v2945_v9  ;;  %v3812_v51 = vpop.f32.mrf.mxu1  ;;  %v3934_v45 = vpop.f32.mrf.mxu2 }
 0x3f2   :  { %v3935_v35 = vadd.f32 %v3934_v45, %v3810_v24  ;;  %v3813_v7 = vadd.f32 %v6508_v60, %v3812_v51 }
 0x3f3   :  { %v4140_v56 = vsel %vm7074_vm1, %v4057_v16, 0.0  ;;  %v3552_v14 = vsel %vm7075_vm0, %v3516_v18, 0.0  ;;  %vm7076_vm1 = vnez %v6918_v20 }
 0x3f4   :  { %4176 = vst [vmem:[#allocation13 + $0x60] sm:$0xff] %v4140_v56  ;;  %v3623_v34 = vld [vmem:[#allocation3 + $0xf7] sm:$0xff] }
 0x3f5   :  { %v3694_v8 = vld [vmem:[#allocation3 + $0xf1] sm:$0xff]  ;;  %3588 = vst [vmem:[#allocation3 + $0x100] sm:$0xff] %v3552_v14  ;;  %3859 = vmatmul.f32.gmra.mxu1 %v3623_v34 }
 0x3f6   :  { %4106 = vmatmul.f32.gmra.mxu3 %v3694_v8  ;;  %v3473_v3 = vpop.f32.mrf.mxu0  ;;  %4310 = vmatmul.msk.f32.gmra.mxu2 %vm7073_vm12, %v3515_v48  ;;  %vm7079_vm12 = vnez %v6998_v62 }
 0x3f7   :  { %v3474_v47 = vadd.f32 %v3473_v3, %v6478_v6 }
 0x3f8   :  { %v4059_v41 = vpop.f32.mrf.mxu3 }
 0x3f9   :  { %v4060_v36 = vadd.f32 %v4059_v41, %v3935_v35  ;;  %v3517_v42 = vadd.f32 %v3474_v47, %v2946_v28  ;;  %v3815_v21 = vpop.f32.mrf.mxu1  ;;  %v3937_v25 = vpop.f32.mrf.mxu2  ;;  %v2949_v28 = vld [vmem:[#allocation3 + $0x120] sm:$0xff] }
 0x3fa   :  { %v3938_v6 = vadd.f32 %v3937_v25, %v3813_v7  ;;  %v3816_v46 = vadd.f32 %v6508_v60, %v3815_v21 }
 0x3fb   :  { %v4141_v37 = vsel %vm7076_vm1, %v4060_v36, 0.0  ;;  %v3553_v55 = vsel %vm7077_vm4, %v3517_v42, 0.0  ;;  %vm7078_vm1 = vnez %v6921_v13 }
 0x3fc   :  { %4177 = vst [vmem:[#allocation13 + $0x68] sm:$0xff] %v4141_v37  ;;  %v3624_v0 = vld [vmem:[#allocation3 + $0xff] sm:$0xff] }
 0x3fd   :  { %v3695_v23 = vld [vmem:[#allocation3 + $0xf9] sm:$0xff]  ;;  %3589 = vst [vmem:[#allocation3 + $0x108] sm:$0xff] %v3553_v55  ;;  %3862 = vmatmul.f32.gmra.mxu1 %v3624_v0 }
 0x3fe   :  { %4109 = vmatmul.f32.gmra.mxu3 %v3695_v23  ;;  %v3476_v48 = vpop.f32.mrf.mxu0  ;;  %4311 = vmatmul.msk.f32.gmra.mxu2 %vm7075_vm0, %v3516_v18  ;;  %v2948_v18 = vld [vmem:[#allocation3 + $0x118] sm:$0xff]  ;;  %vm7081_vm0 = vnez %v7000_v29 }
 0x3ff   :  { %v3477_v54 = vadd.f32 %v3476_v48, %v6486_v19 }
 0x400   :  { %v4062_v20 = vpop.f32.mrf.mxu3 }
 0x401   :  { %v4063_v38 = vadd.f32 %v4062_v20, %v3938_v6  ;;  %v3518_v49 = vadd.f32 %v3477_v54, %v2947_v10  ;;  %v3818_v15 = vpop.f32.mrf.mxu1  ;;  %v3940_v39 = vpop.f32.mrf.mxu2 }
 0x402   :  { %v3941_v19 = vadd.f32 %v3940_v39, %v3816_v46  ;;  %v3819_v3 = vadd.f32 %v6508_v60, %v3818_v15 }
 0x403   :  { %v4142_v57 = vsel %vm7078_vm1, %v4063_v38, 0.0  ;;  %v3554_v27 = vsel %vm7079_vm12, %v3518_v49, 0.0  ;;  %vm7080_vm1 = vnez %v6926_v63 }
 0x404   :  { %4178 = vst [vmem:[#allocation13 + $0x70] sm:$0xff] %v4142_v57  ;;  %v3625_v26 = vld [vmem:[#allocation3 + $0x107] sm:$0xff] }
 0x405   :  { %v3696_v32 = vld [vmem:[#allocation3 + $0x101] sm:$0xff]  ;;  %3590 = vst [vmem:[#allocation3 + $0x110] sm:$0xff] %v3554_v27  ;;  %3865 = vmatmul.f32.gmra.mxu1 %v3625_v26 }
 0x406   :  { %4112 = vmatmul.f32.gmra.mxu3 %v3696_v32  ;;  %v3479_v9 = vpop.f32.mrf.mxu0  ;;  %4312 = vmatmul.msk.f32.gmra.mxu2 %vm7077_vm4, %v3517_v42  ;;  %vm7083_vm4 = vnez %v7002_v4 }
 0x407   :  { %v3480_v16 = vadd.f32 %v3479_v9, %v6494_v12 }
 0x408   :  { %v4065_v13 = vpop.f32.mrf.mxu3 }
 0x409   :  { %v4066_v51 = vadd.f32 %v4065_v13, %v3941_v19  ;;  %v3519_v45 = vadd.f32 %v3480_v16, %v2948_v18  ;;  %v3821_v56 = vpop.f32.mrf.mxu1  ;;  %v3943_v14 = vpop.f32.mrf.mxu2 }
 0x40a   :  { %v3944_v12 = vadd.f32 %v3943_v14, %v3819_v3  ;;  %v3822_v7 = vadd.f32 %v6508_v60, %v3821_v56 }
 0x40b   :  { %v4143_v34 = vsel %vm7080_vm1, %v4066_v51, 0.0  ;;  %v3555_v8 = vsel %vm7081_vm0, %v3519_v45, 0.0  ;;  %vm7082_vm1 = vnez %v6930_v40 }
 0x40c   :  { %4179 = vst [vmem:[#allocation13 + $0x78] sm:$0xff] %v4143_v34  ;;  %v3626_v24 = vld [vmem:[#allocation3 + $0x10f] sm:$0xff] }
 0x40d   :  { %v3697_v35 = vld [vmem:[#allocation3 + $0x109] sm:$0xff]  ;;  %3591 = vst [vmem:[#allocation3 + $0x118] sm:$0xff] %v3555_v8  ;;  %3868 = vmatmul.f32.gmra.mxu1 %v3626_v24 }
 0x40e   :  { %4115 = vmatmul.f32.gmra.mxu3 %v3697_v35  ;;  %v3482_v47 = vpop.f32.mrf.mxu0  ;;  %4313 = vmatmul.msk.f32.gmra.mxu2 %vm7079_vm12, %v3518_v49 }
 0x40f   :  { %v3483_v41 = vadd.f32 %v3482_v47, %v6502_v53 }
 0x410   :  { %v4068_v63 = vpop.f32.mrf.mxu3 }
 0x411   :  { %v4069_v36 = vadd.f32 %v4068_v63, %v3944_v12  ;;  %v3520_v42 = vadd.f32 %v3483_v41, %v2949_v28  ;;  %v3824_v21 = vpop.f32.mrf.mxu1  ;;  %v3946_v25 = vpop.f32.mrf.mxu2 }
 0x412   :  { %v3947_v53 = vadd.f32 %v3946_v25, %v3822_v7  ;;  %v3825_v49 = vadd.f32 %v6508_v60, %v3824_v21 }
 0x413   :  { %v4144_v37 = vsel %vm7082_vm1, %v4069_v36, 0.0  ;;  %v3556_v55 = vsel %vm7083_vm4, %v3520_v42, 0.0 }
 0x414   :  { %4180 = vst [vmem:[#allocation13 + $0x80] sm:$0xff] %v4144_v37  ;;  %v3627_v0 = vld [vmem:[#allocation3 + $0x117] sm:$0xff] }
 0x415   :  { %v3698_v23 = vld [vmem:[#allocation3 + $0x111] sm:$0xff]  ;;  %3592 = vst [vmem:[#allocation3 + $0x120] sm:$0xff] %v3556_v55  ;;  %3871 = vmatmul.f32.gmra.mxu1 %v3627_v0 }
 0x416   :  { %4118 = vmatmul.f32.gmra.mxu3 %v3698_v23  ;;  %4314 = vmatmul.msk.f32.gmra.mxu2 %vm7081_vm0, %v3519_v45 }
 0x418   :  { %v4071_v6 = vpop.f32.mrf.mxu3 }
 0x419   :  { %v4072_v48 = vadd.f32 %v4071_v6, %v3947_v53  ;;  %v3949_v40 = vpop.f32.mrf.mxu2 }
 0x41a   :  { %v3827_v54 = vpop.f32.mrf.mxu1  ;;  %v3950_v15 = vadd.f32 %v3949_v40, %v3825_v49 }
 0x41b   :  { %v4145_v20 = vsel %vm7052_vm14, %v4072_v48, 0.0  ;;  %v3828_v46 = vadd.f32 %v6508_v60, %v3827_v54  ;;  %vm7085_vm14 = vnez %v7072_v61 }
 0x41c   :  { %4181 = vst [vmem:[#allocation13 + $0x88] sm:$0xff] %v4145_v20  ;;  %v3628_v10 = vld [vmem:[#allocation3 + $0x11f] sm:$0xff] }
 0x41d   :  { %v3699_v38 = vld [vmem:[#allocation3 + $0x119] sm:$0xff]  ;;  %3874 = vmatmul.f32.gmra.mxu1 %v3628_v10  ;;  %v3700_v30 = vld [vmem:[#allocation3 + $0x121] sm:$0xff] }
 0x41e   :  { %4121 = vmatmul.f32.gmra.mxu3 %v3699_v38  ;;  %4315 = vmatmul.msk.f32.gmra.mxu2 %vm7083_vm4, %v3520_v42 }
 0x421   :  { %v4074_v39 = vpop.f32.mrf.mxu3  ;;  %v3952_v26 = vpop.f32.mrf.mxu2 }
 0x422   :  { %v4075_v57 = vadd.f32 %v4074_v39, %v3950_v15  ;;  %v3830_v27 = vpop.f32.mrf.mxu1  ;;  %v3953_v19 = vadd.f32 %v3952_v26, %v3828_v46 }
 0x423   :  { %v3831_v45 = vadd.f32 %v6508_v60, %v3830_v27 }
 0x424   :  { %v4146_v32 = vsel %vm7053_vm10, %v4075_v57, 0.0  ;;  %vm7084_vm10 = vnez %v7071_v11 }
 0x425   :  { %4182 = vst [vmem:[#allocation13 + $0x90] sm:$0xff] %v4146_v32 }
 0x426   :  { %4124 = vmatmul.f32.gmra.mxu3 %v3700_v30 }
 0x429   :  { %v4077_v9 = vpop.f32.mrf.mxu3  ;;  %v3955_v18 = vpop.f32.mrf.mxu2 }
 0x42a   :  { %v4078_v16 = vadd.f32 %v4077_v9, %v3953_v19  ;;  %v3833_v13 = vpop.f32.mrf.mxu1  ;;  %v3956_v56 = vadd.f32 %v3955_v18, %v3831_v45 }
 0x42b   :  { %v3834_v35 = vadd.f32 %v6508_v60, %v3833_v13 }
 0x42c   :  { %v4147_v51 = vsel %vm7054_vm9, %v4078_v16, 0.0  ;;  %vm7086_vm9 = vnez %v7042_v2 }
 0x42d   :  { %4183 = vst [vmem:[#allocation13 + $0x98] sm:$0xff] %v4147_v51 }
 0x431   :  { %v4080_v14 = vpop.f32.mrf.mxu3  ;;  %v3958_v8 = vpop.f32.mrf.mxu2 }
 0x432   :  { %v4081_v33 = vadd.f32 %v4080_v14, %v3956_v56  ;;  %v3836_v34 = vpop.f32.mrf.mxu1  ;;  %v3959_v3 = vadd.f32 %v3958_v8, %v3834_v35 }
 0x433   :  { %v3837_v28 = vadd.f32 %v6508_v60, %v3836_v34 }
 0x434   :  { %v4148_v24 = vsel %vm7055_vm8, %v4081_v33, 0.0  ;;  %vm7087_vm8 = vnez %v6996_v44 }
 0x435   :  { %4184 = vst [vmem:[#allocation13 + $0xa0] sm:$0xff] %v4148_v24 }
 0x439   :  { %v4083_v12 = vpop.f32.mrf.mxu3  ;;  %v3961_v50 = vpop.f32.mrf.mxu2 }
 0x43a   :  { %v4084_v47 = vadd.f32 %v4083_v12, %v3959_v3  ;;  %v3839_v41 = vpop.f32.mrf.mxu1  ;;  %v3962_v36 = vadd.f32 %v3961_v50, %v3837_v28 }
 0x43b   :  { %v3840_v55 = vadd.f32 %v6508_v60, %v3839_v41 }
 0x43c   :  { %v4149_v63 = vsel %vm7056_vm15, %v4084_v47, 0.0 }
 0x43d   :  { %4185 = vst [vmem:[#allocation13 + $0xa8] sm:$0xff] %v4149_v63 }
 0x441   :  { %v4086_v42 = vpop.f32.mrf.mxu3  ;;  %v3964_v52 = vpop.f32.mrf.mxu2 }
 0x442   :  { %v4087_v21 = vadd.f32 %v4086_v42, %v3962_v36  ;;  %v3842_v25 = vpop.f32.mrf.mxu1  ;;  %v3965_v0 = vadd.f32 %v3964_v52, %v3840_v55 }
 0x443   :  { %v3843_v48 = vadd.f32 %v6508_v60, %v3842_v25 }
 0x444   :  { %v4150_v37 = vsel %vm7058_vm7, %v4087_v21, 0.0 }
 0x445   :  { %4186 = vst [vmem:[#allocation13 + $0xb0] sm:$0xff] %v4150_v37 }
 0x449   :  { %v4089_v23 = vpop.f32.mrf.mxu3  ;;  %v3967_v59 = vpop.f32.mrf.mxu2 }
 0x44a   :  { %v4090_v7 = vadd.f32 %v4089_v23, %v3965_v0  ;;  %v3845_v53 = vpop.f32.mrf.mxu1  ;;  %v3968_v54 = vadd.f32 %v3967_v59, %v3843_v48 }
 0x44b   :  { %v3846_v49 = vadd.f32 %v6508_v60, %v3845_v53 }
 0x44c   :  { %v4151_v6 = vsel %vm7060_vm2, %v4090_v7, 0.0 }
 0x44d   :  { %4187 = vst [vmem:[#allocation13 + $0xb8] sm:$0xff] %v4151_v6 }
 0x451   :  { %v4092_v40 = vpop.f32.mrf.mxu3  ;;  %v3970_v5 = vpop.f32.mrf.mxu2 }
 0x452   :  { %v4093_v20 = vadd.f32 %v4092_v40, %v3968_v54  ;;  %v3848_v10 = vpop.f32.mrf.mxu1  ;;  %v3971_v15 = vadd.f32 %v3970_v5, %v3846_v49 }
 0x453   :  { %v3849_v32 = vadd.f32 %v6508_v60, %v3848_v10 }
 0x454   :  { %v4152_v38 = vsel %vm7062_vm11, %v4093_v20, 0.0 }
 0x455   :  { %4188 = vst [vmem:[#allocation13 + $0xc0] sm:$0xff] %v4152_v38 }
 0x459   :  { %v4095_v39 = vpop.f32.mrf.mxu3  ;;  %v3973_v17 = vpop.f32.mrf.mxu2 }
 0x45a   :  { %v4096_v57 = vadd.f32 %v4095_v39, %v3971_v15  ;;  %v3851_v27 = vpop.f32.mrf.mxu1  ;;  %v3974_v30 = vadd.f32 %v3973_v17, %v3849_v32 }
 0x45b   :  { %v3852_v13 = vadd.f32 %v6508_v60, %v3851_v27 }
 0x45c   :  { %v4153_v26 = vsel %vm7064_vm5, %v4096_v57, 0.0 }
 0x45d   :  { %4189 = vst [vmem:[#allocation13 + $0xc8] sm:$0xff] %v4153_v26 }
 0x461   :  { %v4098_v46 = vpop.f32.mrf.mxu3  ;;  %v3976_v22 = vpop.f32.mrf.mxu2 }
 0x462   :  { %v4099_v19 = vadd.f32 %v4098_v46, %v3974_v30  ;;  %v3854_v9 = vpop.f32.mrf.mxu1  ;;  %v3977_v18 = vadd.f32 %v3976_v22, %v3852_v13 }
 0x463   :  { %v3855_v33 = vadd.f32 %v6508_v60, %v3854_v9 }
 0x464   :  { %v4154_v16 = vsel %vm7066_vm3, %v4099_v19, 0.0 }
 0x465   :  { %4190 = vst [vmem:[#allocation13 + $0xd0] sm:$0xff] %v4154_v16 }
 0x469   :  { %v4101_v51 = vpop.f32.mrf.mxu3  ;;  %v3979_v43 = vpop.f32.mrf.mxu2 }
 0x46a   :  { %v4102_v45 = vadd.f32 %v4101_v51, %v3977_v18  ;;  %v3857_v56 = vpop.f32.mrf.mxu1  ;;  %v3980_v34 = vadd.f32 %v3979_v43, %v3855_v33 }
 0x46b   :  { %v3858_v12 = vadd.f32 %v6508_v60, %v3857_v56 }
 0x46c   :  { %v4155_v14 = vsel %vm7068_vm13, %v4102_v45, 0.0 }
 0x46d   :  { %4191 = vst [vmem:[#allocation13 + $0xd8] sm:$0xff] %v4155_v14 }
 0x471   :  { %v4104_v8 = vpop.f32.mrf.mxu3  ;;  %v3982_v31 = vpop.f32.mrf.mxu2 }
 0x472   :  { %v4105_v24 = vadd.f32 %v4104_v8, %v3980_v34  ;;  %v3860_v35 = vpop.f32.mrf.mxu1  ;;  %v3983_v47 = vadd.f32 %v3982_v31, %v3858_v12 }
 0x473   :  { %v3861_v36 = vadd.f32 %v6508_v60, %v3860_v35 }
 0x474   :  { %v4156_v3 = vsel %vm7070_vm6, %v4105_v24, 0.0 }
 0x475   :  { %4192 = vst [vmem:[#allocation13 + $0xe0] sm:$0xff] %v4156_v3 }
 0x479   :  { %v4107_v41 = vpop.f32.mrf.mxu3  ;;  %v3985_v1 = vpop.f32.mrf.mxu2 }
 0x47a   :  { %v4108_v50 = vadd.f32 %v4107_v41, %v3983_v47  ;;  %v3863_v63 = vpop.f32.mrf.mxu1  ;;  %v3986_v42 = vadd.f32 %v3985_v1, %v3861_v36 }
 0x47b   :  { %v3864_v55 = vadd.f32 %v6508_v60, %v3863_v63 }
 0x47c   :  { %v4157_v28 = vsel %vm7084_vm10, %v4108_v50, 0.0 }
 0x47d   :  { %4193 = vst [vmem:[#allocation13 + $0xe8] sm:$0xff] %v4157_v28 }
 0x481   :  { %v4110_v21 = vpop.f32.mrf.mxu3  ;;  %v3988_v52 = vpop.f32.mrf.mxu2 }
 0x482   :  { %v4111_v25 = vadd.f32 %v4110_v21, %v3986_v42  ;;  %v3866_v37 = vpop.f32.mrf.mxu1  ;;  %v3989_v0 = vadd.f32 %v3988_v52, %v3864_v55 }
 0x483   :  { %v3867_v59 = vadd.f32 %v6508_v60, %v3866_v37 }
 0x484   :  { %v4158_v58 = vsel %vm7085_vm14, %v4111_v25, 0.0 }
 0x485   :  { %4194 = vst [vmem:[#allocation13 + $0xf0] sm:$0xff] %v4158_v58 }
 0x489   :  { %v4113_v23 = vpop.f32.mrf.mxu3  ;;  %v3991_v53 = vpop.f32.mrf.mxu2 }
 0x48a   :  { %v4114_v7 = vadd.f32 %v4113_v23, %v3989_v0  ;;  %v3869_v6 = vpop.f32.mrf.mxu1  ;;  %v3992_v48 = vadd.f32 %v3991_v53, %v3867_v59 }
 0x48b   :  { %v3870_v10 = vadd.f32 %v6508_v60, %v3869_v6 }
 0x48c   :  { %v4159_v11 = vsel %vm7086_vm9, %v4114_v7, 0.0 }
 0x48d   :  { %4195 = vst [vmem:[#allocation13 + $0xf8] sm:$0xff] %v4159_v11 }
 0x491   :  { %v4116_v54 = vpop.f32.mrf.mxu3  ;;  %v3994_v61 = vpop.f32.mrf.mxu2 }
 0x492   :  { %v4117_v40 = vadd.f32 %v4116_v54, %v3992_v48  ;;  %v3995_v5 = vadd.f32 %v3994_v61, %v3870_v10  ;;  %v3872_v38 = vpop.f32.mrf.mxu1 }
 0x493   :  { %v3873_v57 = vadd.f32 %v6508_v60, %v3872_v38 }
 0x494   :  { %v4160_v20 = vsel %vm7087_vm8, %v4117_v40, 0.0 }
 0x495   :  { %4196 = vst [vmem:[#allocation13 + $0x100] sm:$0xff] %v4160_v20 }
 0x499   :  { %v4119_v49 = vpop.f32.mrf.mxu3  ;;  %v3997_v2 = vpop.f32.mrf.mxu2 }
 0x49a   :  { %v4120_v15 = vadd.f32 %v4119_v49, %v3995_v5  ;;  %v3998_v27 = vadd.f32 %v3997_v2, %v3873_v57  ;;  %v3875_v32 = vpop.f32.mrf.mxu1 }
 0x49b   :  { %v3876_v46 = vadd.f32 %v6508_v60, %v3875_v32 }
 0x49c   :  { %v4161_v39 = vsel %vm7079_vm12, %v4120_v15, 0.0 }
 0x49d   :  { %4197 = vst [vmem:[#allocation13 + $0x108] sm:$0xff] %v4161_v39 }
 0x4a1   :  { %v4122_v17 = vpop.f32.mrf.mxu3  ;;  %v4000_v30 = vpop.f32.mrf.mxu2 }
 0x4a2   :  { %v4123_v26 = vadd.f32 %v4122_v17, %v3998_v27  ;;  %v4001_v19 = vadd.f32 %v4000_v30, %v3876_v46 }
 0x4a4   :  { %v4162_v44 = vsel %vm7081_vm0, %v4123_v26, 0.0 }
 0x4a5   :  { %4198 = vst [vmem:[#allocation13 + $0x110] sm:$0xff] %v4162_v44 }
 0x4a9   :  { %v4125_v62 = vpop.f32.mrf.mxu3 }
 0x4aa   :  { %v4126_v9 = vadd.f32 %v4125_v62, %v4001_v19 }
 0x4ac   :  { %v4163_v22 = vsel %vm7083_vm4, %v4126_v9, 0.0 }
 0x4ad   :  { %4199 = vst [vmem:[#allocation13 + $0x118] sm:$0xff] %v4163_v22 }
 0x4ae   :  { %4212 = dma.vmem_to_hbm [thread:$0]  %s4205_s25, 4608, %s4207_s0, [#allocation6], %s4469_s17, %s4469_s17, %s4470_s18  }
 0x4af   :  { %4466 = dma.done.wait [#allocation6], 4608  }
 0x4b0   :  { %4467 = vsyncadd [#allocation6], 4294962688 }
 0x4b1   :  { %4217 = vsyncpa [#allocation5], 1 }
 0x4b2   :  { %4218 = vsyncpa [#allocation8], 1 }
 0x4b3   :  { %4219 = vsyncpa [#allocation11], 1 }
 0x4b4   :  { %4220 = vsyncpa [#allocation6], 1 }

</bundles_post_ra>
